<compile_context>
chip_gen: v7x
topology: tpu7x:2x2x1
jax: 0.10.0
libtpu: 0.0.40
codegen_flags: <defaults>
</compile_context>

<pallas_src>
import functools

import jax
import jax.numpy as jnp
from jax.experimental import pallas as pl
from jax.experimental.pallas import tpu as pltpu

LN_EPS = 1e-5
NEG_INF = -1e30  # large finite negative for causal masking (robust vs -inf)


def _layernorm(x, gamma, beta):
    mu = jnp.mean(x, axis=-1, keepdims=True)
    var = jnp.mean((x - mu) ** 2, axis=-1, keepdims=True)
    return (x - mu) * jax.lax.rsqrt(var + LN_EPS) * gamma + beta


def block_kernel(
    x_ref,                       # (1, T, C) f32
    wqkv_ref,                    # (C, 3C)  bf16  (fused Q|K|V weights)
    wo_ref, bo_ref,              # (C, C) bf16, (1, C) f32
    w1_ref, b1_ref,              # (C, 4C) bf16, (1, 4C) f32
    w2_ref, b2_ref,              # (4C, C) bf16, (1, C) f32
    g1_ref, be1_ref,             # (1, C) f32
    g2_ref, be2_ref,             # (1, C) f32
    o_ref,                       # (1, T, C) f32
    *, n_heads: int,
):
    x = x_ref[0]                 # (T, C) f32
    T, C = x.shape
    hs = C // n_heads
    scale = float(C) ** -0.5     # matches reference: C ** (-0.5) with C = embed dim

    # ---- LayerNorm 1 (f32 elementwise) ----
    h1 = _layernorm(x, g1_ref[0], be1_ref[0])
    h1_bf = h1.astype(jnp.bfloat16)

    # ---- fused QKV: one bf16 MXU matmul with f32 accumulation ----
    qkv = jnp.dot(h1_bf, wqkv_ref[...], preferred_element_type=jnp.float32)  # (T, 3C)
    q = qkv[:, 0 * C:1 * C]
    k = qkv[:, 1 * C:2 * C]
    v = qkv[:, 2 * C:3 * C]

    row = jax.lax.broadcasted_iota(jnp.int32, (T, T), 0)
    col = jax.lax.broadcasted_iota(jnp.int32, (T, T), 1)
    mask_bias = jnp.where(row >= col, 0.0, NEG_INF)       # additive causal mask, f32

    # ---- per-head causal attention; project through Wo on the fly (no concat) ----
    attn = jnp.zeros((T, C), jnp.float32)
    for h in range(n_heads):                               # static unroll
        sl = slice(h * hs, (h + 1) * hs)
        qh = q[:, sl].astype(jnp.bfloat16)                 # (T, hs)
        kh = k[:, sl].astype(jnp.bfloat16)
        vh = v[:, sl].astype(jnp.bfloat16)
        s = jnp.dot(qh, kh.T, preferred_element_type=jnp.float32) * scale  # (T, T)
        s = s + mask_bias
        s = s - jnp.max(s, axis=-1, keepdims=True)
        e = jnp.exp(s)
        p = e * pl.reciprocal(jnp.sum(e, axis=-1, keepdims=True), approx=True)
        # attention-prob dropout: identity in eval mode
        oh = jnp.dot(p.astype(jnp.bfloat16), vh, preferred_element_type=jnp.float32)
        # accumulate this head's contribution to the output projection
        attn = attn + jnp.dot(oh.astype(jnp.bfloat16), wo_ref[sl, :],
                              preferred_element_type=jnp.float32)
    # projection dropout: identity in eval mode
    x1 = x + attn + bo_ref[0]

    # ---- LayerNorm 2 + feed-forward ----
    h2 = _layernorm(x1, g2_ref[0], be2_ref[0]).astype(jnp.bfloat16)
    ff = jnp.dot(h2, w1_ref[...], preferred_element_type=jnp.float32) + b1_ref[0]
    ff = jnp.maximum(ff, 0.0).astype(jnp.bfloat16)         # ReLU
    ff = jnp.dot(ff, w2_ref[...], preferred_element_type=jnp.float32) + b2_ref[0]
    # feed-forward dropout: identity in eval mode

    o_ref[0] = (x1 + ff).astype(o_ref.dtype)


def transformer_block(x, params, *, n_heads):
    (wq, wk, wv, wo, bo, w1, b1, w2, b2, g1, be1, g2, be2) = params
    B, T, C = x.shape
    H = 4 * C

    # Fuse Q/K/V into one (C, 3C) operand; cast matmul weights to bf16
    # (f32 accumulation happens inside the kernel via preferred_element_type).
    wqkv = jnp.concatenate([wq, wk, wv], axis=1).astype(jnp.bfloat16)
    wo_bf = wo.astype(jnp.bfloat16)
    w1_bf = w1.astype(jnp.bfloat16)
    w2_bf = w2.astype(jnp.bfloat16)

    full = lambda shape: pl.BlockSpec(shape, lambda b: tuple(0 for _ in shape))

    # Explicit VMEM budget: double-buffered x/out tiles + bf16 weights
    # + attention/FFN intermediates. Clamped to a value safe on all chips
    # (v7x physical VMEM is 64 MiB per TensorCore).
    vmem_limit = int(
        2 * 2 * T * C * 4                                  # x / out tiles (dbl-buf)
        + 2 * (3 * C * C + C * C + 2 * C * H) * 2          # bf16 weights (dbl-buf)
        + T * H * 4 + 2 * T * T * 4 + 8 * T * C * 4        # intermediates headroom
    )
    vmem_limit = min(max(vmem_limit, 32 * 1024 * 1024), 60 * 1024 * 1024)

    return pl.pallas_call(
        functools.partial(block_kernel, n_heads=n_heads),
        out_shape=jax.ShapeDtypeStruct((B, T, C), x.dtype),
        grid_spec=pltpu.PrefetchScalarGridSpec(
            num_scalar_prefetch=0,
            grid=(B,),                                     # "parallel" -> shards over
            in_specs=[                                     # v7x's two TensorCores
                pl.BlockSpec((1, T, C), lambda b: (b, 0, 0)),   # x
                full((C, 3 * C)),                          # fused Wqkv (bf16)
                full((C, C)), full((1, C)),                # Wo (bf16), bo
                full((C, H)), full((1, H)),                # W1 (bf16), b1
                full((H, C)), full((1, C)),                # W2 (bf16), b2
                full((1, C)), full((1, C)),                # gamma1 beta1
                full((1, C)), full((1, C)),                # gamma2 beta2
            ],
            out_specs=pl.BlockSpec((1, T, C), lambda b: (b, 0, 0)),
        ),
        compiler_params=pltpu.CompilerParams(
            dimension_semantics=("parallel",),
            vmem_limit_bytes=vmem_limit,
        ),
    )(x, wqkv, wo_bf, bo, w1_bf, b1, w2_bf, b2, g1, be1, g2, be2)


def make_params(key, C, n_heads):
    H = 4 * C
    ks = jax.random.split(key, 8)
    s = 0.02
    wq = jax.random.normal(ks[0], (C, C), jnp.float32) * s
    wk = jax.random.normal(ks[1], (C, C), jnp.float32) * s
    wv = jax.random.normal(ks[2], (C, C), jnp.float32) * s
    wo = jax.random.normal(ks[3], (C, C), jnp.float32) * s
    bo = jax.random.normal(ks[4], (1, C), jnp.float32) * s
    w1 = jax.random.normal(ks[5], (C, H), jnp.float32) * s
    b1 = jax.random.normal(ks[6], (1, H), jnp.float32) * s
    w2 = jax.random.normal(ks[7], (H, C), jnp.float32) * s
    b2 = jnp.zeros((1, C), jnp.float32)
    g1 = jnp.ones((1, C), jnp.float32)
    be1 = jnp.zeros((1, C), jnp.float32)
    g2 = jnp.ones((1, C), jnp.float32)
    be2 = jnp.zeros((1, C), jnp.float32)
    return (wq, wk, wv, wo, bo, w1, b1, w2, b2, g1, be1, g2, be2)


def reference_block(x, params, *, n_heads):
    """Pure-JAX f32 reference mirroring the PyTorch forward (eval mode)."""
    (wq, wk, wv, wo, bo, w1, b1, w2, b2, g1, be1, g2, be2) = params
    B, T, C = x.shape
    hs = C // n_heads
    h1 = _layernorm(x, g1[0], be1[0])
    q, k, v = h1 @ wq, h1 @ wk, h1 @ wv
    mask = jnp.tril(jnp.ones((T, T), bool))
    outs = []
    for h in range(n_heads):
        qh = q[..., h * hs:(h + 1) * hs]
        kh = k[..., h * hs:(h + 1) * hs]
        vh = v[..., h * hs:(h + 1) * hs]
        w = jnp.einsum("btd,bsd->bts", qh, kh) * (C ** -0.5)
        w = jnp.where(mask, w, -jnp.inf)
        w = jax.nn.softmax(w, axis=-1)
        outs.append(jnp.einsum("bts,bsd->btd", w, vh))
    attn = jnp.concatenate(outs, axis=-1) @ wo + bo[0]
    x1 = x + attn
    h2 = _layernorm(x1, g2[0], be2[0])
    ff = jnp.maximum(h2 @ w1 + b1[0], 0.0) @ w2 + b2[0]
    return x1 + ff


if __name__ == "__main__":
    # Small but lane-dense shapes: C multiple of 128, T multiple of 8.
    B, T, C, n_heads = 2, 128, 128, 4
    key = jax.random.PRNGKey(0)
    kx, kp = jax.random.split(key)
    x = jax.random.normal(kx, (B, T, C), jnp.float32)
    params = make_params(kp, C, n_heads)

    out = transformer_block(x, params, n_heads=n_heads)
    out = jax.block_until_ready(out)

    ref = reference_block(x, params, n_heads=n_heads)
    assert out.shape == (B, T, C)
    assert bool(jnp.all(jnp.isfinite(out)))
    # Kernel uses bf16 MXU operands (f32 accumulation); compare with bf16-level tolerance.
    assert jnp.allclose(out, ref, atol=2e-2, rtol=2e-2), float(jnp.max(jnp.abs(out - ref)))

    print("KERNEL_OK")
</pallas_src>

<mosaic_0001>
module attributes {stable_mosaic.version = 11 : i64} {
  func.func @block_kernel(%arg0: i32, %arg1: memref<1x128x128xf32, #tpu.memory_space<vmem>>, %arg2: memref<128x384xbf16, #tpu.memory_space<vmem>>, %arg3: memref<128x128xbf16, #tpu.memory_space<vmem>>, %arg4: memref<1x128xf32, #tpu.memory_space<vmem>>, %arg5: memref<128x512xbf16, #tpu.memory_space<vmem>>, %arg6: memref<1x512xf32, #tpu.memory_space<vmem>>, %arg7: memref<512x128xbf16, #tpu.memory_space<vmem>>, %arg8: memref<1x128xf32, #tpu.memory_space<vmem>>, %arg9: memref<1x128xf32, #tpu.memory_space<vmem>>, %arg10: memref<1x128xf32, #tpu.memory_space<vmem>>, %arg11: memref<1x128xf32, #tpu.memory_space<vmem>>, %arg12: memref<1x128xf32, #tpu.memory_space<vmem>>, %arg13: memref<1x128x128xf32, #tpu.memory_space<vmem>>) attributes {dimension_semantics = [#tpu.dimension_semantics<parallel>], iteration_bounds = array<i64: 2>, scalar_prefetch = 0 : i64, scratch_operands = 0 : i64, tpu.core_type = #tpu.core_type<tc>, window_params = [{transform_indices = @transform_0, window_bounds = array<i64: 1, 128, 128>}, {pipeline_mode = #tpu.pipeline_mode<synchronous>, transform_indices = @transform_1, window_bounds = array<i64: 128, 384>}, {pipeline_mode = #tpu.pipeline_mode<synchronous>, transform_indices = @transform_2, window_bounds = array<i64: 128, 128>}, {pipeline_mode = #tpu.pipeline_mode<synchronous>, transform_indices = @transform_3, window_bounds = array<i64: 1, 128>}, {pipeline_mode = #tpu.pipeline_mode<synchronous>, transform_indices = @transform_4, window_bounds = array<i64: 128, 512>}, {pipeline_mode = #tpu.pipeline_mode<synchronous>, transform_indices = @transform_5, window_bounds = array<i64: 1, 512>}, {pipeline_mode = #tpu.pipeline_mode<synchronous>, transform_indices = @transform_6, window_bounds = array<i64: 512, 128>}, {pipeline_mode = #tpu.pipeline_mode<synchronous>, transform_indices = @transform_7, window_bounds = array<i64: 1, 128>}, {pipeline_mode = #tpu.pipeline_mode<synchronous>, transform_indices = @transform_8, window_bounds = array<i64: 1, 128>}, {pipeline_mode = #tpu.pipeline_mode<synchronous>, transform_indices = @transform_9, window_bounds = array<i64: 1, 128>}, {pipeline_mode = #tpu.pipeline_mode<synchronous>, transform_indices = @transform_10, window_bounds = array<i64: 1, 128>}, {pipeline_mode = #tpu.pipeline_mode<synchronous>, transform_indices = @transform_11, window_bounds = array<i64: 1, 128>}, {transform_indices = @transform_12, window_bounds = array<i64: 1, 128, 128>}]} {
    %c0 = arith.constant 0 : index
    %c0_0 = arith.constant 0 : index
    %c0_1 = arith.constant 0 : index
    %0 = vector.load %arg1[%c0, %c0_0, %c0_1] : memref<1x128x128xf32, #tpu.memory_space<vmem>>, vector<1x128x128xf32>
    %1 = vector.shape_cast %0 : vector<1x128x128xf32> to vector<128x128xf32>
    %c0_2 = arith.constant 0 : index
    %c0_3 = arith.constant 0 : index
    %2 = vector.load %arg9[%c0_2, %c0_3] : memref<1x128xf32, #tpu.memory_space<vmem>>, vector<1x128xf32>
    %3 = vector.shape_cast %2 : vector<1x128xf32> to vector<128xf32>
    %c0_4 = arith.constant 0 : index
    %c0_5 = arith.constant 0 : index
    %4 = vector.load %arg10[%c0_4, %c0_5] : memref<1x128xf32, #tpu.memory_space<vmem>>, vector<1x128xf32>
    %5 = vector.shape_cast %4 : vector<1x128xf32> to vector<128xf32>
    %cst = arith.constant dense<0.000000e+00> : vector<128xf32>
    %6 = vector.multi_reduction <add>, %1, %cst [1] : vector<128x128xf32> to vector<128xf32>
    %7 = vector.shape_cast %6 : vector<128xf32> to vector<128x1xf32>
    %cst_6 = arith.constant 1.280000e+02 : f32
    %8 = vector.broadcast %cst_6 : f32 to vector<128x1xf32>
    %9 = arith.divf %7, %8 : vector<128x1xf32>
    %10 = vector.broadcast %9 : vector<128x1xf32> to vector<128x128xf32>
    %11 = arith.subf %1, %10 : vector<128x128xf32>
    %12 = arith.mulf %11, %11 : vector<128x128xf32>
    %cst_7 = arith.constant dense<0.000000e+00> : vector<128xf32>
    %13 = vector.multi_reduction <add>, %12, %cst_7 [1] : vector<128x128xf32> to vector<128xf32>
    %14 = vector.shape_cast %13 : vector<128xf32> to vector<128x1xf32>
    %cst_8 = arith.constant 1.280000e+02 : f32
    %15 = vector.broadcast %cst_8 : f32 to vector<128x1xf32>
    %16 = arith.divf %14, %15 : vector<128x1xf32>
    %17 = vector.broadcast %9 : vector<128x1xf32> to vector<128x128xf32>
    %18 = arith.subf %1, %17 : vector<128x128xf32>
    %cst_9 = arith.constant 9.99999974E-6 : f32
    %19 = vector.broadcast %cst_9 : f32 to vector<128x1xf32>
    %20 = arith.addf %16, %19 : vector<128x1xf32>
    %21 = math.rsqrt %20 : vector<128x1xf32>
    %22 = vector.broadcast %21 : vector<128x1xf32> to vector<128x128xf32>
    %23 = arith.mulf %18, %22 : vector<128x128xf32>
    %24 = vector.shape_cast %3 : vector<128xf32> to vector<1x128xf32>
    %25 = vector.broadcast %24 : vector<1x128xf32> to vector<128x128xf32>
    %26 = arith.mulf %23, %25 : vector<128x128xf32>
    %27 = vector.shape_cast %5 : vector<128xf32> to vector<1x128xf32>
    %28 = vector.broadcast %27 : vector<1x128xf32> to vector<128x128xf32>
    %29 = arith.addf %26, %28 : vector<128x128xf32>
    %30 = arith.truncf %29 : vector<128x128xf32> to vector<128x128xbf16>
    %c0_10 = arith.constant 0 : index
    %c0_11 = arith.constant 0 : index
    %31 = vector.load %arg2[%c0_10, %c0_11] : memref<128x384xbf16, #tpu.memory_space<vmem>>, vector<128x384xbf16>
    %cst_12 = arith.constant dense<0.000000e+00> : vector<128x384xf32>
    %32 = tpu.matmul %30, %31, %cst_12 {dimension_numbers = #tpu.dot_dimension_numbers<[1], [0], [0], [1], [0, 0, 1, 1], [], []>} : vector<128x128xbf16>, vector<128x384xbf16>, vector<128x384xf32> -> vector<128x384xf32>
    %33 = vector.extract_strided_slice %32 {offsets = [0, 0], sizes = [128, 128], strides = [1, 1]} : vector<128x384xf32> to vector<128x128xf32>
    %34 = vector.extract_strided_slice %32 {offsets = [0, 128], sizes = [128, 128], strides = [1, 1]} : vector<128x384xf32> to vector<128x128xf32>
    %35 = vector.extract_strided_slice %32 {offsets = [0, 256], sizes = [128, 128], strides = [1, 1]} : vector<128x384xf32> to vector<128x128xf32>
    %36 = tpu.iota {dimensions = array<i32: 0>} : vector<128x128xi32>
    %37 = tpu.iota {dimensions = array<i32: 1>} : vector<128x128xi32>
    %38 = arith.cmpi sge, %36, %37 : vector<128x128xi32>
    %cst_13 = arith.constant 0.000000e+00 : f32
    %cst_14 = arith.constant -1.000000e+30 : f32
    %39 = vector.broadcast %cst_13 : f32 to vector<128x128xf32>
    %40 = vector.broadcast %cst_14 : f32 to vector<128x128xf32>
    %41 = arith.select %38, %39, %40 : vector<128x128xi1>, vector<128x128xf32>
    %cst_15 = arith.constant 0.000000e+00 : f32
    %42 = vector.broadcast %cst_15 : f32 to vector<128x128xf32>
    %43 = vector.extract_strided_slice %33 {offsets = [0, 0], sizes = [128, 32], strides = [1, 1]} : vector<128x128xf32> to vector<128x32xf32>
    %44 = arith.truncf %43 : vector<128x32xf32> to vector<128x32xbf16>
    %45 = vector.extract_strided_slice %34 {offsets = [0, 0], sizes = [128, 32], strides = [1, 1]} : vector<128x128xf32> to vector<128x32xf32>
    %46 = arith.truncf %45 : vector<128x32xf32> to vector<128x32xbf16>
    %47 = vector.extract_strided_slice %35 {offsets = [0, 0], sizes = [128, 32], strides = [1, 1]} : vector<128x128xf32> to vector<128x32xf32>
    %48 = arith.truncf %47 : vector<128x32xf32> to vector<128x32xbf16>
    %49 = tpu.transpose %46, [1, 0] : vector<128x32xbf16> -> vector<32x128xbf16>
    %cst_16 = arith.constant dense<0.000000e+00> : vector<128x128xf32>
    %50 = tpu.matmul %44, %49, %cst_16 {dimension_numbers = #tpu.dot_dimension_numbers<[1], [0], [0], [1], [0, 0, 1, 1], [], []>} : vector<128x32xbf16>, vector<32x128xbf16>, vector<128x128xf32> -> vector<128x128xf32>
    %cst_17 = arith.constant 0.0883883461 : f32
    %51 = vector.broadcast %cst_17 : f32 to vector<128x128xf32>
    %52 = arith.mulf %50, %51 : vector<128x128xf32>
    %53 = arith.addf %52, %41 : vector<128x128xf32>
    %cst_18 = arith.constant dense<0xFF800000> : vector<128xf32>
    %54 = vector.multi_reduction <maximumf>, %53, %cst_18 [1] : vector<128x128xf32> to vector<128xf32>
    %55 = vector.shape_cast %54 : vector<128xf32> to vector<128x1xf32>
    %56 = vector.broadcast %55 : vector<128x1xf32> to vector<128x128xf32>
    %57 = arith.subf %53, %56 : vector<128x128xf32>
    %58 = math.exp %57 : vector<128x128xf32>
    %cst_19 = arith.constant dense<0.000000e+00> : vector<128xf32>
    %59 = vector.multi_reduction <add>, %58, %cst_19 [1] : vector<128x128xf32> to vector<128xf32>
    %60 = vector.shape_cast %59 : vector<128xf32> to vector<128x1xf32>
    %61 = tpu.reciprocal %60 {approx = true} : vector<128x1xf32> -> vector<128x1xf32>
    %62 = vector.broadcast %61 : vector<128x1xf32> to vector<128x128xf32>
    %63 = arith.mulf %58, %62 : vector<128x128xf32>
    %64 = arith.truncf %63 : vector<128x128xf32> to vector<128x128xbf16>
    %cst_20 = arith.constant dense<0.000000e+00> : vector<128x32xf32>
    %65 = tpu.matmul %64, %48, %cst_20 {dimension_numbers = #tpu.dot_dimension_numbers<[1], [0], [0], [1], [0, 0, 1, 1], [], []>} : vector<128x128xbf16>, vector<128x32xbf16>, vector<128x32xf32> -> vector<128x32xf32>
    %66 = arith.truncf %65 : vector<128x32xf32> to vector<128x32xbf16>
    %c0_21 = arith.constant 0 : index
    %c0_22 = arith.constant 0 : index
    %67 = vector.load %arg3[%c0_21, %c0_22] : memref<128x128xbf16, #tpu.memory_space<vmem>>, vector<32x128xbf16>
    %cst_23 = arith.constant dense<0.000000e+00> : vector<128x128xf32>
    %68 = tpu.matmul %66, %67, %cst_23 {dimension_numbers = #tpu.dot_dimension_numbers<[1], [0], [0], [1], [0, 0, 1, 1], [], []>} : vector<128x32xbf16>, vector<32x128xbf16>, vector<128x128xf32> -> vector<128x128xf32>
    %69 = arith.addf %42, %68 : vector<128x128xf32>
    %70 = vector.extract_strided_slice %33 {offsets = [0, 32], sizes = [128, 32], strides = [1, 1]} : vector<128x128xf32> to vector<128x32xf32>
    %71 = arith.truncf %70 : vector<128x32xf32> to vector<128x32xbf16>
    %72 = vector.extract_strided_slice %34 {offsets = [0, 32], sizes = [128, 32], strides = [1, 1]} : vector<128x128xf32> to vector<128x32xf32>
    %73 = arith.truncf %72 : vector<128x32xf32> to vector<128x32xbf16>
    %74 = vector.extract_strided_slice %35 {offsets = [0, 32], sizes = [128, 32], strides = [1, 1]} : vector<128x128xf32> to vector<128x32xf32>
    %75 = arith.truncf %74 : vector<128x32xf32> to vector<128x32xbf16>
    %76 = tpu.transpose %73, [1, 0] : vector<128x32xbf16> -> vector<32x128xbf16>
    %cst_24 = arith.constant dense<0.000000e+00> : vector<128x128xf32>
    %77 = tpu.matmul %71, %76, %cst_24 {dimension_numbers = #tpu.dot_dimension_numbers<[1], [0], [0], [1], [0, 0, 1, 1], [], []>} : vector<128x32xbf16>, vector<32x128xbf16>, vector<128x128xf32> -> vector<128x128xf32>
    %cst_25 = arith.constant 0.0883883461 : f32
    %78 = vector.broadcast %cst_25 : f32 to vector<128x128xf32>
    %79 = arith.mulf %77, %78 : vector<128x128xf32>
    %80 = arith.addf %79, %41 : vector<128x128xf32>
    %cst_26 = arith.constant dense<0xFF800000> : vector<128xf32>
    %81 = vector.multi_reduction <maximumf>, %80, %cst_26 [1] : vector<128x128xf32> to vector<128xf32>
    %82 = vector.shape_cast %81 : vector<128xf32> to vector<128x1xf32>
    %83 = vector.broadcast %82 : vector<128x1xf32> to vector<128x128xf32>
    %84 = arith.subf %80, %83 : vector<128x128xf32>
    %85 = math.exp %84 : vector<128x128xf32>
    %cst_27 = arith.constant dense<0.000000e+00> : vector<128xf32>
    %86 = vector.multi_reduction <add>, %85, %cst_27 [1] : vector<128x128xf32> to vector<128xf32>
    %87 = vector.shape_cast %86 : vector<128xf32> to vector<128x1xf32>
    %88 = tpu.reciprocal %87 {approx = true} : vector<128x1xf32> -> vector<128x1xf32>
    %89 = vector.broadcast %88 : vector<128x1xf32> to vector<128x128xf32>
    %90 = arith.mulf %85, %89 : vector<128x128xf32>
    %91 = arith.truncf %90 : vector<128x128xf32> to vector<128x128xbf16>
    %cst_28 = arith.constant dense<0.000000e+00> : vector<128x32xf32>
    %92 = tpu.matmul %91, %75, %cst_28 {dimension_numbers = #tpu.dot_dimension_numbers<[1], [0], [0], [1], [0, 0, 1, 1], [], []>} : vector<128x128xbf16>, vector<128x32xbf16>, vector<128x32xf32> -> vector<128x32xf32>
    %93 = arith.truncf %92 : vector<128x32xf32> to vector<128x32xbf16>
    %c32 = arith.constant 32 : index
    %c0_29 = arith.constant 0 : index
    %94 = vector.load %arg3[%c32, %c0_29] : memref<128x128xbf16, #tpu.memory_space<vmem>>, vector<32x128xbf16>
    %cst_30 = arith.constant dense<0.000000e+00> : vector<128x128xf32>
    %95 = tpu.matmul %93, %94, %cst_30 {dimension_numbers = #tpu.dot_dimension_numbers<[1], [0], [0], [1], [0, 0, 1, 1], [], []>} : vector<128x32xbf16>, vector<32x128xbf16>, vector<128x128xf32> -> vector<128x128xf32>
    %96 = arith.addf %69, %95 : vector<128x128xf32>
    %97 = vector.extract_strided_slice %33 {offsets = [0, 64], sizes = [128, 32], strides = [1, 1]} : vector<128x128xf32> to vector<128x32xf32>
    %98 = arith.truncf %97 : vector<128x32xf32> to vector<128x32xbf16>
    %99 = vector.extract_strided_slice %34 {offsets = [0, 64], sizes = [128, 32], strides = [1, 1]} : vector<128x128xf32> to vector<128x32xf32>
    %100 = arith.truncf %99 : vector<128x32xf32> to vector<128x32xbf16>
    %101 = vector.extract_strided_slice %35 {offsets = [0, 64], sizes = [128, 32], strides = [1, 1]} : vector<128x128xf32> to vector<128x32xf32>
    %102 = arith.truncf %101 : vector<128x32xf32> to vector<128x32xbf16>
    %103 = tpu.transpose %100, [1, 0] : vector<128x32xbf16> -> vector<32x128xbf16>
    %cst_31 = arith.constant dense<0.000000e+00> : vector<128x128xf32>
    %104 = tpu.matmul %98, %103, %cst_31 {dimension_numbers = #tpu.dot_dimension_numbers<[1], [0], [0], [1], [0, 0, 1, 1], [], []>} : vector<128x32xbf16>, vector<32x128xbf16>, vector<128x128xf32> -> vector<128x128xf32>
    %cst_32 = arith.constant 0.0883883461 : f32
    %105 = vector.broadcast %cst_32 : f32 to vector<128x128xf32>
    %106 = arith.mulf %104, %105 : vector<128x128xf32>
    %107 = arith.addf %106, %41 : vector<128x128xf32>
    %cst_33 = arith.constant dense<0xFF800000> : vector<128xf32>
    %108 = vector.multi_reduction <maximumf>, %107, %cst_33 [1] : vector<128x128xf32> to vector<128xf32>
    %109 = vector.shape_cast %108 : vector<128xf32> to vector<128x1xf32>
    %110 = vector.broadcast %109 : vector<128x1xf32> to vector<128x128xf32>
    %111 = arith.subf %107, %110 : vector<128x128xf32>
    %112 = math.exp %111 : vector<128x128xf32>
    %cst_34 = arith.constant dense<0.000000e+00> : vector<128xf32>
    %113 = vector.multi_reduction <add>, %112, %cst_34 [1] : vector<128x128xf32> to vector<128xf32>
    %114 = vector.shape_cast %113 : vector<128xf32> to vector<128x1xf32>
    %115 = tpu.reciprocal %114 {approx = true} : vector<128x1xf32> -> vector<128x1xf32>
    %116 = vector.broadcast %115 : vector<128x1xf32> to vector<128x128xf32>
    %117 = arith.mulf %112, %116 : vector<128x128xf32>
    %118 = arith.truncf %117 : vector<128x128xf32> to vector<128x128xbf16>
    %cst_35 = arith.constant dense<0.000000e+00> : vector<128x32xf32>
    %119 = tpu.matmul %118, %102, %cst_35 {dimension_numbers = #tpu.dot_dimension_numbers<[1], [0], [0], [1], [0, 0, 1, 1], [], []>} : vector<128x128xbf16>, vector<128x32xbf16>, vector<128x32xf32> -> vector<128x32xf32>
    %120 = arith.truncf %119 : vector<128x32xf32> to vector<128x32xbf16>
    %c64 = arith.constant 64 : index
    %c0_36 = arith.constant 0 : index
    %121 = vector.load %arg3[%c64, %c0_36] : memref<128x128xbf16, #tpu.memory_space<vmem>>, vector<32x128xbf16>
    %cst_37 = arith.constant dense<0.000000e+00> : vector<128x128xf32>
    %122 = tpu.matmul %120, %121, %cst_37 {dimension_numbers = #tpu.dot_dimension_numbers<[1], [0], [0], [1], [0, 0, 1, 1], [], []>} : vector<128x32xbf16>, vector<32x128xbf16>, vector<128x128xf32> -> vector<128x128xf32>
    %123 = arith.addf %96, %122 : vector<128x128xf32>
    %124 = vector.extract_strided_slice %33 {offsets = [0, 96], sizes = [128, 32], strides = [1, 1]} : vector<128x128xf32> to vector<128x32xf32>
    %125 = arith.truncf %124 : vector<128x32xf32> to vector<128x32xbf16>
    %126 = vector.extract_strided_slice %34 {offsets = [0, 96], sizes = [128, 32], strides = [1, 1]} : vector<128x128xf32> to vector<128x32xf32>
    %127 = arith.truncf %126 : vector<128x32xf32> to vector<128x32xbf16>
    %128 = vector.extract_strided_slice %35 {offsets = [0, 96], sizes = [128, 32], strides = [1, 1]} : vector<128x128xf32> to vector<128x32xf32>
    %129 = arith.truncf %128 : vector<128x32xf32> to vector<128x32xbf16>
    %130 = tpu.transpose %127, [1, 0] : vector<128x32xbf16> -> vector<32x128xbf16>
    %cst_38 = arith.constant dense<0.000000e+00> : vector<128x128xf32>
    %131 = tpu.matmul %125, %130, %cst_38 {dimension_numbers = #tpu.dot_dimension_numbers<[1], [0], [0], [1], [0, 0, 1, 1], [], []>} : vector<128x32xbf16>, vector<32x128xbf16>, vector<128x128xf32> -> vector<128x128xf32>
    %cst_39 = arith.constant 0.0883883461 : f32
    %132 = vector.broadcast %cst_39 : f32 to vector<128x128xf32>
    %133 = arith.mulf %131, %132 : vector<128x128xf32>
    %134 = arith.addf %133, %41 : vector<128x128xf32>
    %cst_40 = arith.constant dense<0xFF800000> : vector<128xf32>
    %135 = vector.multi_reduction <maximumf>, %134, %cst_40 [1] : vector<128x128xf32> to vector<128xf32>
    %136 = vector.shape_cast %135 : vector<128xf32> to vector<128x1xf32>
    %137 = vector.broadcast %136 : vector<128x1xf32> to vector<128x128xf32>
    %138 = arith.subf %134, %137 : vector<128x128xf32>
    %139 = math.exp %138 : vector<128x128xf32>
    %cst_41 = arith.constant dense<0.000000e+00> : vector<128xf32>
    %140 = vector.multi_reduction <add>, %139, %cst_41 [1] : vector<128x128xf32> to vector<128xf32>
    %141 = vector.shape_cast %140 : vector<128xf32> to vector<128x1xf32>
    %142 = tpu.reciprocal %141 {approx = true} : vector<128x1xf32> -> vector<128x1xf32>
    %143 = vector.broadcast %142 : vector<128x1xf32> to vector<128x128xf32>
    %144 = arith.mulf %139, %143 : vector<128x128xf32>
    %145 = arith.truncf %144 : vector<128x128xf32> to vector<128x128xbf16>
    %cst_42 = arith.constant dense<0.000000e+00> : vector<128x32xf32>
    %146 = tpu.matmul %145, %129, %cst_42 {dimension_numbers = #tpu.dot_dimension_numbers<[1], [0], [0], [1], [0, 0, 1, 1], [], []>} : vector<128x128xbf16>, vector<128x32xbf16>, vector<128x32xf32> -> vector<128x32xf32>
    %147 = arith.truncf %146 : vector<128x32xf32> to vector<128x32xbf16>
    %c96 = arith.constant 96 : index
    %c0_43 = arith.constant 0 : index
    %148 = vector.load %arg3[%c96, %c0_43] : memref<128x128xbf16, #tpu.memory_space<vmem>>, vector<32x128xbf16>
    %cst_44 = arith.constant dense<0.000000e+00> : vector<128x128xf32>
    %149 = tpu.matmul %147, %148, %cst_44 {dimension_numbers = #tpu.dot_dimension_numbers<[1], [0], [0], [1], [0, 0, 1, 1], [], []>} : vector<128x32xbf16>, vector<32x128xbf16>, vector<128x128xf32> -> vector<128x128xf32>
    %150 = arith.addf %123, %149 : vector<128x128xf32>
    %151 = arith.addf %1, %150 : vector<128x128xf32>
    %c0_45 = arith.constant 0 : index
    %c0_46 = arith.constant 0 : index
    %152 = vector.load %arg4[%c0_45, %c0_46] : memref<1x128xf32, #tpu.memory_space<vmem>>, vector<1x128xf32>
    %153 = vector.shape_cast %152 : vector<1x128xf32> to vector<128xf32>
    %154 = vector.shape_cast %153 : vector<128xf32> to vector<1x128xf32>
    %155 = vector.broadcast %154 : vector<1x128xf32> to vector<128x128xf32>
    %156 = arith.addf %151, %155 : vector<128x128xf32>
    %c0_47 = arith.constant 0 : index
    %c0_48 = arith.constant 0 : index
    %157 = vector.load %arg11[%c0_47, %c0_48] : memref<1x128xf32, #tpu.memory_space<vmem>>, vector<1x128xf32>
    %158 = vector.shape_cast %157 : vector<1x128xf32> to vector<128xf32>
    %c0_49 = arith.constant 0 : index
    %c0_50 = arith.constant 0 : index
    %159 = vector.load %arg12[%c0_49, %c0_50] : memref<1x128xf32, #tpu.memory_space<vmem>>, vector<1x128xf32>
    %160 = vector.shape_cast %159 : vector<1x128xf32> to vector<128xf32>
    %cst_51 = arith.constant dense<0.000000e+00> : vector<128xf32>
    %161 = vector.multi_reduction <add>, %156, %cst_51 [1] : vector<128x128xf32> to vector<128xf32>
    %162 = vector.shape_cast %161 : vector<128xf32> to vector<128x1xf32>
    %cst_52 = arith.constant 1.280000e+02 : f32
    %163 = vector.broadcast %cst_52 : f32 to vector<128x1xf32>
    %164 = arith.divf %162, %163 : vector<128x1xf32>
    %165 = vector.broadcast %164 : vector<128x1xf32> to vector<128x128xf32>
    %166 = arith.subf %156, %165 : vector<128x128xf32>
    %167 = arith.mulf %166, %166 : vector<128x128xf32>
    %cst_53 = arith.constant dense<0.000000e+00> : vector<128xf32>
    %168 = vector.multi_reduction <add>, %167, %cst_53 [1] : vector<128x128xf32> to vector<128xf32>
    %169 = vector.shape_cast %168 : vector<128xf32> to vector<128x1xf32>
    %cst_54 = arith.constant 1.280000e+02 : f32
    %170 = vector.broadcast %cst_54 : f32 to vector<128x1xf32>
    %171 = arith.divf %169, %170 : vector<128x1xf32>
    %172 = vector.broadcast %164 : vector<128x1xf32> to vector<128x128xf32>
    %173 = arith.subf %156, %172 : vector<128x128xf32>
    %cst_55 = arith.constant 9.99999974E-6 : f32
    %174 = vector.broadcast %cst_55 : f32 to vector<128x1xf32>
    %175 = arith.addf %171, %174 : vector<128x1xf32>
    %176 = math.rsqrt %175 : vector<128x1xf32>
    %177 = vector.broadcast %176 : vector<128x1xf32> to vector<128x128xf32>
    %178 = arith.mulf %173, %177 : vector<128x128xf32>
    %179 = vector.shape_cast %158 : vector<128xf32> to vector<1x128xf32>
    %180 = vector.broadcast %179 : vector<1x128xf32> to vector<128x128xf32>
    %181 = arith.mulf %178, %180 : vector<128x128xf32>
    %182 = vector.shape_cast %160 : vector<128xf32> to vector<1x128xf32>
    %183 = vector.broadcast %182 : vector<1x128xf32> to vector<128x128xf32>
    %184 = arith.addf %181, %183 : vector<128x128xf32>
    %185 = arith.truncf %184 : vector<128x128xf32> to vector<128x128xbf16>
    %c0_56 = arith.constant 0 : index
    %c0_57 = arith.constant 0 : index
    %186 = vector.load %arg5[%c0_56, %c0_57] : memref<128x512xbf16, #tpu.memory_space<vmem>>, vector<128x512xbf16>
    %cst_58 = arith.constant dense<0.000000e+00> : vector<128x512xf32>
    %187 = tpu.matmul %185, %186, %cst_58 {dimension_numbers = #tpu.dot_dimension_numbers<[1], [0], [0], [1], [0, 0, 1, 1], [], []>} : vector<128x128xbf16>, vector<128x512xbf16>, vector<128x512xf32> -> vector<128x512xf32>
    %c0_59 = arith.constant 0 : index
    %c0_60 = arith.constant 0 : index
    %188 = vector.load %arg6[%c0_59, %c0_60] : memref<1x512xf32, #tpu.memory_space<vmem>>, vector<1x512xf32>
    %189 = vector.shape_cast %188 : vector<1x512xf32> to vector<512xf32>
    %190 = vector.shape_cast %189 : vector<512xf32> to vector<1x512xf32>
    %191 = vector.broadcast %190 : vector<1x512xf32> to vector<128x512xf32>
    %192 = arith.addf %187, %191 : vector<128x512xf32>
    %cst_61 = arith.constant 0.000000e+00 : f32
    %193 = vector.broadcast %cst_61 : f32 to vector<128x512xf32>
    %194 = arith.maximumf %192, %193 : vector<128x512xf32>
    %195 = arith.truncf %194 : vector<128x512xf32> to vector<128x512xbf16>
    %c0_62 = arith.constant 0 : index
    %c0_63 = arith.constant 0 : index
    %196 = vector.load %arg7[%c0_62, %c0_63] : memref<512x128xbf16, #tpu.memory_space<vmem>>, vector<512x128xbf16>
    %cst_64 = arith.constant dense<0.000000e+00> : vector<128x128xf32>
    %197 = tpu.matmul %195, %196, %cst_64 {dimension_numbers = #tpu.dot_dimension_numbers<[1], [0], [0], [1], [0, 0, 1, 1], [], []>} : vector<128x512xbf16>, vector<512x128xbf16>, vector<128x128xf32> -> vector<128x128xf32>
    %c0_65 = arith.constant 0 : index
    %c0_66 = arith.constant 0 : index
    %198 = vector.load %arg8[%c0_65, %c0_66] : memref<1x128xf32, #tpu.memory_space<vmem>>, vector<1x128xf32>
    %199 = vector.shape_cast %198 : vector<1x128xf32> to vector<128xf32>
    %200 = vector.shape_cast %199 : vector<128xf32> to vector<1x128xf32>
    %201 = vector.broadcast %200 : vector<1x128xf32> to vector<128x128xf32>
    %202 = arith.addf %197, %201 : vector<128x128xf32>
    %203 = arith.addf %156, %202 : vector<128x128xf32>
    %c0_67 = arith.constant 0 : index
    %c0_68 = arith.constant 0 : index
    %c0_69 = arith.constant 0 : index
    %204 = vector.load %arg13[%c0_67, %c0_68, %c0_69] : memref<1x128x128xf32, #tpu.memory_space<vmem>>, vector<1x128x128xf32>
    %205 = vector.shape_cast %204 : vector<1x128x128xf32> to vector<128x128xf32>
    %206 = vector.shape_cast %203 : vector<128x128xf32> to vector<1x128x128xf32>
    tpu.vector_store %arg13[%c0_67, %c0_68, %c0_69], %206 {strides = array<i32>} : memref<1x128x128xf32, #tpu.memory_space<vmem>>, vector<1x128x128xf32>,
    return
  }
  func.func @transform_0(%arg0: i32) -> (i32, i32, i32) {
    %c0_i32 = arith.constant 0 : i32
    %c0_i32_0 = arith.constant 0 : i32
    %c0_i32_1 = arith.constant 0 : i32
    return %arg0, %c0_i32, %c0_i32_0 : i32, i32, i32
  }
  func.func @transform_1(%arg0: i32) -> (i32, i32) {
    %c0_i32 = arith.constant 0 : i32
    %c0_i32_0 = arith.constant 0 : i32
    %c0_i32_1 = arith.constant 0 : i32
    return %c0_i32, %c0_i32_0 : i32, i32
  }
  func.func @transform_2(%arg0: i32) -> (i32, i32) {
    %c0_i32 = arith.constant 0 : i32
    %c0_i32_0 = arith.constant 0 : i32
    %c0_i32_1 = arith.constant 0 : i32
    return %c0_i32, %c0_i32_0 : i32, i32
  }
  func.func @transform_3(%arg0: i32) -> (i32, i32) {
    %c0_i32 = arith.constant 0 : i32
    %c0_i32_0 = arith.constant 0 : i32
    %c0_i32_1 = arith.constant 0 : i32
    return %c0_i32, %c0_i32_0 : i32, i32
  }
  func.func @transform_4(%arg0: i32) -> (i32, i32) {
    %c0_i32 = arith.constant 0 : i32
    %c0_i32_0 = arith.constant 0 : i32
    %c0_i32_1 = arith.constant 0 : i32
    return %c0_i32, %c0_i32_0 : i32, i32
  }
  func.func @transform_5(%arg0: i32) -> (i32, i32) {
    %c0_i32 = arith.constant 0 : i32
    %c0_i32_0 = arith.constant 0 : i32
    %c0_i32_1 = arith.constant 0 : i32
    return %c0_i32, %c0_i32_0 : i32, i32
  }
  func.func @transform_6(%arg0: i32) -> (i32, i32) {
    %c0_i32 = arith.constant 0 : i32
    %c0_i32_0 = arith.constant 0 : i32
    %c0_i32_1 = arith.constant 0 : i32
    return %c0_i32, %c0_i32_0 : i32, i32
  }
  func.func @transform_7(%arg0: i32) -> (i32, i32) {
    %c0_i32 = arith.constant 0 : i32
    %c0_i32_0 = arith.constant 0 : i32
    %c0_i32_1 = arith.constant 0 : i32
    return %c0_i32, %c0_i32_0 : i32, i32
  }
  func.func @transform_8(%arg0: i32) -> (i32, i32) {
    %c0_i32 = arith.constant 0 : i32
    %c0_i32_0 = arith.constant 0 : i32
    %c0_i32_1 = arith.constant 0 : i32
    return %c0_i32, %c0_i32_0 : i32, i32
  }
  func.func @transform_9(%arg0: i32) -> (i32, i32) {
    %c0_i32 = arith.constant 0 : i32
    %c0_i32_0 = arith.constant 0 : i32
    %c0_i32_1 = arith.constant 0 : i32
    return %c0_i32, %c0_i32_0 : i32, i32
  }
  func.func @transform_10(%arg0: i32) -> (i32, i32) {
    %c0_i32 = arith.constant 0 : i32
    %c0_i32_0 = arith.constant 0 : i32
    %c0_i32_1 = arith.constant 0 : i32
    return %c0_i32, %c0_i32_0 : i32, i32
  }
  func.func @transform_11(%arg0: i32) -> (i32, i32) {
    %c0_i32 = arith.constant 0 : i32
    %c0_i32_0 = arith.constant 0 : i32
    %c0_i32_1 = arith.constant 0 : i32
    return %c0_i32, %c0_i32_0 : i32, i32
  }
  func.func @transform_12(%arg0: i32) -> (i32, i32, i32) {
    %c0_i32 = arith.constant 0 : i32
    %c0_i32_0 = arith.constant 0 : i32
    %c0_i32_1 = arith.constant 0 : i32
    return %arg0, %c0_i32, %c0_i32_0 : i32, i32, i32
  }
}

</mosaic_0001>

<bundles_post_ra>
// kernel: tpu_custom_call.1
= control target key start
LH: loop header
LB: loop body
LE: loop exit
PB: predicated region body
PF: predicated region fallthrough
CT: control target
= control target key end

     0   :  { %s8930_s0 = inlined_call_operand.hbm [shape: f32[2,128,128], index: 0, kind: input, shape index: {}]   ;;  %s8931_s1 = inlined_call_operand.hbm [shape: bf16[128,384], index: 1, kind: input, shape index: {}]   ;;  %s8932_s2 = inlined_call_operand.hbm [shape: bf16[128,128], index: 2, kind: input, shape index: {}]   ;;  %s8933_s3 = inlined_call_operand.vmem [shape: f32[1,128], index: 3, kind: input, shape index: {}]   ;;  %s8934_s4 = inlined_call_operand.hbm [shape: bf16[128,512], index: 4, kind: input, shape index: {}]   ;;  %s8935_s5 = inlined_call_operand.vmem [shape: f32[1,512], index: 5, kind: input, shape index: {}]   ;;  %s8936_s6 = inlined_call_operand.hbm [shape: bf16[512,128], index: 6, kind: input, shape index: {}]   ;;  %s8937_s7 = inlined_call_operand.vmem [shape: f32[1,128], index: 7, kind: input, shape index: {}]   ;;  %s8938_s8 = inlined_call_operand.vmem [shape: f32[1,128], index: 8, kind: input, shape index: {}]   ;;  %s8939_s9 = inlined_call_operand.vmem [shape: f32[1,128], index: 9, kind: input, shape index: {}]   ;;  %s8940_s10 = inlined_call_operand.vmem [shape: f32[1,128], index: 10, kind: input, shape index: {}]   ;;  %s8941_s11 = inlined_call_operand.vmem [shape: f32[1,128], index: 11, kind: input, shape index: {}]   ;;  %s8942_s12 = inlined_call_operand.hbm [shape: f32[2,128,128], index: 12, kind: output, shape index: {}]  }
   0x1   :  { %9008 = sst [smem:[#allocation52_spill]] %s8931_s1 }
   0x2   :  { %9009 = sst [smem:[#allocation53_spill]] %s8935_s5 }
   0x3   :  { %9010 = sst [smem:[#allocation54_spill]] %s8937_s7 }
   0x4   :  { %9011 = sst [smem:[#allocation55_spill]] %s8942_s12 }
   0x5   :  { %17 = vsyncpa [#allocation3], 0 }
   0x6   :  { %19 = vsyncpa [#allocation3 + $0x1], 0 }
   0x7   :  { %20 = vsyncpa [#allocation6], 0 }
   0x8   :  { %21 = vsyncpa [#allocation9], 0 }
   0x9   :  { %22 = vsyncpa [#allocation4], 0 }
   0xa   :  { %24 = vsyncpa [#allocation4 + $0x1], 0  ;;  %s6923_s21 = smov 0   ;;  %s6925_s22 = smov 0  }
   0xb   :  { %s6927_s23 = smov 0   ;;  %s6929_s24 = smov 0  }
   0xc LB: > { %9012 = sst [smem:[#allocation16_spill]] %s6823_s21  ;;  %s6944_s25 = sadd.s32 4294967295, %s6835_s24   ;;  %s6835_s24 = sphi %s6929_s24, %s9131_s24   ;;  %s6831_s23 = sphi %s6927_s23, %s9130_s23   ;;  %s6827_s22 = sphi %s6925_s22, %s9129_s22   ;;  %s6823_s21 = sphi %s6923_s21, %s9128_s21  }
   0xd   : > { %s5111_s26 = sadd.s32 4294967294, %s6835_s24   ;;  %p50_p0 = scmp.ne.s32.totalorder %s6827_s22, %s6823_s21 }
   0xe   : > { %p8944_p1 = scmp.eq.s32.totalorder %s6944_s25, 0  ;;  %p311_p3 = scmp.eq.s32.totalorder %s5111_s26, 1 }
   0xf   : > { %p5112_p5 = scmp.ge.s32.totalorder %s6835_s24, 1  ;;  %p318_p7 = scmp.lt.s32.totalorder %s6835_s24, 3 }
  0x10   : > { %p6953_p4 = por %p8944_p1, %p50_p0  ;;  %p6958_p6 = por %p311_p3, %p50_p0 }
  0x11   : > { %p6963_p8 = pnand %p5112_p5, %p318_p7  ;;  %s6837_s30 = smov [#allocation5]  }
  0x12   : > { %s9013_s27 = scalar_select %p6953_p4, 1, 0 }
  0x13   : > { %s9014_s28 = scalar_select %p6958_p6, 1, 0 }
  0x14   : > { %s9016_s29 = scalar_select %p6963_p8, 1, 0 }
  0x15   : > { %9015 = sst [smem:[#allocation17_spill]] %s9014_s28  ;;  %s330_s13 = sshll.u32 %s6837_s30, 4  ;;  %s6967_s13 = int_to_ptr.vmem [resolvable:$true] %s330_s13 }
  0x16   : > { %p6081_p9 = pneg %p6963_p8  ;;  %s6838_s15 = smov [#allocation8]  }
  0x17   : > { %s359_s16 = sshll.u32 %s6838_s15, 4  ;;  %s9018_s1 = sld [smem:[#allocation52_spill]]  ;;  %s6978_s16 = int_to_ptr.vmem [resolvable:$true] %s359_s16 }
  0x18   : > { %p6974_p11 = pnand %p6081_p9, %p8944_p1 }
  0x1a   : > { %p6988_p13 = pneg %p6974_p11 }
  0x1d   : > { %s6619_s19 = scalar_lea.hbm %s9018_s1, 3072 }
  0x1e   : > { %p6620_p12 = scmp.ne.s32.totalorder %s9018_s1, %s6619_s19  ;;  %p6626_p5 = scmp.lt.u32.totalorder %s6619_s19, %s9018_s1 }
  0x20   : > { %p6622_p0 = pnand %p6988_p13, %p6620_p12 }
  0x22   : > { %p6623_p3 = pneg %p6622_p0 }
  0x24   : > { %p6628_p7 = pnand %p6626_p5, %p6623_p3 }
  0x26   : > { %6631 = shalt.err (!%p6628_p7)
}
  0x27   : > { %s6632_s17 = scalar_lea.vmem %s6967_s13, 3072  ;;  %p6640_p2 = scmp.lt.s32.totalorder %s6967_s13, %s6967_s13 }
  0x28   : > { %p6633_p9 = scmp.ne.s32.totalorder %s6967_s13, %s6632_s17  ;;  %p6641_p6 = scmp.lt.s32.totalorder %s6632_s17, %s6632_s17 }
  0x2a   : > { %p6635_p10 = pnand %p6633_p9, %p6988_p13  ;;  %p6642_p12 = por %p6641_p6, %p6640_p2 }
  0x2c   : > { %p6636_p1 = pneg %p6635_p10 }
  0x2e   : > { %p6643_p0 = pnand %p6642_p12, %p6636_p1 }
  0x30   : > { %6646 = shalt.err (!%p6643_p0)
}
  0x31   : > { %s6839_s18 = smov 192   ;;  %s6840_s28 = smov 12  }
  0x32   : > { %6084 = dma.hbm_to_vmem [thread:$0]  (!%p6974_p11), %s9018_s1, 3072, %s6967_s13, [#allocation6], %s6839_s18, %s6839_s18, %s6840_s28  }
  0x33   : > { %s6647_s21 = scalar_lea.hbm %s8934_s4, 4096 }
  0x34   : > { %p6648_p2 = scmp.ne.s32.totalorder %s8934_s4, %s6647_s21  ;;  %p6654_p10 = scmp.lt.u32.totalorder %s6647_s21, %s8934_s4 }
  0x36   : > { %p6650_p1 = pnand %p6648_p2, %p6988_p13 }
  0x38   : > { %p6651_p6 = pneg %p6650_p1 }
  0x3a   : > { %p6656_p3 = pnand %p6654_p10, %p6651_p6 }
  0x3c   : > { %6659 = shalt.err (!%p6656_p3)
}
  0x3d   : > { %s6660_s13 = scalar_lea.vmem %s6978_s16, 4096  ;;  %p6668_p12 = scmp.lt.s32.totalorder %s6978_s16, %s6978_s16 }
  0x3e   : > { %p6661_p5 = scmp.ne.s32.totalorder %s6978_s16, %s6660_s13  ;;  %p6669_p0 = scmp.lt.s32.totalorder %s6660_s13, %s6660_s13 }
  0x40   : > { %p6663_p7 = pnand %p6661_p5, %p6988_p13  ;;  %p6670_p2 = por %p6669_p0, %p6668_p12 }
  0x42   : > { %p6664_p9 = pneg %p6663_p7 }
  0x44   : > { %p6671_p1 = pnand %p6670_p2, %p6664_p9 }
  0x46   : > { %6674 = shalt.err (!%p6671_p1)
}
  0x47   : > { %s6841_s7 = smov 256   ;;  %s6842_s5 = smov 16  }
  0x48   : > { %6090 = dma.hbm_to_vmem [thread:$0]  (!%p6974_p11), %s8934_s4, 4096, %s6978_s16, [#allocation9], %s6841_s7, %s6841_s7, %s6842_s5  }
  0x49   : > { %s6843_s18 = smov [#allocation7]   ;;  %s6675_s26 = scalar_lea.hbm %s8932_s2, 1024 }
  0x4a   : > { %s343_s28 = sshll.u32 %s6843_s18, 4  ;;  %p6676_p6 = scmp.ne.s32.totalorder %s8932_s2, %s6675_s26  ;;  %s344_s28 = int_to_ptr.vmem [resolvable:$true] %s343_s28 }
  0x4b   : > { %p6682_p5 = scmp.lt.u32.totalorder %s6675_s26, %s8932_s2 }
  0x4c   : > { %p6678_p10 = pnand %p6676_p6, %p6988_p13 }
  0x4e   : > { %p6679_p3 = pneg %p6678_p10 }
  0x50   : > { %p6684_p7 = pnand %p6682_p5, %p6679_p3 }
  0x52   : > { %6687 = shalt.err (!%p6684_p7)
}
  0x53   : > { %s6688_s16 = scalar_lea.vmem %s344_s28, 1024  ;;  %p6696_p2 = scmp.lt.s32.totalorder %s344_s28, %s344_s28 }
  0x54   : > { %p6689_p9 = scmp.ne.s32.totalorder %s344_s28, %s6688_s16  ;;  %p6697_p1 = scmp.lt.s32.totalorder %s6688_s16, %s6688_s16 }
  0x56   : > { %p6691_p12 = pnand %p6689_p9, %p6988_p13  ;;  %p6698_p4 = por %p6697_p1, %p6696_p2 }
  0x58   : > { %p6692_p0 = pneg %p6691_p12 }
  0x5a   : > { %p6699_p8 = pnand %p6698_p4, %p6692_p0 }
  0x5c   : > { %6702 = shalt.err (!%p6699_p8)
}
  0x5d   : > { %s6844_s7 = smov 64   ;;  %s6845_s5 = smov 4  }
  0x5e   : > { %6087 = dma.hbm_to_vmem [thread:$0]  (!%p6974_p11), %s8932_s2, 1024, %s344_s28, [#allocation6], %s6844_s7, %s6844_s7, %s6845_s5  }
  0x5f   : > { %s6846_s21 = smov [#allocation10]   ;;  %s6703_s26 = scalar_lea.hbm %s8936_s6, 4096 }
  0x60   : > { %s375_s18 = sshll.u32 %s6846_s21, 4  ;;  %p6704_p4 = scmp.ne.s32.totalorder %s8936_s6, %s6703_s26  ;;  %s376_s18 = int_to_ptr.vmem [resolvable:$true] %s375_s18 }
  0x61   : > { %p6710_p10 = scmp.lt.u32.totalorder %s6703_s26, %s8936_s6 }
  0x62   : > { %p6706_p8 = pnand %p6704_p4, %p6988_p13 }
  0x64   : > { %p6707_p6 = pneg %p6706_p8 }
  0x66   : > { %p6712_p3 = pnand %p6710_p10, %p6707_p6 }
  0x68   : > { %6715 = shalt.err (!%p6712_p3)
}
  0x69   : > { %s6716_s28 = scalar_lea.vmem %s376_s18, 4096  ;;  %p6724_p12 = scmp.lt.s32.totalorder %s376_s18, %s376_s18 }
  0x6a   : > { %p6717_p5 = scmp.ne.s32.totalorder %s376_s18, %s6716_s28  ;;  %p6725_p0 = scmp.lt.s32.totalorder %s6716_s28, %s6716_s28 }
  0x6c   : > { %p6719_p7 = pnand %p6717_p5, %p6988_p13  ;;  %p6726_p2 = por %p6725_p0, %p6724_p12 }
  0x6e   : > { %p6720_p9 = pneg %p6719_p7 }
  0x70   : > { %p6727_p1 = pnand %p6726_p2, %p6720_p9 }
  0x72   : > { %6730 = shalt.err (!%p6727_p1)
}
  0x73   : > { %6093 = dma.hbm_to_vmem [thread:$0]  (!%p6974_p11), %s8936_s6, 4096, %s376_s18, [#allocation9], %s6844_s7, %s6844_s7, %s6845_s5  }
  0x74   : > { %s7069_s30 = sadd.s32 1, %s6835_s24   ;;  %s37_s21 = sadd.s32 1, %s6831_s23 }
  0x75   : > { %s34_s14 = ssub.s32 %s6835_s24, %s7069_s30  ;;  %p44_p13 = scmp.ne.s32.totalorder %s6831_s23, %s6827_s22 }
  0x76   : > { %p35_p4 = scmp.eq.s32.totalorder %s34_s14, 0  ;;  %p45_p8 = scmp.eq.s32.totalorder %s6835_s24, 0 }
  0x77   : > { %p9020_p6 = scmp.eq.s32.totalorder %s6944_s25, 1  ;;  %p6106_p3 = scmp.lt.s32.totalorder %s6835_s24, 2 }
  0x78   : > { %s7085_s20 = scalar_select %p35_p4, %s6831_s23, %s37_s21  }
  0x79   : > { %p7079_p10 = por %p9020_p6, %p44_p13  ;;  %p46_p5 = por %p45_p8, %p44_p13 }
  0x7a   : > { %s404_s26 = sand.u32 1, %s6831_s23   ;;  %s5299_s7 = sshll.u32 %s6835_s24, 11 }
  0x7b   : > { %s5118_s15 = sshll.u32 %s404_s26, 7  ;;  %s7092_s17 = scalar_lea.hbm %s8930_s0, %s5299_s7 }
  0x7c   : > { %s408_s13 = scalar_lea.vmem [#allocation2], %s5118_s15  ;;  %p7096_p11 = pnand %p6106_p3, %p46_p5 }
  0x7d   : > { %s415_s16 = sshll.u32 %s408_s13, 4  ;;  %s7100_s1 = scalar_lea.sflag [#allocation3], %s404_s26  ;;  %s7094_s16 = int_to_ptr.vmem [resolvable:$true] %s415_s16 }
  0x7e   : > { %s6731_s12 = scalar_lea.hbm %s7092_s17, 2048  ;;  %p6733_p9 = pneg %p7096_p11 }
  0x7f   : > { %p6732_p7 = scmp.ne.s32.totalorder %s7092_s17, %s6731_s12  ;;  %s6736_s15 = scalar_lea.hbm %s8930_s0, 4096 }
  0x80   : > { %p6737_p2 = scmp.lt.u32.totalorder %s7092_s17, %s8930_s0  ;;  %p6738_p1 = scmp.lt.u32.totalorder %s6736_s15, %s6731_s12 }
  0x81   : > { %p6734_p12 = pnand %p6733_p9, %p6732_p7  ;;  %p6740_p4 = scmp.lt.u32.totalorder %s6731_s12, %s7092_s17 }
  0x82   : > { %p6739_p13 = por %p6738_p1, %p6737_p2 }
  0x83   : > { %p6735_p0 = pneg %p6734_p12 }
  0x84   : > { %p6741_p8 = por %p6740_p4, %p6739_p13 }
  0x86   : > { %p6742_p6 = pnand %p6741_p8, %p6735_p0 }
  0x88   : > { %6745 = shalt.err (!%p6742_p6)
}
  0x89   : > { %s6746_s26 = scalar_lea.vmem %s7094_s16, 2048  ;;  %s6847_s18 = smov [#allocation2]  }
  0x8a   : > { %p6747_p3 = scmp.ne.s32.totalorder %s7094_s16, %s6746_s26  ;;  %s6751_s13 = sshll.u32 %s6847_s18, 4  ;;  %s6752_s13 = int_to_ptr.vmem [resolvable:$false] %s6751_s13 }
  0x8b   : > { %s6753_s21 = scalar_lea.vmem %s6752_s13, 4096  ;;  %p6754_p12 = scmp.lt.s32.totalorder %s7094_s16, %s6752_s13 }
  0x8c   : > { %p6749_p5 = pnand %p6747_p3, %p6733_p9  ;;  %p6755_p2 = scmp.lt.s32.totalorder %s6753_s21, %s6746_s26 }
  0x8e   : > { %p6750_p7 = pneg %p6749_p5  ;;  %p6756_p1 = por %p6755_p2, %p6754_p12 }
  0x90   : > { %p6757_p13 = pnand %p6756_p1, %p6750_p7 }
  0x92   : > { %6760 = shalt.err (!%p6757_p13)
}
  0x93   : > { %s6848_s12 = smov 128   ;;  %s6849_s14 = smov 8  }
  0x94   : > { %6097 = dma.hbm_to_vmem [thread:$0]  (!%p7096_p11), %s7092_s17, 2048, %s7094_s16, %s7100_s1, %s6848_s12, %s6848_s12, %s6849_s14  }
  0x95   : > { %p9023_p9 = scmp.ne.s32.totalorder %s9016_s29, 0 }
  0x97   : > { %427 = sbr.rel (%p9023_p9) target bundleno = 4130 (0x1022), region = 68 }
  0x9e   : > { %s7131_s15 = sand.u32 1, %s6827_s22   ;;  %p9024_p0 = scmp.ne.s32.totalorder %s9013_s27, 0 }
  0x9f   : > { %s5122_s7 = sshll.u32 %s7131_s15, 7  ;;  %s430_s5 = scalar_lea.sflag [#allocation3], %s7131_s15 }
  0xa0   : > { %s7137_s26 = scalar_lea.vmem [#allocation2], %s5122_s7 }
  0xa1   : > { %6806 = dma.done.wait (%p9024_p0), %s430_s5, 2048  }
  0xa2   : > { %6808 = vsyncadd (%p9024_p0), %s430_s5, 4294965248  ;;  %p9025_p11 = scmp.eq.s32.totalorder %s6944_s25, 0 }
  0xa4   : > { %6810 = dma.done.wait (%p9025_p11), [#allocation6], 4096   ;;  %p9026_p4 = pmov %p9025_p11 }
  0xa6   : > { %6812 = vsyncadd (%p9026_p4), [#allocation6], 4294963200  ;;  %p9027_p8 = pmov %p9026_p4 }
  0xa7   : > { %p9028_p6 = pmov %p9026_p4 }
  0xa8   : > { %6814 = dma.done.wait (%p9027_p8), [#allocation9], 8192  }
  0xa9   : > { %6816 = vsyncadd (%p9028_p6), [#allocation9], 4294959104  ;;  %v491_v0 = vld [vmem:[%s7137_s26] sm:$0xff]  ;;  %v493_v1 = vld [vmem:[%s7137_s26 + $0x10] sm:$0xff]  ;;  %vm1183_vm0 = vcmask 261120   ;;  %s6851_s28 = smov 96  }
  0xaa   : > { %509 = vadd.xlane.f32.xlu0 %v491_v0  ;;  %513 = vadd.xlane.f32.xlu1 %v493_v1  ;;  %v492_v2 = vld [vmem:[%s7137_s26 + $0x8] sm:$0xff]  ;;  %v494_v3 = vld [vmem:[%s7137_s26 + $0x18] sm:$0xff]  ;;  %v495_v4 = vld [vmem:[%s7137_s26 + $0x20] sm:$0xff]  ;;  %s6853_s1 = smov 64   ;;  %s6854_s18 = smov 32  }
  0xab   : > { %v496_v5 = vld [vmem:[%s7137_s26 + $0x28] sm:$0xff]  ;;  %v7158_v6 = vld [vmem:[%s7137_s26 + $0x30] sm:$0xff]  ;;  %v7161_v7 = vld [vmem:[%s7137_s26 + $0x38] sm:$0xff]  ;;  %s9121_s17 = sld [smem:[#allocation53_spill]]  ;;  %s9123_s14 = sld [smem:[#allocation55_spill]] }
  0xac   : > { %v7164_v8 = vld [vmem:[%s7137_s26 + $0x40] sm:$0xff]  ;;  %v7167_v9 = vld [vmem:[%s7137_s26 + $0x48] sm:$0xff]  ;;  %v7172_v10 = vld [vmem:[%s7137_s26 + $0x50] sm:$0xff]  ;;  %s6855_s27 = smov [#allocation11]  }
  0xad   : > { %v7175_v11 = vld [vmem:[%s7137_s26 + $0x58] sm:$0xff]  ;;  %v7180_v12 = vld [vmem:[%s7137_s26 + $0x60] sm:$0xff]  ;;  %v7183_v13 = vld [vmem:[%s7137_s26 + $0x68] sm:$0xff]  ;;  %s6765_s29 = sshll.u32 %s6855_s27, 4  ;;  %s6766_s29 = int_to_ptr.vmem [resolvable:$false] %s6765_s29 }
  0xae   : > { %511 = vadd.xlane.f32.xlu0 %v492_v2  ;;  %515 = vadd.xlane.f32.xlu1 %v494_v3  ;;  %v7188_v14 = vld [vmem:[%s7137_s26 + $0x70] sm:$0xff]  ;;  %v7191_v15 = vld [vmem:[%s7137_s26 + $0x78] sm:$0xff]  ;;  %v6165_v17 = vld [vmem:[#allocation5] ss:$12 sps:$4 sm:$0xff]  }
  0xaf   : > { %v6163_v16 = vld [vmem:[#allocation5 + $0x4] ss:$12 sps:$4 sm:$0xff]   ;;  %v6166_v18 = vld [vmem:[#allocation5 + $0x1c] ss:$12 sps:$4 sm:$0xff]  }
  0xb0   : > { %v6168_v19 = vld [vmem:[#allocation5 + $0x8] ss:$12 sps:$4 sm:$0xff]   ;;  %898 = vmatprep.subr.bf16.mxu0 %v6163_v16  ;;  %v6169_v58 = vld [vmem:[#allocation5 + $0x18] ss:$12 sps:$4 sm:$0xff]  }
  0xb1   : > { %899 = vmatpush1.bf16.msra.mxu0 %v6165_v17  ;;  %5613 = vmatprep.subr.bf16.mxu1 %v6168_v19 }
  0xb2   : > { %517 = vadd.xlane.f32.xlu0 %v495_v4  ;;  %519 = vadd.xlane.f32.xlu1 %v496_v5 }
  0xb3   : > { %900 = vmatprep.subr.bf16.mxu0 %v6166_v18  ;;  %5614 = vmatpush3.bf16.msra.mxu1 %v6168_v19  ;;  %v6174_v18 = vld [vmem:[#allocation5 + $0x4c] ss:$12 sps:$4 sm:$0xff]  }
  0xb4   : > { %v6176_v19 = vld [vmem:[#allocation5 + $0x38] ss:$12 sps:$4 sm:$0xff]  }
  0xb5   : > { %901 = vmatpush1.bf16.msra.mxu0 %v6169_v58 }
  0xb6   : > { %521 = vadd.xlane.f32.xlu0 %v7158_v6  ;;  %523 = vadd.xlane.f32.xlu1 %v7161_v7 }
  0xba   : > { %525 = vadd.xlane.f32.xlu0 %v7164_v8  ;;  %527 = vadd.xlane.f32.xlu1 %v7167_v9 }
  0xbe   : > { %529 = vadd.xlane.f32.xlu0 %v7172_v10  ;;  %531 = vadd.xlane.f32.xlu1 %v7175_v11 }
  0xc2   : > { %533 = vadd.xlane.f32.xlu0 %v7180_v12  ;;  %535 = vadd.xlane.f32.xlu1 %v7183_v13 }
  0xc6   : > { %537 = vadd.xlane.f32.xlu0 %v7188_v14  ;;  %539 = vadd.xlane.f32.xlu1 %v7191_v15 }
 0x137   : > { %v510_v20 = vpop.xlane.xlu0 %509  ;;  %v514_v21 = vpop.xlane.xlu1 %513 }
 0x138   : > { %v542_v22 = vmul.f32 0.0078125, %v510_v20  ;;  %v544_v23 = vmul.f32 0.0078125, %v514_v21 }
 0x13a   : > { %v7197_v24 = vsub.f32 %v491_v0, %v542_v22  ;;  %v7199_v25 = vsub.f32 %v493_v1, %v544_v23  ;;  %v6170_v0 = vld [vmem:[#allocation5 + $0x34] ss:$12 sps:$4 sm:$0xff]  }
 0x13b   : > { %v512_v26 = vpop.xlane.xlu0 %511  ;;  %v516_v27 = vpop.xlane.xlu1 %515  ;;  %v6172_v1 = vld [vmem:[#allocation5 + $0x20] ss:$12 sps:$4 sm:$0xff]   ;;  %902 = vmatprep.subr.bf16.mxu0 %v6170_v0  ;;  %v6177_v22 = vld [vmem:[#allocation5 + $0x48] ss:$12 sps:$4 sm:$0xff]  }
 0x13c   : > { %v543_v28 = vmul.f32 0.0078125, %v512_v26  ;;  %v574_v29 = vmul.f32 %v7197_v24, %v7197_v24  ;;  %v545_v30 = vmul.f32 0.0078125, %v516_v27  ;;  %v576_v31 = vmul.f32 %v7199_v25, %v7199_v25  ;;  %5615 = vmatprep.subr.bf16.mxu1 %v6172_v1 }
 0x13d   : > { %5616 = vmatpush3.bf16.msra.mxu1 %v6172_v1 }
 0x13e   : > { %590 = vadd.xlane.f32.xlu0 %v574_v29  ;;  %v7205_v32 = vsub.f32 %v492_v2, %v543_v28  ;;  %v7207_v33 = vsub.f32 %v494_v3, %v545_v30  ;;  %5617 = vmatprep.subr.bf16.mxu1 %v6176_v19  ;;  %v6178_v29 = vld [vmem:[#allocation5 + $0x64] ss:$12 sps:$4 sm:$0xff]  }
 0x13f   : > { %v518_v34 = vpop.xlane.xlu0 %517  ;;  %v520_v35 = vpop.xlane.xlu1 %519  ;;  %v6180_v30 = vld [vmem:[#allocation5 + $0x50] ss:$12 sps:$4 sm:$0xff]  }
 0x140   : > { %v546_v36 = vmul.f32 0.0078125, %v518_v34  ;;  %v575_v37 = vmul.f32 %v7205_v32, %v7205_v32  ;;  %v547_v38 = vmul.f32 0.0078125, %v520_v35  ;;  %v577_v39 = vmul.f32 %v7207_v33, %v7207_v33 }
 0x141   : > { %5618 = vmatpush3.bf16.msra.mxu1 %v6176_v19 }
 0x142   : > { %594 = vadd.xlane.f32.xlu0 %v576_v31  ;;  %592 = vadd.xlane.f32.xlu1 %v575_v37  ;;  %v7213_v40 = vsub.f32 %v495_v4, %v546_v36  ;;  %v7215_v41 = vsub.f32 %v496_v5, %v547_v38  ;;  %v6181_v31 = vld [vmem:[#allocation5 + $0x60] ss:$12 sps:$4 sm:$0xff]   ;;  %v6184_v36 = vld [vmem:[#allocation5 + $0x68] ss:$12 sps:$4 sm:$0xff]   ;;  %v6185_v37 = vld [vmem:[#allocation5 + $0x78] ss:$12 sps:$4 sm:$0xff]  }
 0x143   : > { %v522_v42 = vpop.xlane.xlu0 %521  ;;  %v524_v43 = vpop.xlane.xlu1 %523  ;;  %5619 = vmatprep.subr.bf16.mxu1 %v6180_v30  ;;  %v6188_v38 = vld [vmem:[#allocation5 + $0x80] ss:$12 sps:$4 sm:$0xff]  }
 0x144   : > { %v548_v44 = vmul.f32 0.0078125, %v522_v42  ;;  %v578_v45 = vmul.f32 %v7213_v40, %v7213_v40  ;;  %v549_v46 = vmul.f32 0.0078125, %v524_v43  ;;  %v579_v47 = vmul.f32 %v7215_v41, %v7215_v41  ;;  %v6190_v42 = vld [vmem:[#allocation5 + $0xac] ss:$12 sps:$4 sm:$0xff]  }
 0x145   : > { %5620 = vmatpush3.bf16.msra.mxu1 %v6180_v30  ;;  %v6192_v43 = vld [vmem:[#allocation5 + $0x98] ss:$12 sps:$4 sm:$0xff]  }
 0x146   : > { %596 = vadd.xlane.f32.xlu1 %v577_v39  ;;  %598 = vadd.xlane.f32.xlu0 %v578_v45  ;;  %v7222_v48 = vsub.f32 %v7158_v6, %v548_v44  ;;  %v7225_v49 = vsub.f32 %v7161_v7, %v549_v46  ;;  %v6173_v7 = vld [vmem:[#allocation5 + $0x30] ss:$12 sps:$4 sm:$0xff]   ;;  %v6193_v44 = vld [vmem:[#allocation5 + $0xa8] ss:$12 sps:$4 sm:$0xff]   ;;  %v8949_v46 = vmov 0  }
 0x147   : > { %v526_v50 = vpop.xlane.xlu0 %525  ;;  %v528_v51 = vpop.xlane.xlu1 %527  ;;  %903 = vmatpush1.bf16.msra.mxu0 %v6173_v7  ;;  %5621 = vmatprep.subr.bf16.mxu1 %v6184_v36  ;;  %v6189_v39 = vld [vmem:[#allocation5 + $0x90] ss:$12 sps:$4 sm:$0xff]  }
 0x148   : > { %v550_v52 = vmul.f32 0.0078125, %v526_v50  ;;  %v580_v53 = vmul.f32 %v7222_v48, %v7222_v48  ;;  %v551_v54 = vmul.f32 0.0078125, %v528_v51  ;;  %v581_v55 = vmul.f32 %v7225_v49, %v7225_v49  ;;  %904 = vmatprep.subr.bf16.mxu0 %v6174_v18  ;;  %v6194_v45 = vld [vmem:[#allocation5 + $0xb0] ss:$12 sps:$4 sm:$0xff]   ;;  %930 = vmatprep.mubr.bf16.mxu0 %v8949_v46 }
 0x149   : > { %5622 = vmatpush3.bf16.msra.mxu1 %v6184_v36 }
 0x14a   : > { %600 = vadd.xlane.f32.xlu1 %v579_v47  ;;  %602 = vadd.xlane.f32.xlu0 %v580_v53  ;;  %v7232_v56 = vsub.f32 %v7164_v8, %v550_v52  ;;  %v7235_v57 = vsub.f32 %v7167_v9, %v551_v54 }
 0x14b   : > { %v530_v59 = vpop.xlane.xlu0 %529  ;;  %v532_v60 = vpop.xlane.xlu1 %531  ;;  %905 = vmatpush1.bf16.msra.mxu0 %v6177_v22  ;;  %5623 = vmatprep.subr.bf16.mxu1 %v6188_v38  ;;  %v7276_v22 = vld [vmem:[%s8938_s8] ss:$0 sm:$0xff] }
 0x14c   : > { %v552_v61 = vmul.f32 0.0078125, %v530_v59  ;;  %v582_v62 = vmul.f32 %v7232_v56, %v7232_v56  ;;  %v553_v63 = vmul.f32 0.0078125, %v532_v60  ;;  %v583_v2 = vmul.f32 %v7235_v57, %v7235_v57  ;;  %906 = vmatprep.subr.bf16.mxu0 %v6178_v29 }
 0x14d   : > { %5624 = vmatpush3.bf16.msra.mxu1 %v6188_v38 }
 0x14e   : > { %604 = vadd.xlane.f32.xlu1 %v581_v55  ;;  %606 = vadd.xlane.f32.xlu0 %v582_v62  ;;  %v7242_v3 = vsub.f32 %v7172_v10, %v552_v61  ;;  %v7245_v4 = vsub.f32 %v7175_v11, %v553_v63 }
 0x14f   : > { %v534_v5 = vpop.xlane.xlu0 %533  ;;  %v536_v6 = vpop.xlane.xlu1 %535  ;;  %907 = vmatpush1.bf16.msra.mxu0 %v6181_v31  ;;  %5625 = vmatprep.subr.bf16.mxu1 %v6192_v43 }
 0x150   : > { %v554_v8 = vmul.f32 0.0078125, %v534_v5  ;;  %v584_v9 = vmul.f32 %v7242_v3, %v7242_v3  ;;  %v555_v16 = vmul.f32 0.0078125, %v536_v6  ;;  %v585_v10 = vmul.f32 %v7245_v4, %v7245_v4 }
 0x151   : > { %5626 = vmatpush3.bf16.msra.mxu1 %v6192_v43 }
 0x152   : > { %608 = vadd.xlane.f32.xlu1 %v583_v2  ;;  %610 = vadd.xlane.f32.xlu0 %v584_v9  ;;  %v7252_v11 = vsub.f32 %v7180_v12, %v554_v8  ;;  %v7255_v17 = vsub.f32 %v7183_v13, %v555_v16 }
 0x153   : > { %v538_v20 = vpop.xlane.xlu0 %537  ;;  %v540_v21 = vpop.xlane.xlu1 %539  ;;  %5627 = vmatprep.subr.bf16.mxu1 %v6194_v45 }
 0x154   : > { %v556_v23 = vmul.f32 0.0078125, %v538_v20  ;;  %v586_v26 = vmul.f32 %v7252_v11, %v7252_v11  ;;  %v557_v27 = vmul.f32 0.0078125, %v540_v21  ;;  %v587_v12 = vmul.f32 %v7255_v17, %v7255_v17 }
 0x155   : > { %5628 = vmatpush3.bf16.msra.mxu1 %v6194_v45 }
 0x156   : > { %612 = vadd.xlane.f32.xlu1 %v585_v10  ;;  %614 = vadd.xlane.f32.xlu0 %v586_v26  ;;  %v7262_v13 = vsub.f32 %v7188_v14, %v556_v23  ;;  %v7265_v28 = vsub.f32 %v7191_v15, %v557_v27  ;;  %v6182_v14 = vld [vmem:[#allocation5 + $0x7c] ss:$12 sps:$4 sm:$0xff]   ;;  %v6186_v15 = vld [vmem:[#allocation5 + $0x94] ss:$12 sps:$4 sm:$0xff]  }
 0x157   : > { %908 = vmatprep.subr.bf16.mxu0 %v6182_v14  ;;  %v7283_v14 = vld [vmem:[%s8939_s9] ss:$0 sm:$0xff] }
 0x158   : > { %v588_v34 = vmul.f32 %v7262_v13, %v7262_v13  ;;  %v589_v35 = vmul.f32 %v7265_v28, %v7265_v28  ;;  %909 = vmatpush1.bf16.msra.mxu0 %v6185_v37 }
 0x159   : > { %910 = vmatprep.subr.bf16.mxu0 %v6186_v15 }
 0x15a   : > { %616 = vadd.xlane.f32.xlu1 %v587_v12  ;;  %618 = vadd.xlane.f32.xlu0 %v588_v34 }
 0x15c   : > { %911 = vmatpush1.bf16.msra.mxu0 %v6189_v39 }
 0x15d   : > { %912 = vmatprep.subr.bf16.mxu0 %v6190_v42 }
 0x15e   : > { %620 = vadd.xlane.f32.xlu1 %v589_v35 }
 0x160   : > { %913 = vmatpush1.bf16.msra.mxu0 %v6193_v44 }
 0x1cb   : > { %v591_v47 = vpop.xlane.xlu0 %590 }
 0x1cc   : > { %v622_v50 = vmul.f32 0.0078125, %v591_v47 }
 0x1ce   : > { %v638_v51 = vadd.f32 1e-05, %v622_v50 }
 0x1cf   : > { %v593_v52 = vpop.xlane.xlu1 %592  ;;  %v595_v53 = vpop.xlane.xlu0 %594 }
 0x1d0   : > { %6283 = vrsqrt.f32 %v638_v51  ;;  %v623_v54 = vmul.f32 0.0078125, %v593_v52  ;;  %v624_v55 = vmul.f32 0.0078125, %v595_v53 }
 0x1d2   : > { %v639_v58 = vadd.f32 1e-05, %v623_v54  ;;  %v640_v59 = vadd.f32 1e-05, %v624_v55 }
 0x1d3   : > { %v597_v60 = vpop.xlane.xlu1 %596  ;;  %v599_v61 = vpop.xlane.xlu0 %598 }
 0x1d4   : > { %6285 = vrsqrt.f32 %v639_v58  ;;  %v625_v62 = vmul.f32 0.0078125, %v597_v60  ;;  %v626_v63 = vmul.f32 0.0078125, %v599_v61 }
 0x1d5   : > { %6287 = vrsqrt.f32 %v640_v59 }
 0x1d6   : > { %v641_v0 = vadd.f32 1e-05, %v625_v62  ;;  %v642_v1 = vadd.f32 1e-05, %v626_v63 }
 0x1d7   : > { %v601_v2 = vpop.xlane.xlu1 %600  ;;  %v603_v5 = vpop.xlane.xlu0 %602 }
 0x1d8   : > { %6289 = vrsqrt.f32 %v641_v0  ;;  %v627_v6 = vmul.f32 0.0078125, %v601_v2  ;;  %v628_v7 = vmul.f32 0.0078125, %v603_v5 }
 0x1d9   : > { %6291 = vrsqrt.f32 %v642_v1 }
 0x1da   : > { %v6284_v8 = vpop.eup %6283  ;;  %v643_v9 = vadd.f32 1e-05, %v627_v6  ;;  %v644_v16 = vadd.f32 1e-05, %v628_v7 }
 0x1db   : > { %v605_v10 = vpop.xlane.xlu1 %604  ;;  %v607_v18 = vpop.xlane.xlu0 %606  ;;  %v670_v19 = vmul.f32 %v6284_v8, %v7197_v24 }
 0x1dc   : > { %6293 = vrsqrt.f32 %v643_v9  ;;  %v629_v20 = vmul.f32 0.0078125, %v605_v10  ;;  %v630_v21 = vmul.f32 0.0078125, %v607_v18 }
 0x1dd   : > { %6295 = vrsqrt.f32 %v644_v16  ;;  %v692_v34 = vmul.f32 %v7276_v22, %v670_v19 }
 0x1de   : > { %v6286_v23 = vpop.eup %6285  ;;  %v645_v26 = vadd.f32 1e-05, %v629_v20  ;;  %v646_v27 = vadd.f32 1e-05, %v630_v21 }
 0x1df   : > { %v6288_v12 = vpop.eup %6287  ;;  %v609_v29 = vpop.xlane.xlu1 %608  ;;  %v671_v31 = vmul.f32 %v6286_v23, %v7205_v32  ;;  %v714_v45 = vadd.f32 %v7283_v14, %v692_v34 }
 0x1e0   : > { %v611_v30 = vpop.xlane.xlu0 %610  ;;  %6297 = vrsqrt.f32 %v645_v26  ;;  %v631_v24 = vmul.f32 0.0078125, %v609_v29  ;;  %v672_v36 = vmul.f32 %v6288_v12, %v7199_v25 }
 0x1e1   : > { %v632_v35 = vmul.f32 0.0078125, %v611_v30  ;;  %6299 = vrsqrt.f32 %v646_v27  ;;  %v693_v37 = vmul.f32 %v7276_v22, %v671_v31 }
 0x1e2   : > { %v6290_v15 = vpop.eup %6289  ;;  %v647_v38 = vadd.f32 1e-05, %v631_v24  ;;  %v694_v32 = vmul.f32 %v7276_v22, %v672_v36 }
 0x1e3   : > { %v648_v39 = vadd.f32 1e-05, %v632_v35  ;;  %v6292_v42 = vpop.eup %6291  ;;  %v613_v43 = vpop.xlane.xlu1 %612  ;;  %v715_v47 = vadd.f32 %v7283_v14, %v693_v37  ;;  %v673_v50 = vmul.f32 %v6290_v15, %v7207_v33 }
 0x1e4   : > { %v615_v44 = vpop.xlane.xlu0 %614  ;;  %6301 = vrsqrt.f32 %v647_v38  ;;  %v633_v51 = vmul.f32 0.0078125, %v613_v43  ;;  %v674_v54 = vmul.f32 %v6292_v42, %v7213_v40  ;;  %v716_v60 = vadd.f32 %v7283_v14, %v694_v32 }
 0x1e5   : > { %v634_v25 = vmul.f32 0.0078125, %v615_v44  ;;  %6303 = vrsqrt.f32 %v648_v39  ;;  %v730_v52 = vpack.c.bf16 %v715_v47, %v714_v45  ;;  %v695_v53 = vmul.f32 %v7276_v22, %v673_v50 }
 0x1e6   : > { %v6294_v55 = vpop.eup %6293  ;;  %v649_v58 = vadd.f32 1e-05, %v633_v51  ;;  %v696_v1 = vmul.f32 %v7276_v22, %v674_v54 }
 0x1e7   : > { %v650_v59 = vadd.f32 1e-05, %v634_v25  ;;  %v6296_v61 = vpop.eup %6295  ;;  %v617_v62 = vpop.xlane.xlu1 %616  ;;  %931 = vmatmul.mubr.bf16.vlgmr.msra.gmra.mrb[0].mxu0 %v730_v52  ;;  %5629 = vmatprep.mubr.bf16.mxu1 %v730_v52  ;;  %v717_v33 = vadd.f32 %v7283_v14, %v695_v53  ;;  %v675_v0 = vmul.f32 %v6294_v55, %v7215_v41 }
 0x1e8   : > { %v619_v63 = vpop.xlane.xlu0 %618  ;;  %6305 = vrsqrt.f32 %v649_v58  ;;  %v635_v2 = vmul.f32 0.0078125, %v617_v62  ;;  %940 = vmatprep.mubr.bf16.mxu0 %v8949_v46  ;;  %v676_v40 = vmul.f32 %v6296_v61, %v7222_v48  ;;  %v718_v19 = vadd.f32 %v7283_v14, %v696_v1 }
 0x1e9   : > { %v636_v5 = vmul.f32 0.0078125, %v619_v63  ;;  %6307 = vrsqrt.f32 %v650_v59  ;;  %v731_v6 = vpack.c.bf16 %v717_v33, %v716_v60  ;;  %v697_v7 = vmul.f32 %v7276_v22, %v675_v0 }
 0x1ea   : > { %v6298_v8 = vpop.eup %6297  ;;  %v651_v9 = vadd.f32 1e-05, %v635_v2  ;;  %v698_v10 = vmul.f32 %v7276_v22, %v676_v40 }
 0x1eb   : > { %v652_v16 = vadd.f32 1e-05, %v636_v5  ;;  %v6300_v18 = vpop.eup %6299  ;;  %v621_v41 = vpop.xlane.xlu1 %620  ;;  %5630 = vmatmul.mubr.bf16.vlgmr.msra.gmra.mrb[0].mxu1 %v731_v6  ;;  %v719_v20 = vadd.f32 %v7283_v14, %v697_v7  ;;  %v677_v21 = vmul.f32 %v6298_v8, %v7225_v49 }
 0x1ec   : > { %6309 = vrsqrt.f32 %v651_v9  ;;  %v637_v48 = vmul.f32 0.0078125, %v621_v41  ;;  %v678_v23 = vmul.f32 %v6300_v18, %v7232_v56  ;;  %v720_v30 = vadd.f32 %v7283_v14, %v698_v10 }
 0x1ed   : > { %6311 = vrsqrt.f32 %v652_v16  ;;  %v732_v26 = vpack.c.bf16 %v719_v20, %v718_v19  ;;  %v699_v27 = vmul.f32 %v7276_v22, %v677_v21 }
 0x1ee   : > { %v6302_v12 = vpop.eup %6301  ;;  %v653_v29 = vadd.f32 1e-05, %v637_v48  ;;  %v700_v49 = vmul.f32 %v7276_v22, %v678_v23 }
 0x1ef   : > { %v6304_v31 = vpop.eup %6303  ;;  %941 = vmatmul.mubr.bf16.gmra.mrb[4].mxu0 %v731_v6  ;;  %5633 = vmatprep.mubr.bf16.mxu1 %v732_v26  ;;  %v721_v34 = vadd.f32 %v7283_v14, %v699_v27  ;;  %v679_v24 = vmul.f32 %v6302_v12, %v7235_v57 }
 0x1f0   : > { %6313 = vrsqrt.f32 %v653_v29  ;;  %950 = vmatprep.mubr.bf16.mxu0 %v8949_v46  ;;  %v680_v56 = vmul.f32 %v6304_v31, %v7242_v3  ;;  %v722_v39 = vadd.f32 %v7283_v14, %v700_v49 }
 0x1f1   : > { %v733_v35 = vpack.c.bf16 %v721_v34, %v720_v30  ;;  %v701_v36 = vmul.f32 %v7276_v22, %v679_v24 }
 0x1f2   : > { %v6306_v37 = vpop.eup %6305  ;;  %v702_v15 = vmul.f32 %v7276_v22, %v680_v56 }
 0x1f3   : > { %v6308_v38 = vpop.eup %6307  ;;  %5634 = vmatmul.mubr.bf16.gmra.mrb[4].mxu1 %v733_v35  ;;  %v723_v32 = vadd.f32 %v7283_v14, %v701_v36  ;;  %v681_v57 = vmul.f32 %v6306_v37, %v7245_v4 }
 0x1f4   : > { %v682_v42 = vmul.f32 %v6308_v38, %v7252_v11  ;;  %v724_v45 = vadd.f32 %v7283_v14, %v702_v15 }
 0x1f5   : > { %v734_v43 = vpack.c.bf16 %v723_v32, %v722_v39  ;;  %v703_v44 = vmul.f32 %v7276_v22, %v681_v57 }
 0x1f6   : > { %v6310_v3 = vpop.eup %6309  ;;  %v704_v25 = vmul.f32 %v7276_v22, %v682_v42 }
 0x1f7   : > { %v6312_v47 = vpop.eup %6311  ;;  %951 = vmatmul.mubr.bf16.gmra.mrb[8].mxu0 %v732_v26  ;;  %5637 = vmatprep.mubr.bf16.mxu1 %v734_v43  ;;  %v725_v50 = vadd.f32 %v7283_v14, %v703_v44  ;;  %v683_v51 = vmul.f32 %v6310_v3, %v7255_v17 }
 0x1f8   : > { %960 = vmatprep.mubr.bf16.mxu0 %v8949_v46  ;;  %v684_v4 = vmul.f32 %v6312_v47, %v7262_v13  ;;  %v726_v54 = vadd.f32 %v7283_v14, %v704_v25 }
 0x1f9   : > { %v735_v11 = vpack.c.bf16 %v725_v50, %v724_v45  ;;  %v705_v52 = vmul.f32 %v7276_v22, %v683_v51 }
 0x1fa   : > { %v6314_v53 = vpop.eup %6313  ;;  %v706_v59 = vmul.f32 %v7276_v22, %v684_v4 }
 0x1fb   : > { %5638 = vmatmul.mubr.bf16.gmra.mrb[8].mxu1 %v735_v11  ;;  %v727_v55 = vadd.f32 %v7283_v14, %v705_v52  ;;  %v685_v58 = vmul.f32 %v6314_v53, %v7265_v28 }
 0x1fc   : > { %v728_v13 = vadd.f32 %v7283_v14, %v706_v59 }
 0x1fd   : > { %v736_v17 = vpack.c.bf16 %v727_v55, %v726_v54  ;;  %v707_v60 = vmul.f32 %v7276_v22, %v685_v58 }
 0x1ff   : > { %961 = vmatmul.mubr.bf16.gmra.mrb[12].mxu0 %v733_v35  ;;  %5641 = vmatprep.mubr.bf16.mxu1 %v736_v17  ;;  %v729_v61 = vadd.f32 %v7283_v14, %v707_v60 }
 0x200   : > { %970 = vmatprep.mubr.bf16.mxu0 %v8949_v46 }
 0x201   : > { %v737_v62 = vpack.c.bf16 %v729_v61, %v728_v13 }
 0x203   : > { %5642 = vmatmul.mubr.bf16.gmra.mrb[12].mxu1 %v737_v62 }
 0x207   : > { %971 = vmatmul.mubr.bf16.gmra.mrb[16].mxu0 %v734_v43 }
 0x208   : > { %980 = vmatprep.mubr.bf16.mxu0 %v8949_v46 }
 0x20f   : > { %981 = vmatmul.mubr.bf16.gmra.mrb[20].mxu0 %v735_v11 }
 0x210   : > { %990 = vmatprep.mubr.bf16.mxu0 %v8949_v46 }
 0x217   : > { %991 = vmatmul.mubr.bf16.gmra.mrb[24].mxu0 %v736_v17 }
 0x218   : > { %1000 = vmatprep.mubr.bf16.mxu0 %v8949_v46 }
 0x21f   : > { %1001 = vmatmul.mubr.bf16.gmra.mrb[28].mxu0 %v737_v62 }
 0x2ba   : > { %v932_v28 = vpop.f32.mrb[0].mxu0 }
 0x2bb   : > { %v934_v22 = vpop.f32.mrb[1].mxu0 }
 0x2bc   : > { %v936_v63 = vpop.f32.mrb[2].mxu0 }
 0x2bd   : > { %v7337_v33 = vpack.c.bf16 %v936_v63, %v932_v28  ;;  %v938_v14 = vpop.f32.mrb[3].mxu0 }
 0x2be   : > { %v7339_v0 = vpack.c.bf16 %v938_v14, %v934_v22  ;;  %v5631_v1 = vpop.f32.mrb[0].mxu1 }
 0x2bf   : > { %v1045_v2 = vpop.f32.mrb[1].mxu1  ;;  %5661 = vmatprep.mubr.msk.bf16.mxu0 %vm1183_vm0, %v7337_v33 }
 0x2c0   : > { %1654 = vrot.lane.b32.xlu0 %v7339_v0, %s6851_s28  ;;  %v5632_v5 = vpop.f32.mrb[2].mxu1  ;;  %6029 = vmatprep.subr.msk.bf16.mxu0 %vm1183_vm0, %v7339_v0  ;;  %v1209_v40 = vsel %vm1183_vm0, %v7339_v0, 0 }
 0x2c1   : > { %v7349_v6 = vpack.c.bf16 %v5632_v5, %v5631_v1  ;;  %v1048_v7 = vpop.f32.mrb[3].mxu1  ;;  %5646 = vmatpush3.bf16.xpose.msra.mxu0 %v1209_v40 }
 0x2c2   : > { %v7351_v8 = vpack.c.bf16 %v1048_v7, %v1045_v2  ;;  %v942_v9 = vpop.f32.mrb[4].mxu0 }
 0x2c3   : > { %v944_v16 = vpop.f32.mrb[5].mxu0 }
 0x2c4   : > { %v946_v10 = vpop.f32.mrb[6].mxu0  ;;  %5677 = vmatprep.subr.bf16.mxu1 %v7351_v8 }
 0x2c5   : > { %v7354_v18 = vpack.c.bf16 %v946_v10, %v942_v9  ;;  %v948_v41 = vpop.f32.mrb[7].mxu0  ;;  %5678 = vmatpush3.bf16.msra.mxu1 %v7351_v8 }
 0x2c6   : > { %v7357_v19 = vpack.c.bf16 %v948_v41, %v944_v16  ;;  %v5635_v20 = vpop.f32.mrb[4].mxu1  ;;  %5679 = vmatprep.subr.bf16.mxu1 %v7349_v6 }
 0x2c7   : > { %v1061_v21 = vpop.f32.mrb[5].mxu1 }
 0x2c8   : > { %1656 = vrot.lane.b32.xlu1 %v7357_v19, %s6851_s28  ;;  %v5636_v48 = vpop.f32.mrb[6].mxu1  ;;  %6030 = vmatprep.subr.msk.bf16.mxu0 %vm1183_vm0, %v7357_v19  ;;  %v1212_v23 = vsel %vm1183_vm0, %v7357_v19, 0 }
 0x2c9   : > { %v7366_v26 = vpack.c.bf16 %v5636_v48, %v5635_v20  ;;  %v1064_v27 = vpop.f32.mrb[7].mxu1  ;;  %5648 = vmatpush3.bf16.xpose.msra.mxu0 %v1212_v23  ;;  %5680 = vmatpush3.bf16.msra.mxu1 %v7349_v6 }
 0x2ca   : > { %v7369_v12 = vpack.c.bf16 %v1064_v27, %v1061_v21  ;;  %v952_v29 = vpop.f32.mrb[8].mxu0 }
 0x2cb   : > { %9029 = vst [vmem:[#allocation18_spill] sm:$0xff] %v7366_v26  ;;  %v954_v30 = vpop.f32.mrb[9].mxu0 }
 0x2cc   : > { %9030 = vst [vmem:[#allocation19_spill] sm:$0xff] %v7369_v12  ;;  %v956_v31 = vpop.f32.mrb[10].mxu0  ;;  %5681 = vmatprep.subr.bf16.mxu1 %v7369_v12 }
 0x2cd   : > { %v7372_v34 = vpack.c.bf16 %v956_v31, %v952_v29  ;;  %v958_v24 = vpop.f32.mrb[11].mxu0  ;;  %5682 = vmatpush3.bf16.msra.mxu1 %v7369_v12  ;;  %v1108_v29 = vlaneseq }
 0x2ce   : > { %v7375_v49 = vpack.c.bf16 %v958_v24, %v954_v30  ;;  %v5639_v56 = vpop.f32.mrb[8].mxu1  ;;  %5683 = vmatprep.subr.bf16.mxu1 %v7366_v26 }
 0x2cf   : > { %v1077_v35 = vpop.f32.mrb[9].mxu1  ;;  %v7457_v30 = vshrl.u32 %v1108_v29, 7  ;;  %v7459_v31 = vand.u32 127, %v1108_v29 }
 0x2d0   : > { %9031 = vst [vmem:[#allocation20_spill] sm:$0xff] %v7375_v49  ;;  %v5640_v36 = vpop.f32.mrb[10].mxu1  ;;  %6031 = vmatprep.subr.msk.bf16.mxu0 %vm1183_vm0, %v7375_v49  ;;  %v1215_v37 = vsel %vm1183_vm0, %v7375_v49, 0 }
 0x2d1   : > { %v7382_v15 = vpack.c.bf16 %v5640_v36, %v5639_v56  ;;  %v1080_v38 = vpop.f32.mrb[11].mxu1  ;;  %5650 = vmatpush3.bf16.xpose.msra.mxu0 %v1215_v37  ;;  %5684 = vmatpush3.bf16.msra.mxu1 %v7366_v26  ;;  %9039 = vst [vmem:[#allocation28_spill] sm:$0xff] %v7457_v30  ;;  %v1124_v24 = vadd.s32 120, %v7457_v30  ;;  %v1122_v56 = vadd.s32 104, %v7457_v30  ;;  %vm1127_vm5 = vcmp.ge.s32.totalorder %v7457_v30, %v7459_v31 }
 0x2d2   : > { %v7385_v39 = vpack.c.bf16 %v1080_v38, %v1077_v35  ;;  %v962_v32 = vpop.f32.mrb[12].mxu0  ;;  %v6852_v35 = vmov -1e+30   ;;  %v1111_v38 = vadd.s32 16, %v7457_v30 }
 0x2d3   : > { %9032 = vst [vmem:[#allocation21_spill] sm:$0xff] %v7382_v15  ;;  %v964_v57 = vpop.f32.mrb[13].mxu0  ;;  %vm1142_vm1 = vcmp.ge.s32.totalorder %v1124_v24, %v7459_v31  ;;  %vm1140_vm2 = vcmp.ge.s32.totalorder %v1122_v56, %v7459_v31 }
 0x2d4   : > { %9033 = vst [vmem:[#allocation22_spill] sm:$0xff] %v7385_v39  ;;  %v966_v42 = vpop.f32.mrb[14].mxu0  ;;  %5685 = vmatprep.subr.bf16.mxu1 %v7385_v39  ;;  %v7465_v36 = vsel %vm1142_vm1, 0.0, %v6852_v35  ;;  %v7469_v37 = vsel %vm1140_vm2, 0.0, %v6852_v35  ;;  %vm1129_vm3 = vcmp.ge.s32.totalorder %v1111_v38, %v7459_v31 }
 0x2d5   : > { %v7388_v43 = vpack.c.bf16 %v966_v42, %v962_v32  ;;  %v968_v44 = vpop.f32.mrb[15].mxu0  ;;  %5686 = vmatpush3.bf16.msra.mxu1 %v7385_v39  ;;  %9040 = vst [vmem:[#allocation29_spill] sm:$0xff] %v7465_v36  ;;  %9041 = vst [vmem:[#allocation30_spill] sm:$0xff] %v7469_v37  ;;  %v1112_v32 = vadd.s32 24, %v7457_v30 }
 0x2d6   : > { %v7391_v3 = vpack.c.bf16 %v968_v44, %v964_v57  ;;  %v5643_v45 = vpop.f32.mrb[12].mxu1  ;;  %5687 = vmatprep.subr.bf16.mxu1 %v7382_v15  ;;  %v1110_v57 = vadd.s32 8, %v7457_v30  ;;  %v7477_v44 = vsel %vm1129_vm3, 0.0, %v6852_v35 }
 0x2d7   : > { %v1093_v47 = vpop.f32.mrb[13].mxu1  ;;  %vm1130_vm4 = vcmp.ge.s32.totalorder %v1112_v32, %v7459_v31  ;;  %v1120_v32 = vadd.s32 88, %v7457_v30 }
 0x2d8   : > { %9034 = vst [vmem:[#allocation23_spill] sm:$0xff] %v7391_v3  ;;  %v5644_v50 = vpop.f32.mrb[14].mxu1  ;;  %6032 = vmatprep.subr.msk.bf16.mxu0 %vm1183_vm0, %v7391_v3  ;;  %v1218_v51 = vsel %vm1183_vm0, %v7391_v3, 0  ;;  %vm1128_vm6 = vcmp.ge.s32.totalorder %v1110_v57, %v7459_v31 }
 0x2d9   : > { %v7398_v25 = vpack.c.bf16 %v5644_v50, %v5643_v45  ;;  %v1096_v4 = vpop.f32.mrb[15].mxu1  ;;  %5652 = vmatpush3.bf16.xpose.msra.mxu0 %v1218_v51  ;;  %5688 = vmatpush3.bf16.msra.mxu1 %v7382_v15  ;;  %v1115_v50 = vadd.s32 48, %v7457_v30  ;;  %vm1138_vm12 = vcmp.ge.s32.totalorder %v1120_v32, %v7459_v31 }
 0x2da   : > { %v7401_v11 = vpack.c.bf16 %v1096_v4, %v1093_v47  ;;  %v972_v52 = vpop.f32.mrb[16].mxu0  ;;  %v7483_v4 = vsel %vm1130_vm4, 0.0, %v6852_v35 }
 0x2db   : > { %9035 = vst [vmem:[#allocation24_spill] sm:$0xff] %v7398_v25  ;;  %v974_v53 = vpop.f32.mrb[17].mxu0  ;;  %9042 = vst [vmem:[#allocation31_spill] sm:$0xff] %v7483_v4  ;;  %vm1133_vm7 = vcmp.ge.s32.totalorder %v1115_v50, %v7459_v31 }
 0x2dc   : > { %9036 = vst [vmem:[#allocation25_spill] sm:$0xff] %v7401_v11  ;;  %v976_v54 = vpop.f32.mrb[18].mxu0  ;;  %5689 = vmatprep.subr.bf16.mxu1 %v7401_v11 }
 0x2dd   : > { %v7404_v55 = vpack.c.bf16 %v976_v54, %v972_v52  ;;  %v978_v58 = vpop.f32.mrb[19].mxu0  ;;  %5690 = vmatpush3.bf16.msra.mxu1 %v7401_v11 }
 0x2de   : > { %v7407_v59 = vpack.c.bf16 %v978_v58, %v974_v53  ;;  %5691 = vmatprep.subr.bf16.mxu1 %v7398_v25 }
 0x2e0   : > { %9037 = vst [vmem:[#allocation26_spill] sm:$0xff] %v7407_v59  ;;  %6033 = vmatprep.subr.msk.bf16.mxu0 %vm1183_vm0, %v7407_v59  ;;  %v1221_v17 = vsel %vm1183_vm0, %v7407_v59, 0 }
 0x2e1   : > { %5654 = vmatpush3.bf16.xpose.msra.mxu0 %v1221_v17  ;;  %5692 = vmatpush3.bf16.msra.mxu1 %v7398_v25  ;;  %v1116_v17 = vadd.s32 56, %v7457_v30 }
 0x2e2   : > { %v982_v60 = vpop.f32.mrb[20].mxu0 }
 0x2e3   : > { %v984_v13 = vpop.f32.mrb[21].mxu0  ;;  %vm1134_vm8 = vcmp.ge.s32.totalorder %v1116_v17, %v7459_v31 }
 0x2e4   : > { %v986_v61 = vpop.f32.mrb[22].mxu0 }
 0x2e5   : > { %v7415_v62 = vpack.c.bf16 %v986_v61, %v982_v60  ;;  %v988_v28 = vpop.f32.mrb[23].mxu0  ;;  %v7491_v60 = vsel %vm1127_vm5, 0.0, %v6852_v35 }
 0x2e6   : > { %v7417_v22 = vpack.c.bf16 %v988_v28, %v984_v13  ;;  %v1113_v28 = vadd.s32 32, %v7457_v30 }
 0x2e8   : > { %9038 = vst [vmem:[#allocation27_spill] sm:$0xff] %v7417_v22  ;;  %6034 = vmatprep.subr.msk.bf16.mxu0 %vm1183_vm0, %v7417_v22  ;;  %v1224_v63 = vsel %vm1183_vm0, %v7417_v22, 0  ;;  %vm1131_vm9 = vcmp.ge.s32.totalorder %v1113_v28, %v7459_v31 }
 0x2e9   : > { %5656 = vmatpush3.bf16.xpose.msra.mxu0 %v1224_v63  ;;  %v7500_v63 = vsel %vm1128_vm6, 0.0, %v6852_v35  ;;  %v7527_v57 = vsel %vm1131_vm9, 0.0, %v6852_v35 }
 0x2ea   : > { %v992_v14 = vpop.f32.mrb[24].mxu0  ;;  %9045 = vst [vmem:[#allocation34_spill] sm:$0xff] %v7527_v57 }
 0x2eb   : > { %v994_v1 = vpop.f32.mrb[25].mxu0 }
 0x2ec   : > { %v996_v2 = vpop.f32.mrb[26].mxu0 }
 0x2ed   : > { %v7423_v5 = vpack.c.bf16 %v996_v2, %v992_v14  ;;  %v998_v40 = vpop.f32.mrb[27].mxu0  ;;  %v1114_v14 = vadd.s32 40, %v7457_v30 }
 0x2ee   : > { %v7425_v7 = vpack.c.bf16 %v998_v40, %v994_v1  ;;  %v7509_v40 = vsel %vm1133_vm7, 0.0, %v6852_v35 }
 0x2ef   : > { %9043 = vst [vmem:[#allocation32_spill] sm:$0xff] %v7509_v40  ;;  %vm1132_vm10 = vcmp.ge.s32.totalorder %v1114_v14, %v7459_v31  ;;  %v1123_v14 = vadd.s32 112, %v7457_v30 }
 0x2f0   : > { %6035 = vmatprep.subr.msk.bf16.mxu0 %vm1183_vm0, %v7425_v7  ;;  %v1227_v9 = vsel %vm1183_vm0, %v7425_v7, 0  ;;  %v7536_v50 = vsel %vm1132_vm10, 0.0, %v6852_v35 }
 0x2f1   : > { %5658 = vmatpush3.bf16.xpose.msra.mxu0 %v1227_v9  ;;  %9046 = vst [vmem:[#allocation35_spill] sm:$0xff] %v7536_v50  ;;  %vm1141_vm15 = vcmp.ge.s32.totalorder %v1123_v14, %v7459_v31 }
 0x2f2   : > { %v1002_v16 = vpop.f32.mrb[28].mxu0 }
 0x2f3   : > { %v1004_v10 = vpop.f32.mrb[29].mxu0 }
 0x2f4   : > { %v1006_v41 = vpop.f32.mrb[30].mxu0 }
 0x2f5   : > { %v7431_v20 = vpack.c.bf16 %v1006_v41, %v1002_v16  ;;  %v1008_v21 = vpop.f32.mrb[31].mxu0  ;;  %v1119_v41 = vadd.s32 80, %v7457_v30 }
 0x2f6   : > { %v7433_v48 = vpack.c.bf16 %v1008_v21, %v1004_v10 }
 0x2f7   : > { %vm1137_vm11 = vcmp.ge.s32.totalorder %v1119_v41, %v7459_v31 }
 0x2f8   : > { %6036 = vmatprep.subr.msk.bf16.mxu0 %vm1183_vm0, %v7433_v48  ;;  %v1230_v23 = vsel %vm1183_vm0, %v7433_v48, 0 }
 0x2f9   : > { %5660 = vmatpush3.bf16.xpose.msra.mxu0 %v1230_v23  ;;  %v7518_v23 = vsel %vm1134_vm8, 0.0, %v6852_v35 }
 0x2fa   : > { %9044 = vst [vmem:[#allocation33_spill] sm:$0xff] %v7518_v23 }
 0x300   : > { %5662 = vmatmul.mubr.msk.bf16.vlgmr.msra.gmra.mrb[32].mxu0 %vm1183_vm0, %v7354_v18 }
 0x301   : > { %5665 = vmatprep.mubr.msk.bf16.mxu0 %vm1183_vm0, %v7372_v34 }
 0x308   : > { %5666 = vmatmul.mubr.msk.bf16.gmra.mrb[36].mxu0 %vm1183_vm0, %v7388_v43 }
 0x309   : > { %5669 = vmatprep.mubr.msk.bf16.mxu0 %vm1183_vm0, %v7404_v55 }
 0x310   : > { %5670 = vmatmul.mubr.msk.bf16.gmra.mrb[40].mxu0 %vm1183_vm0, %v7415_v62 }
 0x311   : > { %5673 = vmatprep.mubr.msk.bf16.mxu0 %vm1183_vm0, %v7423_v5 }
 0x318   : > { %5674 = vmatmul.mubr.msk.bf16.gmra.mrb[44].mxu0 %vm1183_vm0, %v7431_v20 }
 0x332   : > { %v7453_v27 = vpop.permute.xlu0 %1654 }
 0x333   : > { %6037 = vmatprep.subr.msk.bf16.mxu1 %vm1183_vm0, %v7453_v27 }
 0x3d3   : > { %v5663_v42 = vpop.f32.mrb[32].mxu0 }
 0x3d4   : > { %v1331_v45 = vmul.f32 0.088388346, %v5663_v42  ;;  %v1266_v47 = vpop.f32.mrb[33].mxu0 }
 0x3d5   : > { %v5664_v51 = vpop.f32.mrb[34].mxu0  ;;  %v1329_v52 = vmul.f32 0.088388346, %v1266_v47  ;;  %v1117_v47 = vadd.s32 64, %v7457_v30 }
 0x3d6   : > { %v1332_v53 = vmul.f32 0.088388346, %v5664_v51  ;;  %v1269_v54 = vpop.f32.mrb[35].mxu0  ;;  %v7487_v58 = vadd.f32 %v1331_v45, %v7477_v44 }
 0x3d7   : > { %v1330_v13 = vmul.f32 0.088388346, %v1269_v54  ;;  %v7505_v1 = vadd.f32 %v1329_v52, %v7491_v60  ;;  %v1118_v52 = vadd.s32 72, %v7457_v30  ;;  %v7545_v54 = vsel %vm1137_vm11, 0.0, %v6852_v35 }
 0x3d8   : > { %1365 = vmax.xlane.f32.xlu0 %v7487_v58  ;;  %v7495_v61 = vadd.f32 %v1332_v53, %v7483_v4  ;;  %9047 = vst [vmem:[#allocation36_spill] sm:$0xff] %v7545_v54  ;;  %vm1135_vm13 = vcmp.ge.s32.totalorder %v1117_v47, %v7459_v31 }
 0x3d9   : > { %v7513_v10 = vadd.f32 %v1330_v13, %v7500_v63  ;;  %vm1136_vm14 = vcmp.ge.s32.totalorder %v1118_v52, %v7459_v31 }
 0x3da   : > { %1367 = vmax.xlane.f32.xlu1 %v7495_v61  ;;  %v7571_v47 = vsel %vm1136_vm14, 0.0, %v6852_v35 }
 0x3db   : > { %v5667_v2 = vpop.f32.mrb[36].mxu0  ;;  %9050 = vst [vmem:[#allocation39_spill] sm:$0xff] %v7571_v47 }
 0x3dc   : > { %v1335_v9 = vmul.f32 0.088388346, %v5667_v2  ;;  %1361 = vmax.xlane.f32.xlu0 %v7505_v1  ;;  %v1282_v16 = vpop.f32.mrb[37].mxu0 }
 0x3dd   : > { %v5668_v21 = vpop.f32.mrb[38].mxu0  ;;  %v1333_v29 = vmul.f32 0.088388346, %v1282_v16 }
 0x3de   : > { %v1336_v24 = vmul.f32 0.088388346, %v5668_v21  ;;  %1363 = vmax.xlane.f32.xlu1 %v7513_v10  ;;  %v1285_v56 = vpop.f32.mrb[39].mxu0  ;;  %v7523_v38 = vadd.f32 %v1335_v9, %v7509_v40  ;;  %v7554_v9 = vsel %vm1138_vm12, 0.0, %v6852_v35 }
 0x3df   : > { %v1334_v42 = vmul.f32 0.088388346, %v1285_v56  ;;  %v7540_v51 = vadd.f32 %v1333_v29, %v7527_v57  ;;  %9048 = vst [vmem:[#allocation37_spill] sm:$0xff] %v7554_v9 }
 0x3e0   : > { %1373 = vmax.xlane.f32.xlu0 %v7523_v38  ;;  %v7531_v45 = vadd.f32 %v1336_v24, %v7518_v23  ;;  %v7562_v24 = vsel %vm1135_vm13, 0.0, %v6852_v35 }
 0x3e1   : > { %v7549_v28 = vadd.f32 %v1334_v42, %v7536_v50  ;;  %9049 = vst [vmem:[#allocation38_spill] sm:$0xff] %v7562_v24  ;;  %v1121_v42 = vadd.s32 96, %v7457_v30 }
 0x3e2   : > { %1375 = vmax.xlane.f32.xlu1 %v7531_v45 }
 0x3e3   : > { %v5671_v53 = vpop.f32.mrb[40].mxu0  ;;  %vm1139_vm1 = vcmp.ge.s32.totalorder %v1121_v42, %v7459_v31 }
 0x3e4   : > { %v1339_v17 = vmul.f32 0.088388346, %v5671_v53  ;;  %1369 = vmax.xlane.f32.xlu0 %v7540_v51  ;;  %v1298_v13 = vpop.f32.mrb[41].mxu0  ;;  %v7590_v30 = vsel %vm1139_vm1, 0.0, %v6852_v35 }
 0x3e5   : > { %v5672_v2 = vpop.f32.mrb[42].mxu0  ;;  %v1337_v16 = vmul.f32 0.088388346, %v1298_v13  ;;  %9052 = vst [vmem:[#allocation41_spill] sm:$0xff] %v7590_v30 }
 0x3e6   : > { %v1340_v41 = vmul.f32 0.088388346, %v5672_v2  ;;  %1371 = vmax.xlane.f32.xlu1 %v7549_v28  ;;  %v1301_v21 = vpop.f32.mrb[43].mxu0  ;;  %v7558_v29 = vadd.f32 %v1339_v17, %v7545_v54  ;;  %v7578_v17 = vsel %vm1141_vm15, 0.0, %v6852_v35 }
 0x3e7   : > { %v1338_v56 = vmul.f32 0.088388346, %v1301_v21  ;;  %v7575_v52 = vadd.f32 %v1337_v16, %v7562_v24  ;;  %9051 = vst [vmem:[#allocation40_spill] sm:$0xff] %v7578_v17 }
 0x3e8   : > { %1381 = vmax.xlane.f32.xlu0 %v7558_v29  ;;  %v7566_v32 = vadd.f32 %v1340_v41, %v7554_v9 }
 0x3e9   : > { %v7582_v14 = vadd.f32 %v1338_v56, %v7571_v47 }
 0x3ea   : > { %1383 = vmax.xlane.f32.xlu1 %v7566_v32 }
 0x3eb   : > { %v5675_v53 = vpop.f32.mrb[44].mxu0 }
 0x3ec   : > { %v1343_v13 = vmul.f32 0.088388346, %v5675_v53  ;;  %1377 = vmax.xlane.f32.xlu0 %v7575_v52  ;;  %v1314_v2 = vpop.f32.mrb[45].mxu0 }
 0x3ed   : > { %v5676_v41 = vpop.f32.mrb[46].mxu0  ;;  %v1341_v21 = vmul.f32 0.088388346, %v1314_v2 }
 0x3ee   : > { %1379 = vmax.xlane.f32.xlu1 %v7582_v14  ;;  %v1317_v46 = vpop.f32.mrb[47].mxu0  ;;  %v7587_v16 = vadd.f32 %v1343_v13, %v7578_v17  ;;  %v1344_v31 = vmul.f32 0.088388346, %v5676_v41  ;;  %v7609_v13 = vpop.permute.xlu1 %1656 }
 0x3ef   : > { %v7594_v53 = vadd.f32 %v1341_v21, %v7590_v30  ;;  %v1342_v56 = vmul.f32 0.088388346, %v1317_v46 }
 0x3f0   : > { %1389 = vmax.xlane.f32.xlu0 %v7587_v16  ;;  %v7602_v42 = vadd.f32 %v1344_v31, %v7465_v36 }
 0x3f1   : > { %v7606_v35 = vadd.f32 %v1342_v56, %v7469_v37 }
 0x3f4   : > { %1385 = vmax.xlane.f32.xlu0 %v7594_v53 }
 0x3ff   : > { %1660 = vrot.lane.b32.xlu1 %v7391_v3, %s6851_s28 }
 0x40a   : > { %1658 = vrot.lane.b32.xlu0 %v7375_v49, %s6851_s28 }
 0x423   : > { %1391 = vmax.xlane.f32.xlu1 %v7602_v42 }
 0x427   : > { %1387 = vmax.xlane.f32.xlu1 %v7606_v35 }
 0x465   : > { %v1366_v2 = vpop.xlane.xlu0 %1365 }
 0x466   : > { %v1395_v21 = vsub.f32 %v7487_v58, %v1366_v2 }
 0x467   : > { %v1368_v3 = vpop.xlane.xlu1 %1367 }
 0x468   : > { %v1413_v30 = vmul.f32 1.442695, %v1395_v21  ;;  %v1396_v41 = vsub.f32 %v7495_v61, %v1368_v3 }
 0x469   : > { %v1362_v46 = vpop.xlane.xlu0 %1361 }
 0x46a   : > { %6315 = vpow2.f32 %v1413_v30  ;;  %v1415_v31 = vmul.f32 1.442695, %v1396_v41  ;;  %v1393_v36 = vsub.f32 %v7505_v1, %v1362_v46 }
 0x46b   : > { %v1364_v49 = vpop.xlane.xlu1 %1363 }
 0x46c   : > { %6317 = vpow2.f32 %v1415_v31  ;;  %v1409_v56 = vmul.f32 1.442695, %v1393_v36  ;;  %v1394_v37 = vsub.f32 %v7513_v10, %v1364_v49 }
 0x46d   : > { %v1374_v49 = vpop.xlane.xlu0 %1373 }
 0x46e   : > { %6319 = vpow2.f32 %v1409_v56  ;;  %v1411_v17 = vmul.f32 1.442695, %v1394_v37 }
 0x46f   : > { %v1376_v61 = vpop.xlane.xlu1 %1375 }
 0x470   : > { %6321 = vpow2.f32 %v1411_v17  ;;  %v1399_v17 = vsub.f32 %v7523_v38, %v1374_v49  ;;  %v1400_v56 = vsub.f32 %v7531_v45, %v1376_v61 }
 0x471   : > { %v1370_v36 = vpop.xlane.xlu0 %1369 }
 0x472   : > { %v1397_v2 = vsub.f32 %v7540_v51, %v1370_v36  ;;  %v1421_v41 = vmul.f32 1.442695, %v1399_v17  ;;  %v1423_v9 = vmul.f32 1.442695, %v1400_v56 }
 0x473   : > { %v1372_v10 = vpop.xlane.xlu1 %1371 }
 0x474   : > { %v7615_v24 = vpop.eup %6315  ;;  %v1398_v46 = vsub.f32 %v7549_v28, %v1372_v10  ;;  %v1417_v47 = vmul.f32 1.442695, %v1397_v2  ;;  %6323 = vpow2.f32 %v1421_v41 }
 0x475   : > { %1445 = vadd.xlane.f32.xlu0 %v7615_v24  ;;  %v1382_v37 = vpop.xlane.xlu0 %1381 }
 0x476   : > { %v7618_v58 = vpop.eup %6317  ;;  %6325 = vpow2.f32 %v1417_v47  ;;  %v1403_v57 = vsub.f32 %v7558_v29, %v1382_v37 }
 0x477   : > { %1447 = vadd.xlane.f32.xlu1 %v7618_v58  ;;  %v1384_v31 = vpop.xlane.xlu1 %1383 }
 0x478   : > { %v7621_v3 = vpop.eup %6319  ;;  %v1429_v28 = vmul.f32 1.442695, %v1403_v57  ;;  %v1404_v61 = vsub.f32 %v7566_v32, %v1384_v31 }
 0x479   : > { %1441 = vadd.xlane.f32.xlu0 %v7621_v3  ;;  %v1378_v1 = vpop.xlane.xlu0 %1377 }
 0x47a   : > { %v7624_v30 = vpop.eup %6321  ;;  %v1401_v36 = vsub.f32 %v7575_v52, %v1378_v1 }
 0x47b   : > { %1443 = vadd.xlane.f32.xlu1 %v7624_v30  ;;  %v1380_v38 = vpop.xlane.xlu1 %1379 }
 0x47c   : > { %v1425_v47 = vmul.f32 1.442695, %v1401_v36 }
 0x47d   : > { %v1390_v21 = vpop.xlane.xlu0 %1389 }
 0x47f   : > { %v7640_v10 = vpop.permute.xlu1 %1660 }
 0x481   : > { %v1386_v54 = vpop.xlane.xlu0 %1385 }
 0x482   : > { %v1405_v49 = vsub.f32 %v7594_v53, %v1386_v54 }
 0x484   : > { %v1433_v45 = vmul.f32 1.442695, %v1405_v49 }
 0x485   : > { %v1659_v56 = vpop.permute.xlu0 %1658 }
 0x48c   : > { %1664 = vrot.lane.b32.xlu1 %v7417_v22, %s6851_s28  ;;  %v1419_v22 = vmul.f32 1.442695, %v1398_v46 }
 0x48e   : > { %6327 = vpow2.f32 %v1419_v22 }
 0x48f   : > { %1662 = vrot.lane.b32.xlu0 %v7407_v59, %s6851_s28  ;;  %v1407_v59 = vsub.f32 %v7587_v16, %v1390_v21  ;;  %6329 = vpow2.f32 %v1423_v9  ;;  %v7642_v16 = vpop.eup %6323  ;;  %v1402_v9 = vsub.f32 %v7582_v14, %v1380_v38 }
 0x490   : > { %v7645_v22 = vpop.eup %6325 }
 0x491   : > { %v1437_v51 = vmul.f32 1.442695, %v1407_v59  ;;  %v1431_v59 = vmul.f32 1.442695, %v1404_v61  ;;  %v1427_v1 = vmul.f32 1.442695, %v1402_v9 }
 0x493   : > { %6331 = vpow2.f32 %v1437_v51 }
 0x494   : > { %6333 = vpow2.f32 %v1429_v28 }
 0x495   : > { %6335 = vpow2.f32 %v1433_v45 }
 0x496   : > { %6337 = vpow2.f32 %v1425_v47 }
 0x497   : > { %6339 = vpow2.f32 %v1431_v59 }
 0x498   : > { %v7648_v57 = vpop.eup %6327 }
 0x499   : > { %v7653_v32 = vpop.eup %6329 }
 0x49d   : > { %v7656_v37 = vpop.eup %6331 }
 0x49e   : > { %v7660_v14 = vpop.eup %6333 }
 0x4ae   : > { %1453 = vadd.xlane.f32.xlu0 %v7642_v16 }
 0x4b0   : > { %v1392_v54 = vpop.xlane.xlu1 %1391  ;;  %1449 = vadd.xlane.f32.xlu1 %v7645_v22 }
 0x4b1   : > { %v1408_v29 = vsub.f32 %v7602_v42, %v1392_v54  ;;  %v7663_v42 = vpop.eup %6335 }
 0x4b2   : > { %1451 = vadd.xlane.f32.xlu0 %v7648_v57  ;;  %v7666_v21 = vpop.eup %6337 }
 0x4b3   : > { %v1439_v52 = vmul.f32 1.442695, %v1408_v29  ;;  %v7669_v41 = vpop.eup %6339 }
 0x4b4   : > { %v1388_v53 = vpop.xlane.xlu1 %1387  ;;  %1455 = vadd.xlane.f32.xlu1 %v7653_v32 }
 0x4b5   : > { %6341 = vpow2.f32 %v1439_v52  ;;  %v1406_v17 = vsub.f32 %v7606_v35, %v1388_v53 }
 0x4b6   : > { %1469 = vadd.xlane.f32.xlu0 %v7656_v37  ;;  %6343 = vpow2.f32 %v1427_v1  ;;  %v1695_v1 = vsel %vm1183_vm0, %v7453_v27, 0 }
 0x4b7   : > { %v1435_v2 = vmul.f32 1.442695, %v1406_v17 }
 0x4b8   : > { %1461 = vadd.xlane.f32.xlu1 %v7660_v14 }
 0x4b9   : > { %6345 = vpow2.f32 %v1435_v2 }
 0x4ba   : > { %1465 = vadd.xlane.f32.xlu0 %v7663_v42 }
 0x4bc   : > { %1457 = vadd.xlane.f32.xlu1 %v7666_v21 }
 0x4bf   : > { %v7671_v35 = vpop.eup %6341 }
 0x4c0   : > { %1463 = vadd.xlane.f32.xlu1 %v7669_v41  ;;  %1471 = vadd.xlane.f32.xlu0 %v7671_v35  ;;  %v7675_v46 = vpop.eup %6343 }
 0x4c3   : > { %v7678_v31 = vpop.eup %6345 }
 0x4c4   : > { %1459 = vadd.xlane.f32.xlu1 %v7675_v46 }
 0x4c8   : > { %1467 = vadd.xlane.f32.xlu1 %v7678_v31 }
 0x4d6   : > { %1666 = vrot.lane.b32.xlu0 %v7425_v7, %s6851_s28 }
 0x4d9   : > { %1668 = vrot.lane.b32.xlu1 %v7433_v48, %s6851_s28 }
 0x4da   : > { %1630 = vrot.lane.b32.xlu0 %v7337_v33, %s6851_s28 }
 0x4dd   : > { %1632 = vrot.lane.b32.xlu1 %v7354_v18, %s6851_s28 }
 0x4de   : > { %1634 = vrot.lane.b32.xlu0 %v7372_v34, %s6851_s28 }
 0x4e1   : > { %1636 = vrot.lane.b32.xlu1 %v7388_v43, %s6851_s28 }
 0x4e2   : > { %1638 = vrot.lane.b32.xlu0 %v7404_v55, %s6851_s28 }
 0x4e5   : > { %1640 = vrot.lane.b32.xlu1 %v7415_v62, %s6851_s28 }
 0x4e6   : > { %1642 = vrot.lane.b32.xlu0 %v7423_v5, %s6851_s28 }
 0x4e9   : > { %1644 = vrot.lane.b32.xlu1 %v7431_v20, %s6851_s28 }
 0x4ea   : > { %2007 = vrot.lane.b32.xlu0 %v7351_v8, %s6851_s28 }
 0x4ed   : > { %2009 = vrot.lane.b32.xlu1 %v7349_v6, %s6851_s28 }
 0x4ee   : > { %2011 = vrot.lane.b32.xlu0 %v7369_v12, %s6851_s28 }
 0x4f1   : > { %2013 = vrot.lane.b32.xlu1 %v7366_v26, %s6851_s28 }
 0x4f2   : > { %2015 = vrot.lane.b32.xlu0 %v7385_v39, %s6851_s28  ;;  %v9067_v39 = vld [vmem:[#allocation38_spill] sm:$0xff] }
 0x4f5   : > { %2017 = vrot.lane.b32.xlu1 %v7382_v15, %s6851_s28 }
 0x4f6   : > { %2019 = vrot.lane.b32.xlu0 %v7401_v11, %s6851_s28  ;;  %v9065_v11 = vld [vmem:[#allocation36_spill] sm:$0xff] }
 0x4f9   : > { %2021 = vrot.lane.b32.xlu1 %v7398_v25, %s6851_s28 }
 0x4fa   : > { %2422 = vrot.lane.b32.xlu0 %v7339_v0, %s6853_s1 }
 0x4fd   : > { %2424 = vrot.lane.b32.xlu1 %v7357_v19, %s6853_s1 }
 0x502   : > { %v1446_v38 = vpop.xlane.xlu0 %1445 }
 0x504   : > { %v1448_v51 = vpop.xlane.xlu1 %1447 }
 0x505   : > { %6347 = vrcp.f32 %v1448_v51 }
 0x506   : > { %v1442_v49 = vpop.xlane.xlu0 %1441 }
 0x507   : > { %6349 = vrcp.f32 %v1442_v49 }
 0x508   : > { %6351 = vrcp.f32 %v1446_v38  ;;  %v1444_v28 = vpop.xlane.xlu1 %1443 }
 0x509   : > { %6353 = vrcp.f32 %v1444_v28 }
 0x50a   : > { %v1663_v27 = vpop.permute.xlu0 %1662 }
 0x50b   : > { %v1707_v17 = vsel %vm1183_vm0, %v1663_v27, 0 }
 0x50f   : > { %v6348_v36 = vpop.eup %6347 }
 0x510   : > { %v1492_v59 = vmul.f32 %v6348_v36, %v7618_v58  ;;  %v1698_v58 = vsel %vm1183_vm0, %v7609_v13, 0 }
 0x511   : > { %v6350_v45 = vpop.eup %6349 }
 0x512   : > { %v6352_v61 = vpop.eup %6351  ;;  %v1489_v54 = vmul.f32 %v6350_v45, %v7621_v3  ;;  %v1701_v3 = vsel %vm1183_vm0, %v1659_v56, 0 }
 0x513   : > { %v6354_v47 = vpop.eup %6353  ;;  %v1491_v29 = vmul.f32 %v6352_v61, %v7615_v24  ;;  %v1704_v24 = vsel %vm1183_vm0, %v7640_v10, 0 }
 0x514   : > { %v1490_v9 = vmul.f32 %v6354_v47, %v7624_v30  ;;  %v1665_v30 = vpop.permute.xlu1 %1664 }
 0x515   : > { %v1506_v53 = vpack.c.bf16 %v1492_v59, %v1491_v29  ;;  %v1710_v51 = vsel %vm1183_vm0, %v1665_v30, 0 }
 0x516   : > { %v1505_v52 = vpack.c.bf16 %v1490_v9, %v1489_v54 }
 0x518   : > { %5693 = vmatprep.mubr.bf16.mxu1 %v1505_v52 }
 0x519   : > { %5694 = vmatmul.mubr.bf16.vlgmr.msra.gmra.mrb[16].mxu1 %v1506_v53 }
 0x51a   : > { %5710 = vmatpush3.bf16.xpose.msra.mxu1 %v1695_v1 }
 0x51b   : > { %6038 = vmatprep.subr.msk.bf16.mxu1 %vm1183_vm0, %v7609_v13 }
 0x522   : > { %5712 = vmatpush3.bf16.xpose.msra.mxu1 %v1698_v58 }
 0x523   : > { %6039 = vmatprep.subr.msk.bf16.mxu1 %vm1183_vm0, %v1659_v56 }
 0x52a   : > { %5714 = vmatpush3.bf16.xpose.msra.mxu1 %v1701_v3 }
 0x52b   : > { %6040 = vmatprep.subr.msk.bf16.mxu1 %vm1183_vm0, %v7640_v10 }
 0x532   : > { %5716 = vmatpush3.bf16.xpose.msra.mxu1 %v1704_v24 }
 0x533   : > { %6041 = vmatprep.subr.msk.bf16.mxu1 %vm1183_vm0, %v1663_v27 }
 0x53a   : > { %5718 = vmatpush3.bf16.xpose.msra.mxu1 %v1707_v17 }
 0x53b   : > { %6042 = vmatprep.subr.msk.bf16.mxu1 %vm1183_vm0, %v1665_v30  ;;  %v1454_v13 = vpop.xlane.xlu0 %1453 }
 0x53d   : > { %v1450_v2 = vpop.xlane.xlu1 %1449 }
 0x53e   : > { %6355 = vrcp.f32 %v1450_v2 }
 0x53f   : > { %6357 = vrcp.f32 %v1454_v13  ;;  %v1452_v56 = vpop.xlane.xlu0 %1451 }
 0x540   : > { %6359 = vrcp.f32 %v1452_v56 }
 0x541   : > { %v1456_v38 = vpop.xlane.xlu1 %1455 }
 0x542   : > { %6361 = vrcp.f32 %v1456_v38  ;;  %5720 = vmatpush3.bf16.xpose.msra.mxu1 %v1710_v51 }
 0x543   : > { %v1470_v10 = vpop.xlane.xlu0 %1469 }
 0x545   : > { %v1462_v49 = vpop.xlane.xlu1 %1461 }
 0x547   : > { %v1466_v45 = vpop.xlane.xlu0 %1465 }
 0x548   : > { %v6356_v28 = vpop.eup %6355 }
 0x549   : > { %v6358_v36 = vpop.eup %6357  ;;  %v1458_v61 = vpop.xlane.xlu1 %1457  ;;  %v1493_v59 = vmul.f32 %v6356_v28, %v7645_v22 }
 0x54a   : > { %v6360_v47 = vpop.eup %6359  ;;  %v1495_v1 = vmul.f32 %v6358_v36, %v7642_v16 }
 0x54b   : > { %v1494_v54 = vmul.f32 %v6360_v47, %v7648_v57 }
 0x54c   : > { %v6362_v9 = vpop.eup %6361 }
 0x54d   : > { %v1464_v29 = vpop.xlane.xlu1 %1463  ;;  %v1472_v52 = vpop.xlane.xlu0 %1471  ;;  %v1507_v53 = vpack.c.bf16 %v1494_v54, %v1493_v59  ;;  %v1496_v58 = vmul.f32 %v6362_v9, %v7653_v32 }
 0x54e   : > { %6363 = vrcp.f32 %v1464_v29 }
 0x54f   : > { %5697 = vmatprep.mubr.bf16.mxu1 %v1507_v53  ;;  %v1508_v3 = vpack.c.bf16 %v1496_v58, %v1495_v1  ;;  %6365 = vrcp.f32 %v1458_v61 }
 0x550   : > { %6367 = vrcp.f32 %v1462_v49 }
 0x551   : > { %v1460_v24 = vpop.xlane.xlu1 %1459  ;;  %5698 = vmatmul.mubr.bf16.gmra.mrb[20].mxu1 %v1508_v3  ;;  %v1667_v27 = vpop.permute.xlu0 %1666 }
 0x552   : > { %6369 = vrcp.f32 %v1460_v24  ;;  %6043 = vmatprep.subr.msk.bf16.mxu1 %vm1183_vm0, %v1667_v27  ;;  %v1713_v22 = vsel %vm1183_vm0, %v1667_v27, 0 }
 0x553   : > { %5722 = vmatpush3.bf16.xpose.msra.mxu1 %v1713_v22  ;;  %6371 = vrcp.f32 %v1466_v45 }
 0x555   : > { %v1468_v57 = vpop.xlane.xlu1 %1467  ;;  %v1631_v30 = vpop.permute.xlu0 %1630 }
 0x556   : > { %6373 = vrcp.f32 %v1468_v57 }
 0x557   : > { %6375 = vrcp.f32 %v1472_v52 }
 0x558   : > { %v6364_v16 = vpop.eup %6363  ;;  %6377 = vrcp.f32 %v1470_v10 }
 0x559   : > { %v1669_v32 = vpop.permute.xlu1 %1668  ;;  %v1635_v17 = vpop.permute.xlu0 %1634  ;;  %v1500_v51 = vmul.f32 %v6364_v16, %v7669_v41 }
 0x55a   : > { %v6366_v13 = vpop.eup %6365  ;;  %6044 = vmatprep.subr.msk.bf16.mxu1 %vm1183_vm0, %v1669_v32  ;;  %v1716_v2 = vsel %vm1183_vm0, %v1669_v32, 0 }
 0x55b   : > { %v6368_v56 = vpop.eup %6367  ;;  %5724 = vmatpush3.bf16.xpose.msra.mxu1 %v1716_v2  ;;  %v1497_v36 = vmul.f32 %v6366_v13, %v7666_v21  ;;  %v9064_v2 = vld [vmem:[#allocation37_spill] sm:$0xff] }
 0x55c   : > { %v6370_v38 = vpop.eup %6369  ;;  %v1499_v10 = vmul.f32 %v6368_v56, %v7660_v14 }
 0x55d   : > { %v1633_v49 = vpop.permute.xlu1 %1632  ;;  %v1639_v28 = vpop.permute.xlu0 %1638  ;;  %v1498_v45 = vmul.f32 %v6370_v38, %v7675_v46 }
 0x55e   : > { %v6372_v61 = vpop.eup %6371  ;;  %v1510_v54 = vpack.c.bf16 %v1500_v51, %v1499_v10 }
 0x55f   : > { %v1509_v47 = vpack.c.bf16 %v1498_v45, %v1497_v36  ;;  %v1501_v53 = vmul.f32 %v6372_v61, %v7663_v42  ;;  %v9063_v61 = vld [vmem:[#allocation34_spill] sm:$0xff] }
 0x560   : > { %v6374_v59 = vpop.eup %6373 }
 0x561   : > { %v6376_v9 = vpop.eup %6375  ;;  %v1637_v29 = vpop.permute.xlu1 %1636  ;;  %5701 = vmatprep.mubr.bf16.mxu1 %v1509_v47  ;;  %v1502_v41 = vmul.f32 %v6374_v59, %v7678_v31 }
 0x562   : > { %v1643_v52 = vpop.permute.xlu0 %1642  ;;  %5702 = vmatmul.mubr.bf16.gmra.mrb[24].mxu1 %v1510_v54  ;;  %v6378_v1 = vpop.eup %6377  ;;  %v1504_v21 = vmul.f32 %v6376_v9, %v7671_v35 }
 0x563   : > { %v1511_v58 = vpack.c.bf16 %v1502_v41, %v1501_v53  ;;  %v1503_v14 = vmul.f32 %v6378_v1, %v7656_v37 }
 0x565   : > { %5705 = vmatprep.mubr.bf16.mxu1 %v1511_v58  ;;  %v1641_v3 = vpop.permute.xlu1 %1640  ;;  %v1512_v24 = vpack.c.bf16 %v1504_v21, %v1503_v14 }
 0x566   : > { %v2008_v46 = vpop.permute.xlu0 %2007 }
 0x567   : > { %5741 = vmatprep.subr.bf16.mxu1 %v2008_v46 }
 0x569   : > { %v1645_v27 = vpop.permute.xlu1 %1644 }
 0x56a   : > { %5706 = vmatmul.mubr.bf16.gmra.mrb[28].mxu1 %v1512_v24  ;;  %v2012_v31 = vpop.permute.xlu0 %2011 }
 0x56b   : > { %5725 = vmatprep.mubr.msk.bf16.mxu1 %vm1183_vm0, %v1631_v30 }
 0x56d   : > { %v2010_v42 = vpop.permute.xlu1 %2009 }
 0x56e   : > { %v2016_v37 = vpop.permute.xlu0 %2015 }
 0x571   : > { %v2014_v35 = vpop.permute.xlu1 %2013 }
 0x572   : > { %5726 = vmatmul.mubr.msk.bf16.vlgmr.msra.gmra.mrb[32].mxu1 %vm1183_vm0, %v1633_v49  ;;  %v2020_v57 = vpop.permute.xlu0 %2019 }
 0x573   : > { %5742 = vmatpush3.bf16.msra.mxu1 %v2008_v46  ;;  %5729 = vmatprep.mubr.msk.bf16.mxu1 %vm1183_vm0, %v1635_v17 }
 0x574   : > { %5743 = vmatprep.subr.bf16.mxu1 %v2010_v42 }
 0x575   : > { %v2018_v22 = vpop.permute.xlu1 %2017 }
 0x576   : > { %v7765_v16 = vpop.permute.xlu0 %2422 }
 0x577   : > { %5744 = vmatpush3.bf16.msra.mxu1 %v2010_v42 }
 0x578   : > { %5745 = vmatprep.subr.bf16.mxu1 %v2012_v31 }
 0x579   : > { %v2022_v30 = vpop.permute.xlu1 %2021 }
 0x57a   : > { %5730 = vmatmul.mubr.msk.bf16.gmra.mrb[36].mxu1 %vm1183_vm0, %v1637_v29 }
 0x57b   : > { %5746 = vmatpush3.bf16.msra.mxu1 %v2012_v31  ;;  %5733 = vmatprep.mubr.msk.bf16.mxu1 %vm1183_vm0, %v1639_v28 }
 0x57c   : > { %5747 = vmatprep.subr.bf16.mxu1 %v2014_v35 }
 0x57f   : > { %5748 = vmatpush3.bf16.msra.mxu1 %v2014_v35 }
 0x580   : > { %5749 = vmatprep.subr.bf16.mxu1 %v2016_v37 }
 0x582   : > { %5734 = vmatmul.mubr.msk.bf16.gmra.mrb[40].mxu1 %vm1183_vm0, %v1641_v3 }
 0x583   : > { %5750 = vmatpush3.bf16.msra.mxu1 %v2016_v37  ;;  %5737 = vmatprep.mubr.msk.bf16.mxu1 %vm1183_vm0, %v1643_v52 }
 0x584   : > { %5751 = vmatprep.subr.bf16.mxu1 %v2018_v22 }
 0x587   : > { %5752 = vmatpush3.bf16.msra.mxu1 %v2018_v22 }
 0x588   : > { %5753 = vmatprep.subr.bf16.mxu1 %v2020_v57 }
 0x58a   : > { %5738 = vmatmul.mubr.msk.bf16.gmra.mrb[44].mxu1 %vm1183_vm0, %v1645_v27 }
 0x58b   : > { %5754 = vmatpush3.bf16.msra.mxu1 %v2020_v57 }
 0x58c   : > { %5755 = vmatprep.subr.bf16.mxu1 %v2022_v30 }
 0x58f   : > { %5756 = vmatpush3.bf16.msra.mxu1 %v2022_v30 }
 0x590   : > { %6045 = vmatprep.subr.msk.bf16.mxu1 %vm1183_vm0, %v7765_v16 }
 0x5ec   : > { %v7769_v32 = vpop.f32.mrb[16].mxu1 }
 0x5ed   : > { %v7771_v17 = vpop.f32.mrb[17].mxu1 }
 0x5ee   : > { %v7773_v13 = vpop.f32.mrb[18].mxu1 }
 0x5ef   : > { %v7777_v56 = vpop.f32.mrb[19].mxu1 }
 0x624   : > { %v7781_v51 = vpop.f32.mrb[20].mxu1 }
 0x625   : > { %9053 = vst [vmem:[#allocation42_spill] sm:$0xff] %v7781_v51  ;;  %v7783_v49 = vpop.f32.mrb[21].mxu1 }
 0x626   : > { %v7785_v28 = vpop.f32.mrb[22].mxu1 }
 0x627   : > { %9054 = vst [vmem:[#allocation43_spill] sm:$0xff] %v7785_v28  ;;  %v7789_v45 = vpop.f32.mrb[23].mxu1 }
 0x635   : > { %v7793_v10 = vpop.f32.mrb[24].mxu1 }
 0x636   : > { %9055 = vst [vmem:[#allocation44_spill] sm:$0xff] %v7793_v10  ;;  %v7795_v47 = vpop.f32.mrb[25].mxu1 }
 0x637   : > { %9056 = vst [vmem:[#allocation45_spill] sm:$0xff] %v7795_v47  ;;  %v7797_v59 = vpop.f32.mrb[26].mxu1 }
 0x638   : > { %9057 = vst [vmem:[#allocation46_spill] sm:$0xff] %v7797_v59  ;;  %v7801_v9 = vpop.f32.mrb[27].mxu1 }
 0x639   : > { %9058 = vst [vmem:[#allocation47_spill] sm:$0xff] %v7801_v9 }
 0x63d   : > { %v7805_v52 = vpop.f32.mrb[28].mxu1 }
 0x63e   : > { %9059 = vst [vmem:[#allocation48_spill] sm:$0xff] %v7805_v52  ;;  %v7807_v53 = vpop.f32.mrb[29].mxu1 }
 0x63f   : > { %9060 = vst [vmem:[#allocation49_spill] sm:$0xff] %v7807_v53  ;;  %v7809_v41 = vpop.f32.mrb[30].mxu1  ;;  %v9072_v53 = vld [vmem:[#allocation29_spill] sm:$0xff] }
 0x640   : > { %9061 = vst [vmem:[#allocation50_spill] sm:$0xff] %v7809_v41  ;;  %v7813_v58 = vpop.f32.mrb[31].mxu1 }
 0x641   : > { %9062 = vst [vmem:[#allocation51_spill] sm:$0xff] %v7813_v58 }
 0x645   : > { %v5727_v46 = vpop.f32.mrb[32].mxu1 }
 0x646   : > { %v1817_v14 = vmul.f32 0.088388346, %v5727_v46  ;;  %v1752_v3 = vpop.f32.mrb[33].mxu1 }
 0x647   : > { %v5728_v24 = vpop.f32.mrb[34].mxu1  ;;  %v1815_v27 = vmul.f32 0.088388346, %v1752_v3 }
 0x648   : > { %v1755_v42 = vpop.f32.mrb[35].mxu1  ;;  %v7818_v31 = vadd.f32 %v1817_v14, %v7477_v44  ;;  %v1818_v22 = vmul.f32 0.088388346, %v5728_v24 }
 0x649   : > { %v1816_v35 = vmul.f32 0.088388346, %v1755_v42  ;;  %v7825_v57 = vadd.f32 %v1815_v27, %v7491_v60 }
 0x64a   : > { %1851 = vmax.xlane.f32.xlu0 %v7818_v31  ;;  %v1834_v42 = vadd.f32 %v1818_v22, %v7483_v4 }
 0x64b   : > { %v7822_v37 = vadd.f32 %v1816_v35, %v7500_v63 }
 0x64d   : > { %1849 = vmax.xlane.f32.xlu1 %v7822_v37  ;;  %v5731_v30 = vpop.f32.mrb[36].mxu1 }
 0x64e   : > { %1847 = vmax.xlane.f32.xlu0 %v7825_v57  ;;  %v1768_v46 = vpop.f32.mrb[37].mxu1  ;;  %v1821_v1 = vmul.f32 0.088388346, %v5731_v30 }
 0x64f   : > { %v5732_v3 = vpop.f32.mrb[38].mxu1  ;;  %v1819_v24 = vmul.f32 0.088388346, %v1768_v46 }
 0x650   : > { %v1822_v14 = vmul.f32 0.088388346, %v5732_v3  ;;  %v1771_v21 = vpop.f32.mrb[39].mxu1  ;;  %v7835_v27 = vadd.f32 %v1821_v1, %v7509_v40 }
 0x651   : > { %v1820_v54 = vmul.f32 0.088388346, %v1771_v21  ;;  %v7843_v46 = vadd.f32 %v1819_v24, %v9063_v61 }
 0x652   : > { %1853 = vmax.xlane.f32.xlu0 %v1834_v42  ;;  %v7831_v35 = vadd.f32 %v1822_v14, %v7518_v23 }
 0x653   : > { %v7839_v30 = vadd.f32 %v1820_v54, %v7536_v50 }
 0x654   : > { %1861 = vmax.xlane.f32.xlu1 %v7831_v35 }
 0x655   : > { %v5735_v29 = vpop.f32.mrb[40].mxu1 }
 0x656   : > { %1859 = vmax.xlane.f32.xlu0 %v7835_v27  ;;  %v1784_v36 = vpop.f32.mrb[41].mxu1  ;;  %v1825_v22 = vmul.f32 0.088388346, %v5735_v29 }
 0x657   : > { %v5736_v3 = vpop.f32.mrb[42].mxu1  ;;  %v1823_v54 = vmul.f32 0.088388346, %v1784_v36  ;;  %v9068_v36 = vld [vmem:[#allocation40_spill] sm:$0xff] }
 0x658   : > { %v1826_v21 = vmul.f32 0.088388346, %v5736_v3  ;;  %1857 = vmax.xlane.f32.xlu1 %v7839_v30  ;;  %v1787_v14 = vpop.f32.mrb[43].mxu1  ;;  %v7850_v25 = vadd.f32 %v1825_v22, %v9065_v11  ;;  %v9066_v3 = vld [vmem:[#allocation39_spill] sm:$0xff] }
 0x659   : > { %v1824_v1 = vmul.f32 0.088388346, %v1787_v14 }
 0x65a   : > { %v7846_v38 = vadd.f32 %v1826_v21, %v9064_v2  ;;  %1855 = vmax.xlane.f32.xlu0 %v7843_v46  ;;  %v7858_v21 = vadd.f32 %v1823_v54, %v9067_v39  ;;  %v9070_v54 = vld [vmem:[#allocation23_spill] sm:$0xff] }
 0x65b   : > { %v7854_v26 = vadd.f32 %v1824_v1, %v9066_v3  ;;  %v9069_v1 = vld [vmem:[#allocation41_spill] sm:$0xff] }
 0x65c   : > { %1869 = vmax.xlane.f32.xlu1 %v7846_v38 }
 0x65d   : > { %v5739_v29 = vpop.f32.mrb[44].mxu1 }
 0x65e   : > { %1867 = vmax.xlane.f32.xlu0 %v7850_v25  ;;  %v1800_v24 = vpop.f32.mrb[45].mxu1  ;;  %v1829_v14 = vmul.f32 0.088388346, %v5739_v29  ;;  %v9071_v29 = vld [vmem:[#allocation20_spill] sm:$0xff] }
 0x65f   : > { %v5740_v15 = vpop.f32.mrb[46].mxu1  ;;  %v1827_v41 = vmul.f32 0.088388346, %v1800_v24  ;;  %v9073_v24 = vld [vmem:[#allocation30_spill] sm:$0xff] }
 0x660   : > { %1865 = vmax.xlane.f32.xlu1 %v7854_v26  ;;  %v1803_v52 = vpop.f32.mrb[47].mxu1  ;;  %v7863_v22 = vadd.f32 %v1829_v14, %v9068_v36  ;;  %v1830_v39 = vmul.f32 0.088388346, %v5740_v15 }
 0x661   : > { %v7867_v3 = vadd.f32 %v1827_v41, %v9069_v1  ;;  %v1828_v14 = vmul.f32 0.088388346, %v1803_v52  ;;  %v7882_v41 = vpop.permute.xlu1 %2424 }
 0x662   : > { %1863 = vmax.xlane.f32.xlu0 %v7858_v21  ;;  %v7875_v58 = vadd.f32 %v1830_v39, %v9072_v53 }
 0x663   : > { %v7879_v36 = vadd.f32 %v1828_v14, %v9073_v24 }
 0x666   : > { %1875 = vmax.xlane.f32.xlu0 %v7863_v22 }
 0x66a   : > { %1871 = vmax.xlane.f32.xlu0 %v7867_v3 }
 0x671   : > { %2428 = vrot.lane.b32.xlu1 %v9070_v54, %s6853_s1 }
 0x680   : > { %2426 = vrot.lane.b32.xlu0 %v9071_v29, %s6853_s1 }
 0x695   : > { %1877 = vmax.xlane.f32.xlu1 %v7875_v58 }
 0x699   : > { %1873 = vmax.xlane.f32.xlu1 %v7879_v36 }
 0x6d7   : > { %v1852_v1 = vpop.xlane.xlu0 %1851 }
 0x6d8   : > { %v1881_v11 = vsub.f32 %v7818_v31, %v1852_v1 }
 0x6da   : > { %v1899_v10 = vmul.f32 1.442695, %v1881_v11  ;;  %v1850_v59 = vpop.xlane.xlu1 %1849 }
 0x6db   : > { %v1880_v15 = vsub.f32 %v7822_v37, %v1850_v59  ;;  %v1848_v2 = vpop.xlane.xlu0 %1847  ;;  %v9074_v59 = vld [vmem:[#allocation26_spill] sm:$0xff] }
 0x6dc   : > { %6379 = vpow2.f32 %v1899_v10  ;;  %v1879_v39 = vsub.f32 %v7825_v57, %v1848_v2 }
 0x6dd   : > { %v1897_v52 = vmul.f32 1.442695, %v1880_v15 }
 0x6de   : > { %v1895_v53 = vmul.f32 1.442695, %v1879_v39 }
 0x6df   : > { %6381 = vpow2.f32 %v1897_v52  ;;  %v1854_v14 = vpop.xlane.xlu0 %1853 }
 0x6e0   : > { %6383 = vpow2.f32 %v1895_v53  ;;  %v1882_v24 = vsub.f32 %v1834_v42, %v1854_v14 }
 0x6e1   : > { %v1862_v37 = vpop.xlane.xlu1 %1861 }
 0x6e2   : > { %v1901_v50 = vmul.f32 1.442695, %v1882_v24  ;;  %v1886_v23 = vsub.f32 %v7831_v35, %v1862_v37 }
 0x6e3   : > { %v1860_v10 = vpop.xlane.xlu0 %1859 }
 0x6e4   : > { %6385 = vpow2.f32 %v1901_v50  ;;  %v9075_v50 = vld [vmem:[#allocation27_spill] sm:$0xff]  ;;  %v1885_v42 = vsub.f32 %v7835_v27, %v1860_v10  ;;  %v1909_v61 = vmul.f32 1.442695, %v1886_v23 }
 0x6e5   : > { %v1858_v1 = vpop.xlane.xlu1 %1857 }
 0x6e6   : > { %v7887_v47 = vpop.eup %6379  ;;  %v1907_v15 = vmul.f32 1.442695, %v1885_v42  ;;  %v1884_v52 = vsub.f32 %v7839_v30, %v1858_v1 }
 0x6e7   : > { %1931 = vadd.xlane.f32.xlu1 %v7887_v47  ;;  %v1856_v53 = vpop.xlane.xlu0 %1855 }
 0x6e8   : > { %v1883_v39 = vsub.f32 %v7843_v46, %v1856_v53  ;;  %6387 = vpow2.f32 %v1907_v15  ;;  %v1905_v51 = vmul.f32 1.442695, %v1884_v52 }
 0x6e9   : > { %v7890_v11 = vpop.eup %6381  ;;  %v1870_v14 = vpop.xlane.xlu1 %1869 }
 0x6ea   : > { %v7892_v31 = vpop.eup %6383  ;;  %1929 = vadd.xlane.f32.xlu0 %v7890_v11  ;;  %v1903_v40 = vmul.f32 1.442695, %v1883_v39  ;;  %v1890_v35 = vsub.f32 %v7846_v38, %v1870_v14 }
 0x6eb   : > { %1927 = vadd.xlane.f32.xlu1 %v7892_v31  ;;  %v1868_v57 = vpop.xlane.xlu0 %1867 }
 0x6ec   : > { %v1889_v28 = vsub.f32 %v7850_v25, %v1868_v57  ;;  %6389 = vpow2.f32 %v1903_v40  ;;  %v1917_v23 = vmul.f32 1.442695, %v1890_v35 }
 0x6ed   : > { %v1866_v4 = vpop.xlane.xlu1 %1865  ;;  %6391 = vpow2.f32 %v1905_v51 }
 0x6ee   : > { %v7896_v2 = vpop.eup %6385  ;;  %v1915_v10 = vmul.f32 1.442695, %v1889_v28  ;;  %6393 = vpow2.f32 %v1909_v61  ;;  %v1888_v51 = vsub.f32 %v7854_v26, %v1866_v4 }
 0x6ef   : > { %1933 = vadd.xlane.f32.xlu1 %v7896_v2  ;;  %v1864_v24 = vpop.xlane.xlu0 %1863 }
 0x6f0   : > { %v1887_v46 = vsub.f32 %v7858_v21, %v1864_v24  ;;  %6395 = vpow2.f32 %v1915_v10 }
 0x6f1   : > { %v7914_v25 = vpop.permute.xlu1 %2428 }
 0x6f2   : > { %v1911_v37 = vmul.f32 1.442695, %v1887_v46  ;;  %v7912_v1 = vpop.eup %6387 }
 0x6f3   : > { %v1876_v9 = vpop.xlane.xlu0 %1875 }
 0x6f4   : > { %v1893_v27 = vsub.f32 %v7863_v22, %v1876_v9 }
 0x6f6   : > { %v1923_v30 = vmul.f32 1.442695, %v1893_v27  ;;  %v7918_v28 = vpop.eup %6389 }
 0x6f7   : > { %v1872_v53 = vpop.xlane.xlu0 %1871  ;;  %v7920_v9 = vpop.eup %6391 }
 0x6f8   : > { %v1891_v42 = vsub.f32 %v7867_v3, %v1872_v53  ;;  %6397 = vpow2.f32 %v1923_v30  ;;  %v1913_v3 = vmul.f32 1.442695, %v1888_v51  ;;  %v7925_v22 = vpop.eup %6393 }
 0x6f9   : > { %6399 = vpow2.f32 %v1911_v37 }
 0x6fa   : > { %v1919_v40 = vmul.f32 1.442695, %v1891_v42  ;;  %v7927_v26 = vpop.eup %6395 }
 0x6fc   : > { %6401 = vpow2.f32 %v1919_v40  ;;  %v6195_v40 = vld [vmem:[#allocation7 + $0x10] sm:$0xff]  }
 0x6fd   : > { %6403 = vpow2.f32 %v1917_v23  ;;  %5773 = vmatprep.subr.bf16.mxu0 %v6195_v40 }
 0x6fe   : > { %5774 = vmatpush3.bf16.msra.mxu0 %v6195_v40  ;;  %v6196_v40 = vld [vmem:[#allocation7 + $0x18] sm:$0xff]  }
 0x6ff   : > { %5775 = vmatprep.subr.bf16.mxu0 %v6196_v40 }
 0x700   : > { %2430 = vrot.lane.b32.xlu0 %v9074_v59, %s6853_s1  ;;  %2432 = vrot.lane.b32.xlu1 %v9075_v50, %s6853_s1 }
 0x702   : > { %v7932_v24 = vpop.eup %6397  ;;  %5776 = vmatpush3.bf16.msra.mxu0 %v6196_v40  ;;  %v9077_v40 = vpack.c.bf16 %v7777_v56, %v7771_v17  ;;  %v9078_v17 = vpack.c.bf16 %v7773_v13, %v7769_v32 }
 0x703   : > { %v7934_v15 = vpop.eup %6399 }
 0x706   : > { %v7938_v39 = vpop.eup %6401 }
 0x707   : > { %v7940_v52 = vpop.eup %6403 }
 0x71f   : > { %1939 = vadd.xlane.f32.xlu0 %v7912_v1 }
 0x722   : > { %v1878_v61 = vpop.xlane.xlu1 %1877 }
 0x723   : > { %v1894_v38 = vsub.f32 %v7875_v58, %v1878_v61  ;;  %1935 = vadd.xlane.f32.xlu0 %v7918_v28 }
 0x724   : > { %1937 = vadd.xlane.f32.xlu1 %v7920_v9 }
 0x725   : > { %v1925_v21 = vmul.f32 1.442695, %v1894_v38 }
 0x726   : > { %v1874_v57 = vpop.xlane.xlu1 %1873 }
 0x727   : > { %6405 = vpow2.f32 %v1925_v21  ;;  %v1892_v4 = vsub.f32 %v7879_v36, %v1874_v57  ;;  %1941 = vadd.xlane.f32.xlu0 %v7925_v22 }
 0x728   : > { %1947 = vadd.xlane.f32.xlu1 %v7927_v26  ;;  %6407 = vpow2.f32 %v1913_v3 }
 0x729   : > { %v1921_v58 = vmul.f32 1.442695, %v1892_v4 }
 0x72b   : > { %1955 = vadd.xlane.f32.xlu0 %v7932_v24  ;;  %6409 = vpow2.f32 %v1921_v58 }
 0x72c   : > { %1943 = vadd.xlane.f32.xlu1 %v7934_v15 }
 0x72f   : > { %1951 = vadd.xlane.f32.xlu0 %v7938_v39 }
 0x730   : > { %1949 = vadd.xlane.f32.xlu1 %v7940_v52 }
 0x731   : > { %v7944_v36 = vpop.eup %6405 }
 0x732   : > { %v7946_v14 = vpop.eup %6407 }
 0x733   : > { %1957 = vadd.xlane.f32.xlu0 %v7944_v36 }
 0x734   : > { %1945 = vadd.xlane.f32.xlu1 %v7946_v14 }
 0x735   : > { %v7950_v27 = vpop.eup %6409 }
 0x738   : > { %1953 = vadd.xlane.f32.xlu1 %v7950_v27 }
 0x749   : > { %2436 = vrot.lane.b32.xlu1 %v7433_v48, %s6853_s1  ;;  %2434 = vrot.lane.b32.xlu0 %v7425_v7, %s6853_s1 }
 0x74d   : > { %2408 = vrot.lane.b32.xlu1 %v7354_v18, %s6853_s1  ;;  %2406 = vrot.lane.b32.xlu0 %v7337_v33, %s6853_s1 }
 0x751   : > { %2412 = vrot.lane.b32.xlu1 %v7388_v43, %s6853_s1  ;;  %2410 = vrot.lane.b32.xlu0 %v7372_v34, %s6853_s1 }
 0x755   : > { %2416 = vrot.lane.b32.xlu1 %v7415_v62, %s6853_s1  ;;  %2414 = vrot.lane.b32.xlu0 %v7404_v55, %s6853_s1 }
 0x759   : > { %2420 = vrot.lane.b32.xlu1 %v7431_v20, %s6853_s1  ;;  %2418 = vrot.lane.b32.xlu0 %v7423_v5, %s6853_s1 }
 0x75d   : > { %3067 = vrot.lane.b32.xlu1 %v7357_v19, %s6854_s18  ;;  %3065 = vrot.lane.b32.xlu0 %v7339_v0, %s6854_s18  ;;  %v2427_v0 = vpop.permute.xlu0 %2426 }
 0x761   : > { %3071 = vrot.lane.b32.xlu1 %v9070_v54, %s6854_s18  ;;  %3069 = vrot.lane.b32.xlu0 %v9071_v29, %s6854_s18 }
 0x765   : > { %3075 = vrot.lane.b32.xlu1 %v9075_v50, %s6854_s18  ;;  %3073 = vrot.lane.b32.xlu0 %v9074_v59, %s6854_s18  ;;  %v2463_v50 = vsel %vm1183_vm0, %v7765_v16, 0 }
 0x769   : > { %3079 = vrot.lane.b32.xlu1 %v7433_v48, %s6854_s18  ;;  %3077 = vrot.lane.b32.xlu0 %v7425_v7, %s6854_s18 }
 0x76d   : > { %3051 = vrot.lane.b32.xlu1 %v7354_v18, %s6854_s18  ;;  %3049 = vrot.lane.b32.xlu0 %v7337_v33, %s6854_s18 }
 0x771   : > { %3055 = vrot.lane.b32.xlu1 %v7388_v43, %s6854_s18  ;;  %3053 = vrot.lane.b32.xlu0 %v7372_v34, %s6854_s18 }
 0x774   : > { %v1932_v19 = vpop.xlane.xlu1 %1931 }
 0x775   : > { %3059 = vrot.lane.b32.xlu1 %v7415_v62, %s6854_s18  ;;  %3057 = vrot.lane.b32.xlu0 %v7404_v55, %s6854_s18 }
 0x777   : > { %v1930_v7 = vpop.xlane.xlu0 %1929 }
 0x778   : > { %6411 = vrcp.f32 %v1930_v7  ;;  %v1928_v18 = vpop.xlane.xlu1 %1927 }
 0x779   : > { %6413 = vrcp.f32 %v1928_v18  ;;  %3063 = vrot.lane.b32.xlu1 %v7431_v20, %s6854_s18  ;;  %3061 = vrot.lane.b32.xlu0 %v7423_v5, %s6854_s18 }
 0x77a   : > { %6415 = vrcp.f32 %v1932_v19 }
 0x77b   : > { %v2431_v16 = vpop.permute.xlu0 %2430 }
 0x77c   : > { %v1934_v33 = vpop.xlane.xlu1 %1933 }
 0x77d   : > { %6417 = vrcp.f32 %v1934_v33  ;;  %2769 = vrot.lane.b32.xlu1 %v7349_v6, %s6853_s1  ;;  %2767 = vrot.lane.b32.xlu0 %v7351_v8, %s6853_s1 }
 0x781   : > { %2771 = vrot.lane.b32.xlu0 %v7369_v12, %s6853_s1 }
 0x782   : > { %v6412_v34 = vpop.eup %6411 }
 0x783   : > { %v6414_v43 = vpop.eup %6413  ;;  %v1976_v55 = vmul.f32 %v6412_v34, %v7890_v11  ;;  %v2466_v11 = vsel %vm1183_vm0, %v7882_v41, 0 }
 0x784   : > { %v1975_v62 = vmul.f32 %v6414_v43, %v7892_v31  ;;  %v6416_v20 = vpop.eup %6415  ;;  %v2472_v31 = vsel %vm1183_vm0, %v7914_v25, 0 }
 0x785   : > { %v1977_v54 = vmul.f32 %v6416_v20, %v7887_v47  ;;  %v2469_v47 = vsel %vm1183_vm0, %v2427_v0, 0 }
 0x786   : > { %v1991_v5 = vpack.c.bf16 %v1976_v55, %v1975_v62 }
 0x787   : > { %v6418_v48 = vpop.eup %6417 }
 0x788   : > { %v1978_v29 = vmul.f32 %v6418_v48, %v7896_v2  ;;  %5757 = vmatprep.mubr.bf16.mxu1 %v1991_v5  ;;  %v2475_v2 = vsel %vm1183_vm0, %v2431_v16, 0 }
 0x78a   : > { %v1992_v59 = vpack.c.bf16 %v1978_v29, %v1977_v54 }
 0x78c   : > { %5758 = vmatmul.mubr.bf16.vlgmr.msra.gmra.mrb[48].mxu1 %v1992_v59 }
 0x78d   : > { %5814 = vmatpush3.bf16.xpose.msra.mxu1 %v2463_v50 }
 0x78e   : > { %6046 = vmatprep.subr.msk.bf16.mxu1 %vm1183_vm0, %v7882_v41  ;;  %v2433_v41 = vpop.permute.xlu1 %2432 }
 0x78f   : > { %v2478_v30 = vsel %vm1183_vm0, %v2433_v41, 0 }
 0x795   : > { %5816 = vmatpush3.bf16.xpose.msra.mxu1 %v2466_v11 }
 0x796   : > { %6047 = vmatprep.subr.msk.bf16.mxu1 %vm1183_vm0, %v2427_v0 }
 0x79d   : > { %5818 = vmatpush3.bf16.xpose.msra.mxu1 %v2469_v47 }
 0x79e   : > { %6048 = vmatprep.subr.msk.bf16.mxu1 %vm1183_vm0, %v7914_v25 }
 0x7a5   : > { %5820 = vmatpush3.bf16.xpose.msra.mxu1 %v2472_v31 }
 0x7a6   : > { %6049 = vmatprep.subr.msk.bf16.mxu1 %vm1183_vm0, %v2431_v16 }
 0x7ac   : > { %v1940_v10 = vpop.xlane.xlu0 %1939 }
 0x7ad   : > { %5822 = vmatpush3.bf16.xpose.msra.mxu1 %v2475_v2 }
 0x7ae   : > { %6050 = vmatprep.subr.msk.bf16.mxu1 %vm1183_vm0, %v2433_v41 }
 0x7b0   : > { %v1936_v46 = vpop.xlane.xlu0 %1935 }
 0x7b1   : > { %6419 = vrcp.f32 %v1936_v46  ;;  %v1938_v53 = vpop.xlane.xlu1 %1937 }
 0x7b2   : > { %6421 = vrcp.f32 %v1938_v53 }
 0x7b3   : > { %6423 = vrcp.f32 %v1940_v10 }
 0x7b4   : > { %v1942_v42 = vpop.xlane.xlu0 %1941 }
 0x7b5   : > { %5824 = vmatpush3.bf16.xpose.msra.mxu1 %v2478_v30  ;;  %6425 = vrcp.f32 %v1942_v42  ;;  %v1948_v35 = vpop.xlane.xlu1 %1947 }
 0x7b8   : > { %v1956_v37 = vpop.xlane.xlu0 %1955 }
 0x7b9   : > { %v1944_v25 = vpop.xlane.xlu1 %1943 }
 0x7bb   : > { %v6420_v23 = vpop.eup %6419 }
 0x7bc   : > { %v6422_v51 = vpop.eup %6421  ;;  %v1952_v61 = vpop.xlane.xlu0 %1951  ;;  %v1979_v38 = vmul.f32 %v6420_v23, %v7918_v28 }
 0x7bd   : > { %v6424_v3 = vpop.eup %6423  ;;  %v1950_v21 = vpop.xlane.xlu1 %1949  ;;  %v1980_v57 = vmul.f32 %v6422_v51, %v7920_v9 }
 0x7be   : > { %6427 = vrcp.f32 %v1950_v21  ;;  %v1981_v19 = vmul.f32 %v6424_v3, %v7912_v1 }
 0x7bf   : > { %v6426_v4 = vpop.eup %6425  ;;  %v1993_v58 = vpack.c.bf16 %v1980_v57, %v1979_v38  ;;  %6429 = vrcp.f32 %v1944_v25 }
 0x7c0   : > { %v1958_v0 = vpop.xlane.xlu0 %1957  ;;  %v1982_v7 = vmul.f32 %v6426_v4, %v7925_v22  ;;  %6431 = vrcp.f32 %v1948_v35 }
 0x7c1   : > { %v1946_v18 = vpop.xlane.xlu1 %1945  ;;  %5761 = vmatprep.mubr.bf16.mxu1 %v1993_v58 }
 0x7c2   : > { %6433 = vrcp.f32 %v1946_v18  ;;  %v1994_v28 = vpack.c.bf16 %v1982_v7, %v1981_v19 }
 0x7c3   : > { %6435 = vrcp.f32 %v1952_v61 }
 0x7c4   : > { %5762 = vmatmul.mubr.bf16.gmra.mrb[52].mxu1 %v1994_v28  ;;  %v2435_v33 = vpop.permute.xlu0 %2434 }
 0x7c5   : > { %v1954_v34 = vpop.xlane.xlu1 %1953  ;;  %6051 = vmatprep.subr.msk.bf16.mxu1 %vm1183_vm0, %v2435_v33  ;;  %v2481_v9 = vsel %vm1183_vm0, %v2435_v33, 0 }
 0x7c6   : > { %6437 = vrcp.f32 %v1954_v34  ;;  %5826 = vmatpush3.bf16.xpose.msra.mxu1 %v2481_v9 }
 0x7c7   : > { %6439 = vrcp.f32 %v1958_v0 }
 0x7c8   : > { %v2407_v43 = vpop.permute.xlu0 %2406  ;;  %v6428_v1 = vpop.eup %6427  ;;  %6441 = vrcp.f32 %v1956_v37 }
 0x7c9   : > { %v2437_v22 = vpop.permute.xlu1 %2436  ;;  %v6430_v55 = vpop.eup %6429  ;;  %v1986_v48 = vmul.f32 %v6428_v1, %v7940_v52 }
 0x7ca   : > { %6052 = vmatprep.subr.msk.bf16.mxu1 %vm1183_vm0, %v2437_v22  ;;  %v6432_v62 = vpop.eup %6431  ;;  %v2484_v29 = vsel %vm1183_vm0, %v2437_v22, 0  ;;  %v1983_v59 = vmul.f32 %v6430_v55, %v7934_v15 }
 0x7cb   : > { %v1985_v47 = vmul.f32 %v6432_v62, %v7927_v26  ;;  %v9076_v62 = vmov 0  }
 0x7cc   : > { %v6434_v20 = vpop.eup %6433  ;;  %v2411_v5 = vpop.permute.xlu0 %2410 }
 0x7cd   : > { %v2409_v54 = vpop.permute.xlu1 %2408  ;;  %v1984_v50 = vmul.f32 %v6434_v20, %v7946_v14  ;;  %v6436_v11 = vpop.eup %6435  ;;  %v1996_v10 = vpack.c.bf16 %v1986_v48, %v1985_v47 }
 0x7ce   : > { %5828 = vmatpush3.bf16.xpose.msra.mxu1 %v2484_v29  ;;  %v1987_v52 = vmul.f32 %v6436_v11, %v7938_v39 }
 0x7cf   : > { %v1995_v31 = vpack.c.bf16 %v1984_v50, %v1983_v59  ;;  %v6198_v50 = vld [vmem:[#allocation7 + $0x8] sm:$0xff]  }
 0x7d0   : > { %v6438_v16 = vpop.eup %6437  ;;  %v2415_v2 = vpop.permute.xlu0 %2414 }
 0x7d1   : > { %v6440_v41 = vpop.eup %6439  ;;  %v2413_v46 = vpop.permute.xlu1 %2412  ;;  %5765 = vmatprep.mubr.bf16.mxu1 %v1995_v31  ;;  %v1988_v53 = vmul.f32 %v6438_v16, %v7950_v27 }
 0x7d2   : > { %5766 = vmatmul.mubr.bf16.gmra.mrb[56].mxu1 %v1996_v10  ;;  %v6442_v30 = vpop.eup %6441  ;;  %v1990_v14 = vmul.f32 %v6440_v41, %v7944_v36 }
 0x7d3   : > { %v1997_v15 = vpack.c.bf16 %v1988_v53, %v1987_v52  ;;  %v1989_v26 = vmul.f32 %v6442_v30, %v7932_v24  ;;  %v6197_v24 = vld [vmem:[#allocation7] sm:$0xff]  }
 0x7d4   : > { %v2419_v42 = vpop.permute.xlu0 %2418  ;;  %5793 = vmatprep.subr.bf16.mxu0 %v6197_v24 }
 0x7d5   : > { %5769 = vmatprep.mubr.bf16.mxu1 %v1997_v15  ;;  %v2417_v35 = vpop.permute.xlu1 %2416  ;;  %v1998_v25 = vpack.c.bf16 %v1990_v14, %v1989_v26 }
 0x7d8   : > { %v3066_v37 = vpop.permute.xlu0 %3065 }
 0x7d9   : > { %6053 = vmatprep.subr.msk.bf16.mxu1 %vm1183_vm0, %v3066_v37  ;;  %v2421_v39 = vpop.permute.xlu1 %2420  ;;  %v3106_v27 = vsel %vm1183_vm0, %v3066_v37, 0 }
 0x7da   : > { %5770 = vmatmul.mubr.bf16.gmra.mrb[60].mxu1 %v1998_v25 }
 0x7db   : > { %5829 = vmatprep.mubr.msk.bf16.mxu1 %vm1183_vm0, %v2407_v43 }
 0x7dc   : > { %v3070_v36 = vpop.permute.xlu0 %3069 }
 0x7dd   : > { %v3068_v23 = vpop.permute.xlu1 %3067  ;;  %v3112_v38 = vsel %vm1183_vm0, %v3070_v36, 0 }
 0x7de   : > { %v3109_v51 = vsel %vm1183_vm0, %v3068_v23, 0 }
 0x7e0   : > { %v3074_v61 = vpop.permute.xlu0 %3073 }
 0x7e1   : > { %v3072_v3 = vpop.permute.xlu1 %3071  ;;  %v3118_v58 = vsel %vm1183_vm0, %v3074_v61, 0 }
 0x7e2   : > { %5830 = vmatmul.mubr.msk.bf16.vlgmr.msra.gmra.mrb[64].mxu1 %vm1183_vm0, %v2409_v54  ;;  %v3115_v4 = vsel %vm1183_vm0, %v3072_v3, 0 }
 0x7e3   : > { %5898 = vmatpush3.bf16.xpose.msra.mxu1 %v3106_v27  ;;  %5833 = vmatprep.mubr.msk.bf16.mxu1 %vm1183_vm0, %v2411_v5 }
 0x7e4   : > { %6054 = vmatprep.subr.msk.bf16.mxu1 %vm1183_vm0, %v3068_v23  ;;  %v3078_v21 = vpop.permute.xlu0 %3077 }
 0x7e5   : > { %v3076_v0 = vpop.permute.xlu1 %3075  ;;  %v3124_v7 = vsel %vm1183_vm0, %v3078_v21, 0 }
 0x7e6   : > { %v3121_v19 = vsel %vm1183_vm0, %v3076_v0, 0 }
 0x7e8   : > { %v3050_v57 = vpop.permute.xlu0 %3049 }
 0x7e9   : > { %v3080_v18 = vpop.permute.xlu1 %3079 }
 0x7ea   : > { %5834 = vmatmul.mubr.msk.bf16.gmra.mrb[68].mxu1 %vm1183_vm0, %v2413_v46  ;;  %v3127_v28 = vsel %vm1183_vm0, %v3080_v18, 0 }
 0x7eb   : > { %5900 = vmatpush3.bf16.xpose.msra.mxu1 %v3109_v51  ;;  %5837 = vmatprep.mubr.msk.bf16.mxu1 %vm1183_vm0, %v2415_v2 }
 0x7ec   : > { %6055 = vmatprep.subr.msk.bf16.mxu1 %vm1183_vm0, %v3070_v36  ;;  %v3054_v34 = vpop.permute.xlu0 %3053 }
 0x7ed   : > { %v3052_v33 = vpop.permute.xlu1 %3051 }
 0x7f0   : > { %v3058_v43 = vpop.permute.xlu0 %3057 }
 0x7f1   : > { %v3056_v9 = vpop.permute.xlu1 %3055 }
 0x7f2   : > { %5838 = vmatmul.mubr.msk.bf16.gmra.mrb[72].mxu1 %vm1183_vm0, %v2417_v35 }
 0x7f3   : > { %5902 = vmatpush3.bf16.xpose.msra.mxu1 %v3112_v38  ;;  %5841 = vmatprep.mubr.msk.bf16.mxu1 %vm1183_vm0, %v2419_v42 }
 0x7f4   : > { %6056 = vmatprep.subr.msk.bf16.mxu1 %vm1183_vm0, %v3072_v3  ;;  %v3062_v22 = vpop.permute.xlu0 %3061 }
 0x7f5   : > { %v3060_v1 = vpop.permute.xlu1 %3059 }
 0x7f8   : > { %v2768_v11 = vpop.permute.xlu0 %2767 }
 0x7f9   : > { %v3064_v55 = vpop.permute.xlu1 %3063 }
 0x7fa   : > { %5842 = vmatmul.mubr.msk.bf16.gmra.mrb[76].mxu1 %vm1183_vm0, %v2421_v39 }
 0x7fb   : > { %5904 = vmatpush3.bf16.xpose.msra.mxu1 %v3115_v4  ;;  %5913 = vmatprep.mubr.msk.bf16.mxu1 %vm1183_vm0, %v3050_v57 }
 0x7fc   : > { %6057 = vmatprep.subr.msk.bf16.mxu1 %vm1183_vm0, %v3074_v61 }
 0x7fd   : > { %v2770_v56 = vpop.permute.xlu1 %2769 }
 0x803   : > { %5906 = vmatpush3.bf16.xpose.msra.mxu1 %v3118_v58  ;;  %v9079_v58 = vpack.c.bf16 %v7789_v45, %v7783_v49  ;;  %v9082_v45 = vld [vmem:[#allocation43_spill] sm:$0xff] }
 0x804   : > { %6058 = vmatprep.subr.msk.bf16.mxu1 %vm1183_vm0, %v3076_v0 }
 0x80b   : > { %5908 = vmatpush3.bf16.xpose.msra.mxu1 %v3121_v19 }
 0x80c   : > { %6059 = vmatprep.subr.msk.bf16.mxu1 %vm1183_vm0, %v3078_v21 }
 0x813   : > { %5910 = vmatpush3.bf16.xpose.msra.mxu1 %v3124_v7 }
 0x814   : > { %6060 = vmatprep.subr.msk.bf16.mxu1 %vm1183_vm0, %v3080_v18  ;;  %v2772_v18 = vpop.permute.xlu0 %2771 }
 0x81b   : > { %5912 = vmatpush3.bf16.xpose.msra.mxu1 %v3127_v28  ;;  %v9080_v28 = vld [vmem:[#allocation31_spill] sm:$0xff] }
 0x822   : > { %5914 = vmatmul.mubr.msk.bf16.vlgmr.msra.gmra.mrb[80].mxu1 %vm1183_vm0, %v3052_v33 }
 0x823   : > { %5917 = vmatprep.mubr.msk.bf16.mxu1 %vm1183_vm0, %v3054_v34 }
 0x82a   : > { %5918 = vmatmul.mubr.msk.bf16.gmra.mrb[84].mxu1 %vm1183_vm0, %v3056_v9  ;;  %v9081_v9 = vld [vmem:[#allocation34_spill] sm:$0xff] }
 0x82b   : > { %5921 = vmatprep.mubr.msk.bf16.mxu1 %vm1183_vm0, %v3058_v43 }
 0x832   : > { %5922 = vmatmul.mubr.msk.bf16.gmra.mrb[88].mxu1 %vm1183_vm0, %v3060_v1  ;;  %v9083_v1 = vld [vmem:[#allocation42_spill] sm:$0xff] }
 0x833   : > { %5925 = vmatprep.mubr.msk.bf16.mxu1 %vm1183_vm0, %v3062_v22  ;;  %v9084_v22 = vpack.c.bf16 %v9082_v45, %v9083_v1  ;;  %v9106_v45 = vld [vmem:[#allocation29_spill] sm:$0xff] }
 0x83a   : > { %5926 = vmatmul.mubr.msk.bf16.gmra.mrb[92].mxu1 %vm1183_vm0, %v3064_v55  ;;  %v9085_v55 = vld [vmem:[#allocation32_spill] sm:$0xff] }
 0x83b   : > { %4207 = vmatprep.mubr.bf16.mxu1 %v9076_v62 }
 0x85f   : > { %v5759_v20 = vpop.f32.mrb[48].mxu1 }
 0x860   : > { %v2065_v5 = vpop.f32.mrb[49].mxu1 }
 0x861   : > { %v5760_v48 = vpop.f32.mrb[50].mxu1 }
 0x862   : > { %v2129_v54 = vpack.c.bf16 %v5760_v48, %v5759_v20  ;;  %v2068_v29 = vpop.f32.mrb[51].mxu1 }
 0x863   : > { %v2128_v59 = vpack.c.bf16 %v2068_v29, %v2065_v5  ;;  %v9086_v5 = vld [vmem:[#allocation33_spill] sm:$0xff]  ;;  %v9087_v29 = vld [vmem:[#allocation47_spill] sm:$0xff] }
 0x865   : > { %5777 = vmatprep.mubr.msk.bf16.mxu0 %vm1183_vm0, %v2128_v59  ;;  %v9088_v59 = vld [vmem:[#allocation45_spill] sm:$0xff] }
 0x866   : > { %5778 = vmatmul.mubr.msk.bf16.vlgmr.msra.gmra.mrb[48].mxu0 %vm1183_vm0, %v2129_v54 }
 0x867   : > { %5794 = vmatpush3.bf16.msra.mxu0 %v6197_v24 }
 0x868   : > { %5795 = vmatprep.subr.bf16.mxu0 %v6198_v50 }
 0x86b   : > { %5796 = vmatpush3.bf16.msra.mxu0 %v6198_v50  ;;  %v9089_v50 = vpack.c.bf16 %v9087_v29, %v9088_v59  ;;  %v9108_v29 = vld [vmem:[#allocation22_spill] sm:$0xff]  ;;  %v9109_v59 = vld [vmem:[#allocation21_spill] sm:$0xff] }
 0x86c   : > { %5845 = vmatprep.subr.bf16.mxu0 %v2768_v11 }
 0x897   : > { %v5763_v47 = vpop.f32.mrb[52].mxu1 }
 0x898   : > { %v2081_v31 = vpop.f32.mrb[53].mxu1 }
 0x899   : > { %v5764_v16 = vpop.f32.mrb[54].mxu1 }
 0x89a   : > { %v2131_v2 = vpack.c.bf16 %v5764_v16, %v5763_v47  ;;  %v2084_v10 = vpop.f32.mrb[55].mxu1 }
 0x89b   : > { %v2130_v41 = vpack.c.bf16 %v2084_v10, %v2081_v31  ;;  %v9090_v10 = vld [vmem:[#allocation35_spill] sm:$0xff] }
 0x89d   : > { %5781 = vmatprep.mubr.msk.bf16.mxu0 %vm1183_vm0, %v2130_v41 }
 0x89e   : > { %5782 = vmatmul.mubr.msk.bf16.gmra.mrb[52].mxu0 %vm1183_vm0, %v2131_v2 }
 0x8a5   : > { %v5767_v46 = vpop.f32.mrb[56].mxu1 }
 0x8a6   : > { %v2097_v52 = vpop.f32.mrb[57].mxu1 }
 0x8a7   : > { %v5768_v53 = vpop.f32.mrb[58].mxu1 }
 0x8a8   : > { %v2133_v30 = vpack.c.bf16 %v5768_v53, %v5767_v46  ;;  %v2100_v15 = vpop.f32.mrb[59].mxu1 }
 0x8a9   : > { %v2132_v42 = vpack.c.bf16 %v2100_v15, %v2097_v52  ;;  %v9091_v52 = vld [vmem:[#allocation37_spill] sm:$0xff]  ;;  %v9092_v15 = vld [vmem:[#allocation46_spill] sm:$0xff] }
 0x8ab   : > { %5785 = vmatprep.mubr.msk.bf16.mxu0 %vm1183_vm0, %v2132_v42  ;;  %v9093_v42 = vld [vmem:[#allocation44_spill] sm:$0xff] }
 0x8ac   : > { %5786 = vmatmul.mubr.msk.bf16.gmra.mrb[56].mxu0 %vm1183_vm0, %v2133_v30 }
 0x8ad   : > { %v5771_v14 = vpop.f32.mrb[60].mxu1 }
 0x8ae   : > { %v2113_v26 = vpop.f32.mrb[61].mxu1 }
 0x8af   : > { %v5772_v35 = vpop.f32.mrb[62].mxu1 }
 0x8b0   : > { %v2135_v37 = vpack.c.bf16 %v5772_v35, %v5771_v14  ;;  %v2116_v25 = vpop.f32.mrb[63].mxu1  ;;  %v9094_v14 = vpack.c.bf16 %v9092_v15, %v9093_v42 }
 0x8b1   : > { %v2134_v39 = vpack.c.bf16 %v2116_v25, %v2113_v26  ;;  %v9095_v26 = vld [vmem:[#allocation36_spill] sm:$0xff]  ;;  %v9096_v25 = vld [vmem:[#allocation51_spill] sm:$0xff] }
 0x8b3   : > { %5789 = vmatprep.mubr.msk.bf16.mxu0 %vm1183_vm0, %v2134_v39  ;;  %v9097_v39 = vld [vmem:[#allocation49_spill] sm:$0xff] }
 0x8b4   : > { %5790 = vmatmul.mubr.msk.bf16.gmra.mrb[60].mxu0 %vm1183_vm0, %v2135_v37 }
 0x8b5   : > { %5797 = vmatprep.mubr.msk.bf16.mxu0 %vm1183_vm0, %v9077_v40  ;;  %v5831_v27 = vpop.f32.mrb[64].mxu1  ;;  %v9098_v40 = vpack.c.bf16 %v9096_v25, %v9097_v39 }
 0x8b6   : > { %v2585_v23 = vmul.f32 0.088388346, %v5831_v27  ;;  %v2520_v24 = vpop.f32.mrb[65].mxu1 }
 0x8b7   : > { %v5832_v36 = vpop.f32.mrb[66].mxu1  ;;  %v2583_v38 = vmul.f32 0.088388346, %v2520_v24 }
 0x8b8   : > { %v8093_v51 = vadd.f32 %v2585_v23, %v7477_v44  ;;  %v2523_v61 = vpop.f32.mrb[67].mxu1  ;;  %v2586_v4 = vmul.f32 0.088388346, %v5832_v36  ;;  %v9099_v23 = vld [vmem:[#allocation39_spill] sm:$0xff] }
 0x8b9   : > { %v2584_v3 = vmul.f32 0.088388346, %v2523_v61  ;;  %v8104_v57 = vadd.f32 %v2583_v38, %v7491_v60 }
 0x8ba   : > { %2619 = vmax.xlane.f32.xlu0 %v8093_v51  ;;  %v8113_v33 = vadd.f32 %v2586_v4, %v9080_v28 }
 0x8bb   : > { %v8097_v21 = vadd.f32 %v2584_v3, %v7500_v63 }
 0x8bc   : > { %5798 = vmatmul.mubr.msk.bf16.vlgmr.msra.gmra.mrb[48].mxu0 %vm1183_vm0, %v9078_v17  ;;  %v9100_v17 = vld [vmem:[#allocation38_spill] sm:$0xff] }
 0x8bd   : > { %5846 = vmatpush3.bf16.msra.mxu0 %v2768_v11  ;;  %5801 = vmatprep.mubr.msk.bf16.mxu0 %vm1183_vm0, %v9079_v58  ;;  %v5835_v0 = vpop.f32.mrb[68].mxu1  ;;  %v9101_v58 = vld [vmem:[#allocation41_spill] sm:$0xff] }
 0x8be   : > { %2617 = vmax.xlane.f32.xlu1 %v8097_v21  ;;  %5847 = vmatprep.subr.bf16.mxu0 %v2770_v56  ;;  %v2536_v19 = vpop.f32.mrb[69].mxu1  ;;  %v2589_v34 = vmul.f32 0.088388346, %v5835_v0 }
 0x8bf   : > { %2615 = vmax.xlane.f32.xlu0 %v8104_v57  ;;  %v2587_v32 = vmul.f32 0.088388346, %v2536_v19  ;;  %v5836_v13 = vpop.f32.mrb[70].mxu1 }
 0x8c0   : > { %v2539_v7 = vpop.f32.mrb[71].mxu1  ;;  %v2590_v49 = vmul.f32 0.088388346, %v5836_v13  ;;  %v8125_v20 = vadd.f32 %v2589_v34, %v9085_v55  ;;  %v9103_v13 = vld [vmem:[#allocation48_spill] sm:$0xff] }
 0x8c1   : > { %v8116_v43 = vadd.f32 %v2587_v32, %v9081_v9  ;;  %5848 = vmatpush3.bf16.msra.mxu0 %v2770_v56  ;;  %v2588_v54 = vmul.f32 0.088388346, %v2539_v7  ;;  %v9102_v32 = vld [vmem:[#allocation50_spill] sm:$0xff] }
 0x8c2   : > { %5849 = vmatprep.subr.bf16.mxu0 %v2772_v18  ;;  %v8128_v48 = vadd.f32 %v2590_v49, %v9086_v5  ;;  %v9104_v7 = vpack.c.bf16 %v9102_v32, %v9103_v13 }
 0x8c3   : > { %2621 = vmax.xlane.f32.xlu0 %v8113_v33  ;;  %2623 = vmax.xlane.f32.xlu1 %v8116_v43  ;;  %v8137_v41 = vadd.f32 %v2588_v54, %v9090_v10 }
 0x8c4   : > { %5802 = vmatmul.mubr.msk.bf16.gmra.mrb[52].mxu0 %vm1183_vm0, %v9084_v22  ;;  %v9107_v22 = vld [vmem:[#allocation30_spill] sm:$0xff] }
 0x8c5   : > { %5850 = vmatpush3.bf16.msra.mxu0 %v2772_v18  ;;  %5805 = vmatprep.mubr.msk.bf16.mxu0 %vm1183_vm0, %v9089_v50  ;;  %v5839_v11 = vpop.f32.mrb[72].mxu1  ;;  %v9105_v18 = vld [vmem:[#allocation40_spill] sm:$0xff]  ;;  %v9110_v50 = vld [vmem:[#allocation18_spill] sm:$0xff] }
 0x8c6   : > { %v2552_v47 = vpop.f32.mrb[73].mxu1  ;;  %v2593_v46 = vmul.f32 0.088388346, %v5839_v11 }
 0x8c7   : > { %2627 = vmax.xlane.f32.xlu0 %v8125_v20  ;;  %2629 = vmax.xlane.f32.xlu1 %v8128_v48  ;;  %v5840_v31 = vpop.f32.mrb[74].mxu1  ;;  %v2591_v37 = vmul.f32 0.088388346, %v2552_v47 }
 0x8c8   : > { %v2594_v16 = vmul.f32 0.088388346, %v5840_v31  ;;  %v2555_v2 = vpop.f32.mrb[75].mxu1  ;;  %v8149_v35 = vadd.f32 %v2593_v46, %v9095_v26 }
 0x8c9   : > { %v2592_v30 = vmul.f32 0.088388346, %v2555_v2  ;;  %v8161_v56 = vadd.f32 %v2591_v37, %v9100_v17 }
 0x8ca   : > { %v8140_v53 = vadd.f32 %v2594_v16, %v9091_v52 }
 0x8cb   : > { %2625 = vmax.xlane.f32.xlu0 %v8137_v41  ;;  %v8156_v24 = vadd.f32 %v2592_v30, %v9099_v23 }
 0x8cc   : > { %5806 = vmatmul.mubr.msk.bf16.gmra.mrb[56].mxu0 %vm1183_vm0, %v9094_v14  ;;  %2637 = vmax.xlane.f32.xlu1 %v8140_v53 }
 0x8cd   : > { %5809 = vmatprep.mubr.msk.bf16.mxu0 %vm1183_vm0, %v9098_v40  ;;  %v5843_v27 = vpop.f32.mrb[76].mxu1 }
 0x8ce   : > { %v2568_v36 = vpop.f32.mrb[77].mxu1  ;;  %v2597_v4 = vmul.f32 0.088388346, %v5843_v27 }
 0x8cf   : > { %2635 = vmax.xlane.f32.xlu0 %v8149_v35  ;;  %v2595_v61 = vmul.f32 0.088388346, %v2568_v36  ;;  %v5844_v38 = vpop.f32.mrb[78].mxu1 }
 0x8d0   : > { %2633 = vmax.xlane.f32.xlu1 %v8156_v24  ;;  %v2571_v3 = vpop.f32.mrb[79].mxu1  ;;  %v2598_v19 = vmul.f32 0.088388346, %v5844_v38  ;;  %v8173_v34 = vadd.f32 %v2597_v4, %v9105_v18 }
 0x8d1   : > { %v8164_v0 = vadd.f32 %v2595_v61, %v9101_v58  ;;  %v2596_v49 = vmul.f32 0.088388346, %v2571_v3 }
 0x8d2   : > { %v8176_v1 = vadd.f32 %v2598_v19, %v9106_v45 }
 0x8d3   : > { %2631 = vmax.xlane.f32.xlu0 %v8161_v56  ;;  %v8181_v54 = vadd.f32 %v2596_v49, %v9107_v22 }
 0x8d4   : > { %5810 = vmatmul.mubr.msk.bf16.gmra.mrb[60].mxu0 %vm1183_vm0, %v9104_v7  ;;  %2639 = vmax.xlane.f32.xlu1 %v8164_v0 }
 0x8d7   : > { %2643 = vmax.xlane.f32.xlu0 %v8173_v34 }
 0x8d8   : > { %2645 = vmax.xlane.f32.xlu1 %v8176_v1 }
 0x8db   : > { %2641 = vmax.xlane.f32.xlu0 %v8181_v54 }
 0x8e9   : > { %2775 = vrot.lane.b32.xlu1 %v9108_v29, %s6853_s1 }
 0x8ed   : > { %2777 = vrot.lane.b32.xlu1 %v9109_v59, %s6853_s1 }
 0x8f1   : > { %2773 = vrot.lane.b32.xlu0 %v9110_v50, %s6853_s1 }
 0x8f5   : > { %v8190_v11 = vpop.f32.mrb[80].mxu1 }
 0x8f6   : > { %v8192_v47 = vpop.f32.mrb[81].mxu1 }
 0x8f7   : > { %v8194_v31 = vpop.f32.mrb[82].mxu1 }
 0x8f8   : > { %v8196_v16 = vpop.f32.mrb[83].mxu1 }
 0x8fd   : > { %v8198_v2 = vpop.f32.mrb[84].mxu1 }
 0x8fe   : > { %v8200_v46 = vpop.f32.mrb[85].mxu1 }
 0x8ff   : > { %v8202_v30 = vpop.f32.mrb[86].mxu1 }
 0x900   : > { %v8204_v15 = vpop.f32.mrb[87].mxu1 }
 0x905   : > { %v8206_v42 = vpop.f32.mrb[88].mxu1 }
 0x906   : > { %v8208_v14 = vpop.f32.mrb[89].mxu1 }
 0x907   : > { %v8210_v37 = vpop.f32.mrb[90].mxu1 }
 0x908   : > { %v8212_v25 = vpop.f32.mrb[91].mxu1 }
 0x90d   : > { %v8214_v39 = vpop.f32.mrb[92].mxu1 }
 0x90e   : > { %v8216_v40 = vpop.f32.mrb[93].mxu1 }
 0x90f   : > { %v8218_v27 = vpop.f32.mrb[94].mxu1 }
 0x910   : > { %9111 = vst [vmem:[#allocation23_spill] sm:$0xff] %v8218_v27  ;;  %v8220_v36 = vpop.f32.mrb[95].mxu1 }
 0x947   : > { %v2620_v61 = vpop.xlane.xlu0 %2619 }
 0x948   : > { %v2649_v38 = vsub.f32 %v8093_v51, %v2620_v61 }
 0x94a   : > { %v2667_v3 = vmul.f32 1.442695, %v2649_v38 }
 0x94b   : > { %v2618_v4 = vpop.xlane.xlu1 %2617 }
 0x94c   : > { %6443 = vpow2.f32 %v2667_v3  ;;  %v2616_v19 = vpop.xlane.xlu0 %2615  ;;  %v2648_v7 = vsub.f32 %v8097_v21, %v2618_v4 }
 0x94d   : > { %v2647_v32 = vsub.f32 %v8104_v57, %v2616_v19 }
 0x94e   : > { %v2665_v45 = vmul.f32 1.442695, %v2648_v7 }
 0x94f   : > { %v2663_v13 = vmul.f32 1.442695, %v2647_v32 }
 0x950   : > { %v2622_v49 = vpop.xlane.xlu0 %2621  ;;  %v2624_v62 = vpop.xlane.xlu1 %2623 }
 0x951   : > { %6445 = vpow2.f32 %v2663_v13  ;;  %v2650_v59 = vsub.f32 %v8113_v33, %v2622_v49  ;;  %v2651_v22 = vsub.f32 %v8116_v43, %v2624_v62 }
 0x953   : > { %v2669_v12 = vmul.f32 1.442695, %v2650_v59  ;;  %v2671_v21 = vmul.f32 1.442695, %v2651_v22 }
 0x954   : > { %v2628_v27 = vpop.xlane.xlu0 %2627  ;;  %v2630_v51 = vpop.xlane.xlu1 %2629 }
 0x955   : > { %6447 = vpow2.f32 %v2669_v12  ;;  %v2653_v61 = vsub.f32 %v8125_v20, %v2628_v27  ;;  %v2654_v33 = vsub.f32 %v8128_v48, %v2630_v51 }
 0x956   : > { %v8228_v38 = vpop.eup %6443  ;;  %6449 = vpow2.f32 %v2665_v45 }
 0x957   : > { %v2675_v57 = vmul.f32 1.442695, %v2653_v61  ;;  %2699 = vadd.xlane.f32.xlu1 %v8228_v38  ;;  %v2677_v20 = vmul.f32 1.442695, %v2654_v33 }
 0x958   : > { %v2626_v3 = vpop.xlane.xlu0 %2625 }
 0x959   : > { %6451 = vpow2.f32 %v2675_v57  ;;  %v2652_v59 = vsub.f32 %v8137_v41, %v2626_v3  ;;  %v2638_v4 = vpop.xlane.xlu1 %2637 }
 0x95a   : > { %6453 = vpow2.f32 %v2671_v21  ;;  %v2658_v19 = vsub.f32 %v8140_v53, %v2638_v4 }
 0x95b   : > { %v8233_v62 = vpop.eup %6445  ;;  %v2673_v43 = vmul.f32 1.442695, %v2652_v59 }
 0x95c   : > { %2695 = vadd.xlane.f32.xlu1 %v8233_v62  ;;  %v2636_v12 = vpop.xlane.xlu0 %2635  ;;  %v2685_v61 = vmul.f32 1.442695, %v2658_v19 }
 0x95d   : > { %6455 = vpow2.f32 %v2673_v43  ;;  %v2657_v27 = vsub.f32 %v8149_v35, %v2636_v12  ;;  %v2634_v45 = vpop.xlane.xlu1 %2633 }
 0x95e   : > { %6457 = vpow2.f32 %v2677_v20  ;;  %v2656_v35 = vsub.f32 %v8156_v24, %v2634_v45 }
 0x95f   : > { %v8237_v22 = vpop.eup %6447  ;;  %v2683_v48 = vmul.f32 1.442695, %v2657_v27 }
 0x960   : > { %2701 = vadd.xlane.f32.xlu1 %v8237_v22  ;;  %v2632_v41 = vpop.xlane.xlu0 %2631  ;;  %v8242_v7 = vpop.eup %6449  ;;  %v2681_v4 = vmul.f32 1.442695, %v2656_v35 }
 0x961   : > { %v2655_v32 = vsub.f32 %v8161_v56, %v2632_v41  ;;  %v2640_v13 = vpop.xlane.xlu1 %2639  ;;  %6459 = vpow2.f32 %v2683_v48 }
 0x962   : > { %v2659_v57 = vsub.f32 %v8164_v0, %v2640_v13  ;;  %v9112_v13 = vld [vmem:[#allocation24_spill] sm:$0xff] }
 0x963   : > { %v8244_v49 = vpop.eup %6451  ;;  %v2679_v51 = vmul.f32 1.442695, %v2655_v32 }
 0x964   : > { %2697 = vadd.xlane.f32.xlu1 %v8242_v7  ;;  %2707 = vadd.xlane.f32.xlu0 %v8244_v49  ;;  %v2644_v53 = vpop.xlane.xlu0 %2643  ;;  %v8251_v21 = vpop.eup %6453  ;;  %v2687_v43 = vmul.f32 1.442695, %v2659_v57 }
 0x965   : > { %6461 = vpow2.f32 %v2679_v51  ;;  %v2661_v56 = vsub.f32 %v8173_v34, %v2644_v53  ;;  %v2646_v3 = vpop.xlane.xlu1 %2645  ;;  %v9113_v51 = vld [vmem:[#allocation25_spill] sm:$0xff] }
 0x966   : > { %6463 = vpow2.f32 %v2685_v61  ;;  %v2662_v35 = vsub.f32 %v8176_v1, %v2646_v3 }
 0x967   : > { %v8253_v33 = vpop.eup %6455  ;;  %v2691_v59 = vmul.f32 1.442695, %v2661_v56  ;;  %v3230_v56 = vmul.f32 0.088388346, %v8200_v46  ;;  %v3227_v46 = vmul.f32 0.088388346, %v8196_v16 }
 0x968   : > { %2703 = vadd.xlane.f32.xlu0 %v8251_v21  ;;  %2705 = vadd.xlane.f32.xlu1 %v8253_v33  ;;  %v2642_v24 = vpop.xlane.xlu0 %2641  ;;  %v8257_v12 = vpop.eup %6457  ;;  %v2693_v57 = vmul.f32 1.442695, %v2662_v35  ;;  %v3231_v16 = vmul.f32 0.088388346, %v8204_v15 }
 0x969   : > { %6465 = vpow2.f32 %v2691_v59  ;;  %v2776_v0 = vpop.permute.xlu1 %2775  ;;  %v2660_v61 = vsub.f32 %v8181_v54, %v2642_v24  ;;  %v8286_v59 = vadd.f32 %v3230_v56, %v9081_v9  ;;  %v3226_v54 = vmul.f32 0.088388346, %v8192_v47 }
 0x96a   : > { %6467 = vpow2.f32 %v2681_v4  ;;  %v3240_v4 = vmul.f32 0.088388346, %v8214_v39  ;;  %v3228_v39 = vmul.f32 0.088388346, %v8190_v11  ;;  %v8308_v47 = vadd.f32 %v3227_v46, %v7500_v63  ;;  %v9117_v46 = vld [vmem:[#allocation19_spill] sm:$0xff] }
 0x96b   : > { %6469 = vpow2.f32 %v2687_v43  ;;  %v8260_v20 = vpop.eup %6459  ;;  %v2689_v53 = vmul.f32 1.442695, %v2660_v61  ;;  %v8302_v9 = vadd.f32 %v3226_v54, %v7491_v60  ;;  %v3229_v24 = vmul.f32 0.088388346, %v8194_v31 }
 0x96c   : > { %2709 = vadd.xlane.f32.xlu0 %v8257_v12  ;;  %v2774_v34 = vpop.permute.xlu0 %2773  ;;  %v8295_v1 = vadd.f32 %v3240_v4, %v9105_v18  ;;  %v8312_v18 = vadd.f32 %v3228_v39, %v7477_v44  ;;  %v3232_v63 = vmul.f32 0.088388346, %v8198_v2  ;;  %v8325_v11 = vadd.f32 %v3231_v16, %v9090_v10 }
 0x96d   : > { %5851 = vmatprep.subr.bf16.mxu0 %v2774_v34  ;;  %v2778_v19 = vpop.permute.xlu1 %2777  ;;  %6471 = vpow2.f32 %v2689_v53  ;;  %v8317_v60 = vadd.f32 %v3229_v24, %v9080_v28  ;;  %v3233_v28 = vmul.f32 0.088388346, %v8202_v30  ;;  %v3234_v10 = vmul.f32 0.088388346, %v8208_v14 }
 0x96e   : > { %5852 = vmatpush3.bf16.msra.mxu0 %v2774_v34  ;;  %6473 = vpow2.f32 %v2693_v57  ;;  %v8331_v44 = vadd.f32 %v3232_v63, %v9085_v55  ;;  %v3235_v55 = vmul.f32 0.088388346, %v8212_v25  ;;  %v3236_v31 = vmul.f32 0.088388346, %v8206_v42  ;;  %v9115_v42 = vld [vmem:[#allocation30_spill] sm:$0xff] }
 0x96f   : > { %v8262_v27 = vpop.eup %6461  ;;  %5853 = vmatprep.subr.bf16.mxu0 %v2776_v0  ;;  %v3237_v2 = vmul.f32 0.088388346, %v8210_v37 }
 0x970   : > { %2715 = vadd.xlane.f32.xlu0 %v8260_v20  ;;  %2711 = vadd.xlane.f32.xlu1 %v8262_v27  ;;  %v8266_v45 = vpop.eup %6463 }
 0x972   : > { %5854 = vmatpush3.bf16.msra.mxu0 %v2776_v0 }
 0x973   : > { %v8268_v48 = vpop.eup %6465  ;;  %5855 = vmatprep.subr.bf16.mxu0 %v2778_v19 }
 0x974   : > { %2717 = vadd.xlane.f32.xlu0 %v8266_v45  ;;  %2723 = vadd.xlane.f32.xlu1 %v8268_v48  ;;  %v8272_v41 = vpop.eup %6467 }
 0x975   : > { %v8274_v32 = vpop.eup %6469 }
 0x976   : > { %5856 = vmatpush3.bf16.msra.mxu0 %v2778_v19 }
 0x977   : > { %v8289_v43 = vpop.eup %6471 }
 0x978   : > { %2713 = vadd.xlane.f32.xlu0 %v8272_v41  ;;  %2719 = vadd.xlane.f32.xlu1 %v8274_v32  ;;  %v8297_v3 = vpop.eup %6473 }
 0x989   : > { %2781 = vrot.lane.b32.xlu1 %v9112_v13, %s6853_s1 }
 0x98e   : > { %2779 = vrot.lane.b32.xlu0 %v9113_v51, %s6853_s1  ;;  %s9122_s1 = sld [smem:[#allocation54_spill]] }
 0x9ad   : > { %3266 = vmax.xlane.f32.xlu1 %v8286_v59  ;;  %2721 = vadd.xlane.f32.xlu0 %v8289_v43 }
 0x9b1   : > { %3286 = vmax.xlane.f32.xlu1 %v8295_v1  ;;  %2725 = vadd.xlane.f32.xlu0 %v8297_v3 }
 0x9b5   : > { %3258 = vmax.xlane.f32.xlu0 %v8302_v9 }
 0x9b9   : > { %3260 = vmax.xlane.f32.xlu0 %v8308_v47 }
 0x9bd   : > { %3262 = vmax.xlane.f32.xlu0 %v8312_v18 }
 0x9c1   : > { %3264 = vmax.xlane.f32.xlu0 %v8317_v60 }
 0x9c2   : > { %3410 = vrot.lane.b32.xlu1 %v7351_v8, %s6854_s18  ;;  %v8338_v8 = vadd.f32 %v3233_v28, %v9086_v5  ;;  %v8355_v5 = vadd.f32 %v3236_v31, %v9095_v26  ;;  %v9114_v26 = vld [vmem:[#allocation23_spill] sm:$0xff] }
 0x9c3   : > { %v3241_v15 = vmul.f32 0.088388346, %v9114_v26 }
 0x9c5   : > { %3268 = vmax.xlane.f32.xlu0 %v8325_v11 }
 0x9c6   : > { %3412 = vrot.lane.b32.xlu1 %v7349_v6, %s6854_s18  ;;  %v8345_v6 = vadd.f32 %v3234_v10, %v9100_v17  ;;  %v8360_v17 = vadd.f32 %v3237_v2, %v9091_v52  ;;  %v9116_v52 = vld [vmem:[#allocation29_spill] sm:$0xff] }
 0x9c7   : > { %v8375_v25 = vadd.f32 %v3241_v15, %v9116_v52  ;;  %v6200_v52 = vld [vmem:[#allocation7 + $0x28] sm:$0xff]  }
 0x9c9   : > { %3270 = vmax.xlane.f32.xlu0 %v8331_v44 }
 0x9ca   : > { %3416 = vrot.lane.b32.xlu1 %v9110_v50, %s6854_s18  ;;  %v8351_v50 = vadd.f32 %v3235_v55, %v9099_v23  ;;  %v3239_v23 = vmul.f32 0.088388346, %v8220_v36 }
 0x9cc   : > { %v8371_v14 = vadd.f32 %v3239_v23, %v9115_v42  ;;  %v6199_v23 = vld [vmem:[#allocation7 + $0x20] sm:$0xff]  }
 0x9cd   : > { %3272 = vmax.xlane.f32.xlu0 %v8338_v8 }
 0x9ce   : > { %3418 = vrot.lane.b32.xlu1 %v9108_v29, %s6854_s18  ;;  %v3238_v29 = vmul.f32 0.088388346, %v8216_v40 }
 0x9d0   : > { %v8365_v30 = vadd.f32 %v3238_v29, %v9101_v58 }
 0x9d1   : > { %3274 = vmax.xlane.f32.xlu0 %v8345_v6 }
 0x9d5   : > { %3276 = vmax.xlane.f32.xlu0 %v8351_v50 }
 0x9d9   : > { %3278 = vmax.xlane.f32.xlu0 %v8355_v5 }
 0x9dd   : > { %3280 = vmax.xlane.f32.xlu0 %v8360_v17 }
 0x9e1   : > { %3282 = vmax.xlane.f32.xlu0 %v8365_v30 }
 0x9e4   : > { %v2700_v37 = vpop.xlane.xlu1 %2699 }
 0x9e5   : > { %3284 = vmax.xlane.f32.xlu0 %v8371_v14 }
 0x9e9   : > { %v2696_v40 = vpop.xlane.xlu1 %2695  ;;  %3288 = vmax.xlane.f32.xlu0 %v8375_v25 }
 0x9ea   : > { %6475 = vrcp.f32 %v2696_v40 }
 0x9ed   : > { %v2702_v58 = vpop.xlane.xlu1 %2701 }
 0x9f1   : > { %v2698_v0 = vpop.xlane.xlu1 %2697  ;;  %v2708_v36 = vpop.xlane.xlu0 %2707 }
 0x9f2   : > { %6477 = vrcp.f32 %v2698_v0 }
 0x9f3   : > { %6479 = vrcp.f32 %v2702_v58 }
 0x9f4   : > { %v6476_v35 = vpop.eup %6475 }
 0x9f5   : > { %v2704_v34 = vpop.xlane.xlu0 %2703  ;;  %v2706_v19 = vpop.xlane.xlu1 %2705  ;;  %v2743_v4 = vmul.f32 %v6476_v35, %v8233_v62 }
 0x9f6   : > { %6481 = vrcp.f32 %v2706_v19 }
 0x9f7   : > { %6483 = vrcp.f32 %v2704_v34 }
 0x9f8   : > { %6485 = vrcp.f32 %v2700_v37 }
 0x9f9   : > { %v2710_v61 = vpop.xlane.xlu0 %2709 }
 0x9fa   : > { %6487 = vrcp.f32 %v2710_v61 }
 0x9fc   : > { %v6478_v53 = vpop.eup %6477 }
 0x9fd   : > { %v2712_v57 = vpop.xlane.xlu1 %2711  ;;  %v2716_v56 = vpop.xlane.xlu0 %2715  ;;  %v2744_v54 = vmul.f32 %v6478_v53, %v8242_v7 }
 0x9fe   : > { %v6480_v10 = vpop.eup %6479 }
 0x9ff   : > { %3414 = vrot.lane.b32.xlu0 %v9117_v46, %s6854_s18  ;;  %v2759_v39 = vpack.c.bf16 %v2744_v54, %v2743_v4  ;;  %v2746_v29 = vmul.f32 %v6480_v10, %v8237_v22 }
 0xa00   : > { %v6482_v55 = vpop.eup %6481 }
 0xa01   : > { %5861 = vmatprep.mubr.bf16.mxu0 %v2759_v39  ;;  %v2724_v24 = vpop.xlane.xlu1 %2723  ;;  %v2718_v16 = vpop.xlane.xlu0 %2717  ;;  %v2748_v15 = vmul.f32 %v6482_v55, %v8253_v33 }
 0xa02   : > { %v6484_v7 = vpop.eup %6483 }
 0xa03   : > { %v6486_v31 = vpop.eup %6485  ;;  %v2747_v26 = vmul.f32 %v6484_v7, %v8251_v21 }
 0xa04   : > { %v2745_v42 = vmul.f32 %v6486_v31, %v8228_v38  ;;  %v6488_v40 = vpop.eup %6487 }
 0xa05   : > { %v2720_v63 = vpop.xlane.xlu1 %2719  ;;  %v2714_v28 = vpop.xlane.xlu0 %2713  ;;  %v2761_v58 = vpack.c.bf16 %v2748_v15, %v2747_v26  ;;  %v2750_v21 = vmul.f32 %v6488_v40, %v8257_v12 }
 0xa06   : > { %6489 = vrcp.f32 %v2714_v28  ;;  %v2760_v37 = vpack.c.bf16 %v2746_v29, %v2745_v42 }
 0xa07   : > { %6491 = vrcp.f32 %v2708_v36 }
 0xa08   : > { %6493 = vrcp.f32 %v2712_v57 }
 0xa09   : > { %v2780_v62 = vpop.permute.xlu0 %2779  ;;  %v2782_v2 = vpop.permute.xlu1 %2781  ;;  %6495 = vrcp.f32 %v2718_v16 }
 0xa0a   : > { %5857 = vmatprep.subr.bf16.mxu0 %v2780_v62  ;;  %6497 = vrcp.f32 %v2716_v56 }
 0xa0b   : > { %5858 = vmatpush3.bf16.msra.mxu0 %v2780_v62  ;;  %6499 = vrcp.f32 %v2720_v63 }
 0xa0c   : > { %5859 = vmatprep.subr.bf16.mxu0 %v2782_v2 }
 0xa0f   : > { %5860 = vmatpush3.bf16.msra.mxu0 %v2782_v2 }
 0xa10   : > { %5877 = vmatprep.subr.bf16.mxu0 %v6199_v23  ;;  %v6490_v0 = vpop.eup %6489 }
 0xa11   : > { %v6492_v36 = vpop.eup %6491  ;;  %v2752_v33 = vmul.f32 %v6490_v0, %v8272_v41 }
 0xa12   : > { %5862 = vmatmul.mubr.bf16.vlgmr.msra.gmra.mrb[64].mxu0 %v2760_v37  ;;  %v6494_v22 = vpop.eup %6493  ;;  %v2749_v38 = vmul.f32 %v6492_v36, %v8244_v49 }
 0xa13   : > { %5865 = vmatprep.mubr.bf16.mxu0 %v2761_v58  ;;  %5878 = vmatpush3.bf16.msra.mxu0 %v6199_v23  ;;  %v2751_v34 = vmul.f32 %v6494_v22, %v8262_v27  ;;  %v6496_v61 = vpop.eup %6495 }
 0xa14   : > { %5879 = vmatprep.subr.bf16.mxu0 %v6200_v52  ;;  %v2762_v19 = vpack.c.bf16 %v2750_v21, %v2749_v38  ;;  %v6498_v53 = vpop.eup %6497  ;;  %v2754_v57 = vmul.f32 %v6496_v61, %v8266_v45  ;;  %v9118_v61 = vld [vmem:[#allocation21_spill] sm:$0xff] }
 0xa15   : > { %v2763_v35 = vpack.c.bf16 %v2752_v33, %v2751_v34  ;;  %v2753_v56 = vmul.f32 %v6498_v53, %v8260_v20  ;;  %v6500_v39 = vpop.eup %6499 }
 0xa16   : > { %v2755_v20 = vmul.f32 %v6500_v39, %v8274_v32 }
 0xa17   : > { %5880 = vmatpush3.bf16.msra.mxu0 %v6200_v52  ;;  %v2764_v4 = vpack.c.bf16 %v2754_v57, %v2753_v56 }
 0xa1a   : > { %5866 = vmatmul.mubr.bf16.gmra.mrb[68].mxu0 %v2762_v19 }
 0xa1b   : > { %5869 = vmatprep.mubr.bf16.mxu0 %v2763_v35 }
 0xa22   : > { %5870 = vmatmul.mubr.bf16.gmra.mrb[72].mxu0 %v2764_v4 }
 0xa3a   : > { %v3267_v12 = vpop.xlane.xlu1 %3266  ;;  %v2722_v41 = vpop.xlane.xlu0 %2721 }
 0xa3b   : > { %6501 = vrcp.f32 %v2722_v41 }
 0xa3c   : > { %6503 = vrcp.f32 %v2724_v24 }
 0xa3e   : > { %v8392_v49 = vpop.xlane.xlu1 %3286  ;;  %v2726_v27 = vpop.xlane.xlu0 %2725 }
 0xa3f   : > { %6505 = vrcp.f32 %v2726_v27 }
 0xa42   : > { %v8394_v54 = vpop.permute.xlu1 %3410  ;;  %v3259_v46 = vpop.xlane.xlu0 %3258 }
 0xa43   : > { %5929 = vmatprep.subr.bf16.mxu0 %v8394_v54  ;;  %v3290_v62 = vsub.f32 %v8302_v9, %v3259_v46  ;;  %v3294_v9 = vsub.f32 %v8286_v59, %v3267_v12 }
 0xa45   : > { %v6502_v45 = vpop.eup %6501  ;;  %v3306_v15 = vmul.f32 1.442695, %v3290_v62  ;;  %v3314_v0 = vmul.f32 1.442695, %v3294_v9 }
 0xa46   : > { %v3261_v16 = vpop.xlane.xlu0 %3260  ;;  %v2756_v63 = vmul.f32 %v6502_v45, %v8289_v43  ;;  %v6504_v28 = vpop.eup %6503 }
 0xa47   : > { %v2757_v31 = vmul.f32 %v6504_v28, %v8268_v48  ;;  %v3291_v43 = vsub.f32 %v8308_v47, %v3261_v16  ;;  %v3413_v62 = vpop.permute.xlu1 %3412 }
 0xa48   : > { %v2765_v10 = vpack.c.bf16 %v2756_v63, %v2755_v20 }
 0xa49   : > { %v6506_v55 = vpop.eup %6505 }
 0xa4a   : > { %5873 = vmatprep.mubr.bf16.mxu0 %v2765_v10  ;;  %v3263_v24 = vpop.xlane.xlu0 %3262  ;;  %v2758_v2 = vmul.f32 %v6506_v55, %v8297_v3 }
 0xa4b   : > { %v3292_v7 = vsub.f32 %v8312_v18, %v3263_v24  ;;  %v3308_v18 = vmul.f32 1.442695, %v3291_v43 }
 0xa4c   : > { %v2766_v23 = vpack.c.bf16 %v2758_v2, %v2757_v31 }
 0xa4d   : > { %v3310_v29 = vmul.f32 1.442695, %v3292_v7 }
 0xa4e   : > { %v3265_v26 = vpop.xlane.xlu0 %3264  ;;  %5874 = vmatmul.mubr.bf16.gmra.mrb[76].mxu0 %v2766_v23 }
 0xa4f   : > { %6507 = vpow2.f32 %v3310_v29  ;;  %v3293_v32 = vsub.f32 %v8317_v60, %v3265_v26  ;;  %v3417_v26 = vpop.permute.xlu1 %3416 }
 0xa50   : > { %6509 = vpow2.f32 %v3306_v15 }
 0xa51   : > { %v3312_v37 = vmul.f32 1.442695, %v3293_v32 }
 0xa52   : > { %v3269_v42 = vpop.xlane.xlu0 %3268 }
 0xa53   : > { %6511 = vpow2.f32 %v3312_v37  ;;  %v3295_v48 = vsub.f32 %v8325_v11, %v3269_v42  ;;  %v3419_v9 = vpop.permute.xlu1 %3418 }
 0xa54   : > { %6513 = vpow2.f32 %v3308_v18 }
 0xa55   : > { %v3316_v60 = vmul.f32 1.442695, %v3295_v48 }
 0xa56   : > { %v3271_v52 = vpop.xlane.xlu0 %3270 }
 0xa57   : > { %v3296_v3 = vsub.f32 %v8331_v44, %v3271_v52 }
 0xa59   : > { %v8408_v40 = vpop.eup %6507  ;;  %v3318_v58 = vmul.f32 1.442695, %v3296_v3 }
 0xa5a   : > { %3342 = vadd.xlane.f32.xlu0 %v8408_v40  ;;  %v3273_v47 = vpop.xlane.xlu0 %3272  ;;  %v8412_v59 = vpop.eup %6509 }
 0xa5b   : > { %6515 = vpow2.f32 %v3318_v58  ;;  %v3297_v36 = vsub.f32 %v8338_v8, %v3273_v47 }
 0xa5c   : > { %6517 = vpow2.f32 %v3314_v0 }
 0xa5d   : > { %6519 = vpow2.f32 %v3316_v60  ;;  %v3320_v11 = vmul.f32 1.442695, %v3297_v36  ;;  %v8415_v44 = vpop.eup %6511 }
 0xa5e   : > { %3338 = vadd.xlane.f32.xlu0 %v8412_v59  ;;  %v8418_v22 = vpop.eup %6513  ;;  %v3275_v34 = vpop.xlane.xlu0 %3274 }
 0xa5f   : > { %6521 = vpow2.f32 %v3320_v11  ;;  %v3298_v57 = vsub.f32 %v8345_v6, %v3275_v34  ;;  %v3304_v6 = vsub.f32 %v8295_v1, %v8392_v49 }
 0xa61   : > { %v3322_v4 = vmul.f32 1.442695, %v3298_v57 }
 0xa62   : > { %3344 = vadd.xlane.f32.xlu0 %v8415_v44  ;;  %v3277_v19 = vpop.xlane.xlu0 %3276 }
 0xa63   : > { %v3299_v41 = vsub.f32 %v8351_v50, %v3277_v19  ;;  %6523 = vpow2.f32 %v3322_v4 }
 0xa65   : > { %v8420_v21 = vpop.eup %6515  ;;  %v3324_v39 = vmul.f32 1.442695, %v3299_v41  ;;  %v6201_v41 = vld [vmem:[#allocation7 + $0x30] sm:$0xff]  }
 0xa66   : > { %3340 = vadd.xlane.f32.xlu0 %v8418_v22  ;;  %3350 = vadd.xlane.f32.xlu1 %v8420_v21  ;;  %v8424_v8 = vpop.eup %6517  ;;  %v3279_v35 = vpop.xlane.xlu0 %3278 }
 0xa67   : > { %v8426_v33 = vpop.eup %6519  ;;  %v3300_v12 = vsub.f32 %v8355_v5, %v3279_v35 }
 0xa69   : > { %v8430_v38 = vpop.eup %6521  ;;  %v3326_v46 = vmul.f32 1.442695, %v3300_v12 }
 0xa6a   : > { %3348 = vadd.xlane.f32.xlu0 %v8426_v33  ;;  %3346 = vadd.xlane.f32.xlu1 %v8424_v8  ;;  %v3281_v53 = vpop.xlane.xlu0 %3280 }
 0xa6b   : > { %6525 = vpow2.f32 %v3326_v46 }
 0xa6c   : > { %6527 = vpow2.f32 %v3324_v39 }
 0xa6d   : > { %v8448_v28 = vpop.eup %6523 }
 0xa6e   : > { %3352 = vadd.xlane.f32.xlu1 %v8430_v38  ;;  %v3283_v56 = vpop.xlane.xlu0 %3282 }
 0xa6f   : > { %v3302_v45 = vsub.f32 %v8365_v30, %v3283_v56 }
 0xa71   : > { %v3330_v5 = vmul.f32 1.442695, %v3302_v45 }
 0xa72   : > { %v3285_v27 = vpop.xlane.xlu0 %3284 }
 0xa75   : > { %v8451_v10 = vpop.eup %6525 }
 0xa76   : > { %v3289_v20 = vpop.xlane.xlu0 %3288  ;;  %v8454_v1 = vpop.eup %6527 }
 0xa77   : > { %v3305_v63 = vsub.f32 %v8375_v25, %v3289_v20 }
 0xa79   : > { %v3336_v30 = vmul.f32 1.442695, %v3305_v63 }
 0xa7a   : > { %v3415_v7 = vpop.permute.xlu0 %3414 }
 0xa7f   : > { %3422 = vrot.lane.b32.xlu1 %v9113_v51, %s6854_s18  ;;  %v3301_v51 = vsub.f32 %v8360_v17, %v3281_v53  ;;  %v3334_v17 = vmul.f32 1.442695, %v3304_v6 }
 0xa80   : > { %3420 = vrot.lane.b32.xlu0 %v9118_v61, %s6854_s18 }
 0xa81   : > { %v3328_v16 = vmul.f32 1.442695, %v3301_v51 }
 0xa83   : > { %3424 = vrot.lane.b32.xlu1 %v9112_v13, %s6854_s18  ;;  %v3303_v13 = vsub.f32 %v8371_v14, %v3285_v27  ;;  %6529 = vpow2.f32 %v3328_v16  ;;  %s8832_s18 = scalar_lea.vmem [#allocation11], %s5122_s7  ;;  %s5300_s7 = sshll.u32 %s6944_s25, 11 }
 0xa84   : > { %6531 = vpow2.f32 %v3330_v5  ;;  %s5000_s13 = sshll.u32 %s8832_s18, 4  ;;  %s8881_s5 = scalar_lea.hbm %s9123_s14, %s5300_s7  ;;  %s8883_s13 = int_to_ptr.vmem [resolvable:$true] %s5000_s13 }
 0xa85   : > { %v3332_v50 = vmul.f32 1.442695, %v3303_v13  ;;  %s6761_s25 = scalar_lea.vmem %s8883_s13, 2048  ;;  %p6768_p12 = scmp.lt.s32.totalorder %s8883_s13, %s6766_s29 }
 0xa86   : > { %p6762_p3 = scmp.ne.s32.totalorder %s8883_s13, %s6761_s25 }
 0xa87   : > { %6533 = vpow2.f32 %v3332_v50 }
 0xa88   : > { %6535 = vpow2.f32 %v3334_v17  ;;  %p6763_p5 = pnand %p6762_p3, %p7079_p10 }
 0xa89   : > { %6537 = vpow2.f32 %v3336_v30 }
 0xa8a   : > { %p6764_p7 = pneg %p6763_p5 }
 0xa8d   : > { %v8456_v14 = vpop.eup %6529 }
 0xa8e   : > { %v8460_v25 = vpop.eup %6531 }
 0xa91   : > { %v8462_v49 = vpop.eup %6533 }
 0xa92   : > { %v8466_v55 = vpop.eup %6535 }
 0xa93   : > { %v8468_v24 = vpop.eup %6537 }
 0xa9f   : > { %3354 = vadd.xlane.f32.xlu0 %v8448_v28 }
 0xaa3   : > { %3358 = vadd.xlane.f32.xlu0 %v8451_v10 }
 0xaa7   : > { %3356 = vadd.xlane.f32.xlu1 %v8454_v1  ;;  %3360 = vadd.xlane.f32.xlu0 %v8456_v14 }
 0xaab   : > { %3362 = vadd.xlane.f32.xlu1 %v8460_v25  ;;  %3364 = vadd.xlane.f32.xlu0 %v8462_v49 }
 0xaaf   : > { %3366 = vadd.xlane.f32.xlu1 %v8466_v55  ;;  %3368 = vadd.xlane.f32.xlu0 %v8468_v24 }
 0xae5   : > { %v5863_v31 = vpop.f32.mrb[64].mxu0 }
 0xae6   : > { %v2825_v2 = vpop.f32.mrb[65].mxu0 }
 0xae7   : > { %v5864_v29 = vpop.f32.mrb[66].mxu0  ;;  %v3343_v23 = vpop.xlane.xlu0 %3342 }
 0xae8   : > { %v2889_v15 = vpack.c.bf16 %v5864_v29, %v5863_v31  ;;  %v2828_v32 = vpop.f32.mrb[67].mxu0 }
 0xae9   : > { %v2888_v43 = vpack.c.bf16 %v2828_v32, %v2825_v2 }
 0xaeb   : > { %5881 = vmatprep.mubr.msk.bf16.mxu0 %vm1183_vm0, %v2888_v43  ;;  %v3339_v42 = vpop.xlane.xlu0 %3338 }
 0xaec   : > { %5882 = vmatmul.mubr.msk.bf16.vlgmr.msra.gmra.mrb[48].mxu0 %vm1183_vm0, %v2889_v15 }
 0xaed   : > { %5930 = vmatpush3.bf16.msra.mxu0 %v8394_v54  ;;  %v5867_v37 = vpop.f32.mrb[68].mxu0 }
 0xaee   : > { %5931 = vmatprep.subr.bf16.mxu0 %v3413_v62  ;;  %v2841_v18 = vpop.f32.mrb[69].mxu0 }
 0xaef   : > { %v5868_v52 = vpop.f32.mrb[70].mxu0  ;;  %v3345_v48 = vpop.xlane.xlu0 %3344 }
 0xaf0   : > { %v2891_v3 = vpack.c.bf16 %v5868_v52, %v5867_v37  ;;  %v2844_v58 = vpop.f32.mrb[71].mxu0 }
 0xaf1   : > { %v2890_v0 = vpack.c.bf16 %v2844_v58, %v2841_v18  ;;  %5932 = vmatpush3.bf16.msra.mxu0 %v3413_v62 }
 0xaf2   : > { %5933 = vmatprep.subr.bf16.mxu0 %v3415_v7 }
 0xaf3   : > { %5885 = vmatprep.mubr.msk.bf16.mxu0 %vm1183_vm0, %v2890_v0  ;;  %v3351_v47 = vpop.xlane.xlu1 %3350  ;;  %v3341_v60 = vpop.xlane.xlu0 %3340 }
 0xaf4   : > { %5886 = vmatmul.mubr.msk.bf16.gmra.mrb[52].mxu0 %vm1183_vm0, %v2891_v3  ;;  %6539 = vrcp.f32 %v3341_v60 }
 0xaf5   : > { %5934 = vmatpush3.bf16.msra.mxu0 %v3415_v7  ;;  %v5871_v36 = vpop.f32.mrb[72].mxu0  ;;  %6541 = vrcp.f32 %v3339_v42 }
 0xaf6   : > { %5935 = vmatprep.subr.bf16.mxu0 %v3417_v26  ;;  %v2857_v54 = vpop.f32.mrb[73].mxu0  ;;  %6543 = vrcp.f32 %v3345_v48 }
 0xaf7   : > { %v5872_v11 = vpop.f32.mrb[74].mxu0  ;;  %v3347_v34 = vpop.xlane.xlu1 %3346 }
 0xaf8   : > { %v2893_v19 = vpack.c.bf16 %v5872_v11, %v5871_v36  ;;  %v3349_v61 = vpop.xlane.xlu0 %3348  ;;  %v2860_v35 = vpop.f32.mrb[75].mxu0  ;;  %6545 = vrcp.f32 %v3347_v34 }
 0xaf9   : > { %v2892_v53 = vpack.c.bf16 %v2860_v35, %v2857_v54  ;;  %5936 = vmatpush3.bf16.msra.mxu0 %v3417_v26  ;;  %6547 = vrcp.f32 %v3349_v61 }
 0xafa   : > { %5937 = vmatprep.subr.bf16.mxu0 %v3419_v9  ;;  %6549 = vrcp.f32 %v3343_v23  ;;  %v6202_v23 = vld [vmem:[#allocation7 + $0x38] sm:$0xff]  }
 0xafb   : > { %5889 = vmatprep.mubr.msk.bf16.mxu0 %vm1183_vm0, %v2892_v53  ;;  %v3353_v57 = vpop.xlane.xlu1 %3352 }
 0xafc   : > { %v3421_v56 = vpop.permute.xlu0 %3420  ;;  %5890 = vmatmul.mubr.msk.bf16.gmra.mrb[56].mxu0 %vm1183_vm0, %v2893_v19  ;;  %6551 = vrcp.f32 %v3353_v57 }
 0xafd   : > { %5938 = vmatpush3.bf16.msra.mxu0 %v3419_v9  ;;  %6553 = vrcp.f32 %v3351_v47 }
 0xafe   : > { %5939 = vmatprep.subr.bf16.mxu0 %v3421_v56  ;;  %v6540_v27 = vpop.eup %6539 }
 0xaff   : > { %v3423_v4 = vpop.permute.xlu1 %3422  ;;  %v6542_v51 = vpop.eup %6541  ;;  %v3387_v16 = vmul.f32 %v6540_v27, %v8418_v22 }
 0xb00   : > { %v3386_v5 = vmul.f32 %v6542_v51, %v8412_v59  ;;  %v6544_v50 = vpop.eup %6543 }
 0xb01   : > { %5940 = vmatpush3.bf16.msra.mxu0 %v3421_v56  ;;  %v3389_v7 = vmul.f32 %v6544_v50, %v8415_v44 }
 0xb02   : > { %5941 = vmatprep.subr.bf16.mxu0 %v3423_v4  ;;  %v6546_v63 = vpop.eup %6545  ;;  %v3402_v17 = vpack.c.bf16 %v3387_v16, %v3386_v5 }
 0xb03   : > { %v3425_v12 = vpop.permute.xlu1 %3424  ;;  %v6548_v30 = vpop.eup %6547  ;;  %v3390_v31 = vmul.f32 %v6546_v63, %v8424_v8 }
 0xb04   : > { %v6550_v62 = vpop.eup %6549  ;;  %v3391_v2 = vmul.f32 %v6548_v30, %v8426_v33 }
 0xb05   : > { %5942 = vmatpush3.bf16.msra.mxu0 %v3423_v4  ;;  %v3388_v59 = vmul.f32 %v6550_v62, %v8408_v40 }
 0xb06   : > { %5943 = vmatprep.subr.bf16.mxu0 %v3425_v12  ;;  %v6552_v26 = vpop.eup %6551  ;;  %v3404_v32 = vpack.c.bf16 %v3391_v2, %v3390_v31  ;;  %v8509_v31 = vld [vmem:[%s8933_s3] ss:$0 sm:$0xff] }
 0xb07   : > { %v3403_v29 = vpack.c.bf16 %v3389_v7, %v3388_v59  ;;  %v6554_v43 = vpop.eup %6553  ;;  %v3393_v42 = vmul.f32 %v6552_v26, %v8430_v38  ;;  %v9119_v7 = vmov 0   ;;  %v6603_v59 = vld [vmem:[%s7137_s26] sm:$0xff] }
 0xb08   : > { %v3392_v33 = vmul.f32 %v6554_v43, %v8420_v21 }
 0xb09   : > { %5944 = vmatpush3.bf16.msra.mxu0 %v3425_v12 }
 0xb0a   : > { %5961 = vmatprep.subr.bf16.mxu0 %v6201_v41  ;;  %v3405_v40 = vpack.c.bf16 %v3393_v42, %v3392_v33  ;;  %v6605_v42 = vld [vmem:[%s7137_s26 + $0x8] sm:$0xff] }
 0xb21   : > { %v5875_v46 = vpop.f32.mrb[76].mxu0 }
 0xb22   : > { %v2873_v39 = vpop.f32.mrb[77].mxu0 }
 0xb23   : > { %v5876_v45 = vpop.f32.mrb[78].mxu0 }
 0xb24   : > { %v2895_v13 = vpack.c.bf16 %v5876_v45, %v5875_v46  ;;  %v2876_v20 = vpop.f32.mrb[79].mxu0 }
 0xb25   : > { %v2894_v6 = vpack.c.bf16 %v2876_v20, %v2873_v39 }
 0xb27   : > { %5893 = vmatprep.mubr.msk.bf16.mxu0 %vm1183_vm0, %v2894_v6 }
 0xb28   : > { %5894 = vmatmul.mubr.msk.bf16.gmra.mrb[60].mxu0 %vm1183_vm0, %v2895_v13 }
 0xb29   : > { %5945 = vmatprep.mubr.bf16.mxu0 %v3402_v17 }
 0xb2c   : > { %v3355_v22 = vpop.xlane.xlu0 %3354 }
 0xb2d   : > { %6555 = vrcp.f32 %v3355_v22 }
 0xb30   : > { %v3359_v15 = vpop.xlane.xlu0 %3358  ;;  %5946 = vmatmul.mubr.bf16.vlgmr.msra.gmra.mrb[80].mxu0 %v3403_v29 }
 0xb31   : > { %5949 = vmatprep.mubr.bf16.mxu0 %v3404_v32  ;;  %5962 = vmatpush3.bf16.msra.mxu0 %v6201_v41  ;;  %6557 = vrcp.f32 %v3359_v15  ;;  %v6604_v15 = vld [vmem:[%s7137_s26 + $0x10] sm:$0xff] }
 0xb32   : > { %5963 = vmatprep.subr.bf16.mxu0 %v6202_v23 }
 0xb34   : > { %v3357_v44 = vpop.xlane.xlu1 %3356  ;;  %v3361_v8 = vpop.xlane.xlu0 %3360 }
 0xb35   : > { %6559 = vrcp.f32 %v3357_v44  ;;  %5964 = vmatpush3.bf16.msra.mxu0 %v6202_v23 }
 0xb36   : > { %6561 = vrcp.f32 %v3361_v8  ;;  %v6606_v8 = vld [vmem:[%s7137_s26 + $0x18] sm:$0xff] }
 0xb37   : > { %v6556_v48 = vpop.eup %6555 }
 0xb38   : > { %v3363_v37 = vpop.xlane.xlu1 %3362  ;;  %v3365_v9 = vpop.xlane.xlu0 %3364  ;;  %5950 = vmatmul.mubr.bf16.gmra.mrb[84].mxu0 %v3405_v40  ;;  %v3394_v0 = vmul.f32 %v6556_v48, %v8448_v28  ;;  %v6607_v48 = vld [vmem:[%s7137_s26 + $0x20] sm:$0xff] }
 0xb39   : > { %6563 = vrcp.f32 %v3363_v37 }
 0xb3a   : > { %6565 = vrcp.f32 %v3365_v9 }
 0xb3b   : > { %v6558_v38 = vpop.eup %6557 }
 0xb3c   : > { %v3367_v18 = vpop.xlane.xlu1 %3366  ;;  %v3369_v52 = vpop.xlane.xlu0 %3368  ;;  %v3396_v47 = vmul.f32 %v6558_v38, %v8451_v10 }
 0xb3d   : > { %6567 = vrcp.f32 %v3367_v18 }
 0xb3e   : > { %6569 = vrcp.f32 %v3369_v52 }
 0xb3f   : > { %v6560_v3 = vpop.eup %6559 }
 0xb40   : > { %v6562_v58 = vpop.eup %6561  ;;  %v3395_v21 = vmul.f32 %v6560_v3, %v8454_v1 }
 0xb41   : > { %v3397_v60 = vmul.f32 %v6562_v58, %v8456_v14 }
 0xb42   : > { %v3406_v36 = vpack.c.bf16 %v3395_v21, %v3394_v0  ;;  %v6608_v0 = vld [vmem:[%s7137_s26 + $0x30] sm:$0xff] }
 0xb43   : > { %v6564_v54 = vpop.eup %6563  ;;  %v3407_v11 = vpack.c.bf16 %v3397_v60, %v3396_v47  ;;  %v6609_v60 = vld [vmem:[%s7137_s26 + $0x28] sm:$0xff] }
 0xb44   : > { %v6566_v34 = vpop.eup %6565  ;;  %5953 = vmatprep.mubr.bf16.mxu0 %v3406_v36  ;;  %v3398_v19 = vmul.f32 %v6564_v54, %v8460_v25  ;;  %v6610_v54 = vld [vmem:[%s7137_s26 + $0x38] sm:$0xff] }
 0xb45   : > { %5954 = vmatmul.mubr.bf16.gmra.mrb[88].mxu0 %v3407_v11  ;;  %v3399_v61 = vmul.f32 %v6566_v34, %v8462_v49 }
 0xb47   : > { %v6568_v35 = vpop.eup %6567  ;;  %v3408_v53 = vpack.c.bf16 %v3399_v61, %v3398_v19 }
 0xb48   : > { %v6570_v57 = vpop.eup %6569  ;;  %v3400_v28 = vmul.f32 %v6568_v35, %v8466_v55 }
 0xb49   : > { %5957 = vmatprep.mubr.bf16.mxu0 %v3408_v53  ;;  %v3401_v10 = vmul.f32 %v6570_v57, %v8468_v24  ;;  %v6611_v57 = vld [vmem:[%s7137_s26 + $0x40] sm:$0xff] }
 0xb4b   : > { %v3409_v1 = vpack.c.bf16 %v3401_v10, %v3400_v28 }
 0xb4d   : > { %5958 = vmatmul.mubr.bf16.gmra.mrb[92].mxu0 %v3409_v1 }
 0xc03   : > { %v5947_v14 = vpop.f32.mrb[80].mxu0 }
 0xc04   : > { %v3468_v56 = vpop.f32.mrb[81].mxu0 }
 0xc05   : > { %v5948_v4 = vpop.f32.mrb[82].mxu0 }
 0xc06   : > { %v3532_v12 = vpack.c.bf16 %v5948_v4, %v5947_v14  ;;  %v3471_v41 = vpop.f32.mrb[83].mxu0  ;;  %v6612_v14 = vld [vmem:[%s7137_s26 + $0x50] sm:$0xff] }
 0xc07   : > { %v3531_v27 = vpack.c.bf16 %v3471_v41, %v3468_v56 }
 0xc09   : > { %5965 = vmatprep.mubr.msk.bf16.mxu0 %vm1183_vm0, %v3531_v27  ;;  %v6614_v27 = vld [vmem:[%s7137_s26 + $0x58] sm:$0xff] }
 0xc0a   : > { %5966 = vmatmul.mubr.msk.bf16.vlgmr.msra.gmra.mrb[48].mxu0 %vm1183_vm0, %v3532_v12  ;;  %v6613_v12 = vld [vmem:[%s7137_s26 + $0x48] sm:$0xff] }
 0xc0b   : > { %v5951_v25 = vpop.f32.mrb[84].mxu0 }
 0xc0c   : > { %v3484_v49 = vpop.f32.mrb[85].mxu0 }
 0xc0d   : > { %v5952_v46 = vpop.f32.mrb[86].mxu0 }
 0xc0e   : > { %v3534_v51 = vpack.c.bf16 %v5952_v46, %v5951_v25  ;;  %v3487_v55 = vpop.f32.mrb[87].mxu0 }
 0xc0f   : > { %v3533_v39 = vpack.c.bf16 %v3487_v55, %v3484_v49 }
 0xc11   : > { %5969 = vmatprep.mubr.msk.bf16.mxu0 %vm1183_vm0, %v3533_v39 }
 0xc12   : > { %5970 = vmatmul.mubr.msk.bf16.gmra.mrb[52].mxu0 %vm1183_vm0, %v3534_v51 }
 0xc18   : > { %v5955_v24 = vpop.f32.mrb[88].mxu0 }
 0xc19   : > { %v3500_v45 = vpop.f32.mrb[89].mxu0 }
 0xc1a   : > { %v5956_v16 = vpop.f32.mrb[90].mxu0 }
 0xc1b   : > { %v3536_v13 = vpack.c.bf16 %v5956_v16, %v5955_v24  ;;  %v3503_v20 = vpop.f32.mrb[91].mxu0  ;;  %v6615_v24 = vld [vmem:[%s7137_s26 + $0x60] sm:$0xff] }
 0xc1c   : > { %v3535_v6 = vpack.c.bf16 %v3503_v20, %v3500_v45  ;;  %v6616_v20 = vld [vmem:[%s7137_s26 + $0x70] sm:$0xff] }
 0xc1e   : > { %5973 = vmatprep.mubr.msk.bf16.mxu0 %vm1183_vm0, %v3535_v6 }
 0xc1f   : > { %5974 = vmatmul.mubr.msk.bf16.gmra.mrb[56].mxu0 %vm1183_vm0, %v3536_v13 }
 0xc20   : > { %v5959_v5 = vpop.f32.mrb[92].mxu0 }
 0xc21   : > { %v3516_v50 = vpop.f32.mrb[93].mxu0 }
 0xc22   : > { %v5960_v63 = vpop.f32.mrb[94].mxu0 }
 0xc23   : > { %v3538_v17 = vpack.c.bf16 %v5960_v63, %v5959_v5  ;;  %v3519_v30 = vpop.f32.mrb[95].mxu0 }
 0xc24   : > { %v3537_v62 = vpack.c.bf16 %v3519_v30, %v3516_v50  ;;  %v6617_v50 = vld [vmem:[%s7137_s26 + $0x68] sm:$0xff] }
 0xc26   : > { %5977 = vmatprep.mubr.msk.bf16.mxu0 %vm1183_vm0, %v3537_v62 }
 0xc27   : > { %5978 = vmatmul.mubr.msk.bf16.gmra.mrb[60].mxu0 %vm1183_vm0, %v3538_v17  ;;  %v6618_v17 = vld [vmem:[%s7137_s26 + $0x78] sm:$0xff]  ;;  %s4987_s26 = scalar_lea.sflag [#allocation4], %s7131_s15 }
 0xc28   : > { %4320 = vmatprep.mubr.bf16.mxu0 %v9119_v7 }
 0xcdd   : > { %v5967_v22 = vpop.f32.mrb[48].mxu0 }
 0xcde   : > { %v3613_v2 = vpop.f32.mrb[49].mxu0  ;;  %v3694_v32 = vadd.f32 %v6604_v15, %v5967_v22  ;;  %v6211_v15 = vld [vmem:[#allocation8 + $0x24] ss:$16 sps:$4 sm:$0xff]  }
 0xcdf   : > { %v3692_v29 = vadd.f32 %v6603_v59, %v3613_v2  ;;  %v5968_v23 = vpop.f32.mrb[50].mxu0  ;;  %v6203_v59 = vld [vmem:[#allocation8] ss:$16 sps:$4 sm:$0xff]  }
 0xce0   : > { %v3616_v26 = vpop.f32.mrb[51].mxu0  ;;  %v3695_v33 = vadd.f32 %v6606_v8, %v5968_v23  ;;  %v8523_v37 = vadd.f32 %v8509_v31, %v3694_v32  ;;  %v6206_v23 = vld [vmem:[#allocation8 + $0x8] ss:$16 sps:$4 sm:$0xff]   ;;  %v6214_v32 = vld [vmem:[#allocation8 + $0x2c] ss:$16 sps:$4 sm:$0xff]  }
 0xce1   : > { %v8514_v43 = vadd.f32 %v8509_v31, %v3692_v29  ;;  %v3693_v44 = vadd.f32 %v6605_v42, %v3616_v26  ;;  %v6205_v29 = vld [vmem:[#allocation8 + $0x4] ss:$16 sps:$4 sm:$0xff]   ;;  %v6208_v26 = vld [vmem:[#allocation8 + $0xc] ss:$16 sps:$4 sm:$0xff]   ;;  %v6209_v42 = vld [vmem:[#allocation8 + $0x20] ss:$16 sps:$4 sm:$0xff]  }
 0xce2   : > { %v8527_v52 = vadd.f32 %v8509_v31, %v3695_v33  ;;  %4175 = vmatprep.subr.bf16.mxu1 %v6205_v29  ;;  %4288 = vmatprep.subr.bf16.mxu0 %v6208_v26  ;;  %v6223_v26 = vld [vmem:[#allocation8 + $0x64] ss:$16 sps:$4 sm:$0xff]  }
 0xce3   : > { %v8519_v40 = vadd.f32 %v8509_v31, %v3693_v44  ;;  %3733 = vadd.xlane.f32.xlu1 %v8514_v43  ;;  %4176 = vmatpush1.bf16.msra.mxu1 %v6203_v59  ;;  %v6212_v44 = vld [vmem:[#allocation8 + $0x28] ss:$16 sps:$4 sm:$0xff]  }
 0xce4   : > { %4289 = vmatpush1.bf16.msra.mxu0 %v6206_v23  ;;  %4177 = vmatprep.subr.bf16.mxu1 %v6211_v15  ;;  %v6226_v15 = vld [vmem:[#allocation8 + $0x6c] ss:$16 sps:$4 sm:$0xff]  }
 0xce5   : > { %3735 = vadd.xlane.f32.xlu0 %v8519_v40  ;;  %v5971_v9 = vpop.f32.mrb[52].mxu0  ;;  %4290 = vmatprep.subr.bf16.mxu0 %v6214_v32 }
 0xce6   : > { %v3629_v18 = vpop.f32.mrb[53].mxu0  ;;  %v3698_v21 = vadd.f32 %v6608_v0, %v5971_v9 }
 0xce7   : > { %v3696_v38 = vadd.f32 %v6607_v48, %v3629_v18  ;;  %3737 = vadd.xlane.f32.xlu1 %v8523_v37  ;;  %v5972_v3 = vpop.f32.mrb[54].mxu0  ;;  %4178 = vmatpush1.bf16.msra.mxu1 %v6209_v42 }
 0xce8   : > { %v3632_v58 = vpop.f32.mrb[55].mxu0  ;;  %v3699_v11 = vadd.f32 %v6610_v54, %v5972_v3  ;;  %v8543_v19 = vadd.f32 %v8509_v31, %v3698_v21  ;;  %4291 = vmatpush1.bf16.msra.mxu0 %v6212_v44 }
 0xce9   : > { %v8533_v47 = vadd.f32 %v8509_v31, %v3696_v38  ;;  %v3697_v36 = vadd.f32 %v6609_v60, %v3632_v58  ;;  %3739 = vadd.xlane.f32.xlu0 %v8527_v52 }
 0xcea   : > { %v8547_v61 = vadd.f32 %v8509_v31, %v3699_v11 }
 0xceb   : > { %v8539_v34 = vadd.f32 %v8509_v31, %v3697_v36  ;;  %3741 = vadd.xlane.f32.xlu1 %v8533_v47 }
 0xced   : > { %3743 = vadd.xlane.f32.xlu0 %v8539_v34 }
 0xcef   : > { %3745 = vadd.xlane.f32.xlu1 %v8543_v19 }
 0xcf1   : > { %3747 = vadd.xlane.f32.xlu0 %v8547_v61 }
 0xcf2   : > { %v5975_v35 = vpop.f32.mrb[56].mxu0 }
 0xcf3   : > { %v3645_v53 = vpop.f32.mrb[57].mxu0  ;;  %v3702_v56 = vadd.f32 %v6612_v14, %v5975_v35 }
 0xcf4   : > { %v3700_v28 = vadd.f32 %v6611_v57, %v3645_v53  ;;  %v5976_v10 = vpop.f32.mrb[58].mxu0 }
 0xcf5   : > { %v3648_v1 = vpop.f32.mrb[59].mxu0  ;;  %v3703_v25 = vadd.f32 %v6614_v27, %v5976_v10  ;;  %v8563_v46 = vadd.f32 %v8509_v31, %v3702_v56 }
 0xcf6   : > { %v8554_v4 = vadd.f32 %v8509_v31, %v3700_v28  ;;  %v3701_v41 = vadd.f32 %v6613_v12, %v3648_v1 }
 0xcf7   : > { %v8567_v39 = vadd.f32 %v8509_v31, %v3703_v25 }
 0xcf8   : > { %v8559_v49 = vadd.f32 %v8509_v31, %v3701_v41  ;;  %3749 = vadd.xlane.f32.xlu1 %v8554_v4 }
 0xcfa   : > { %3751 = vadd.xlane.f32.xlu0 %v8559_v49  ;;  %v5979_v51 = vpop.f32.mrb[60].mxu0 }
 0xcfb   : > { %v3661_v55 = vpop.f32.mrb[61].mxu0  ;;  %v3706_v6 = vadd.f32 %v6616_v20, %v5979_v51  ;;  %v6217_v20 = vld [vmem:[#allocation8 + $0x44] ss:$16 sps:$4 sm:$0xff]  }
 0xcfc   : > { %v3704_v45 = vadd.f32 %v6615_v24, %v3661_v55  ;;  %3753 = vadd.xlane.f32.xlu1 %v8563_v46  ;;  %v5980_v16 = vpop.f32.mrb[62].mxu0  ;;  %4179 = vmatprep.subr.bf16.mxu1 %v6217_v20  ;;  %v6236_v20 = vld [vmem:[#allocation8 + $0xa8] ss:$16 sps:$4 sm:$0xff]  }
 0xcfd   : > { %v3664_v13 = vpop.f32.mrb[63].mxu0  ;;  %v3707_v30 = vadd.f32 %v6618_v17, %v5980_v16  ;;  %v8583_v22 = vadd.f32 %v8509_v31, %v3706_v6  ;;  %v6220_v6 = vld [vmem:[#allocation8 + $0x4c] ss:$16 sps:$4 sm:$0xff]   ;;  %v6218_v17 = vld [vmem:[#allocation8 + $0x48] ss:$16 sps:$4 sm:$0xff]  }
 0xcfe   : > { %v8573_v5 = vadd.f32 %v8509_v31, %v3704_v45  ;;  %v3705_v63 = vadd.f32 %v6617_v50, %v3664_v13  ;;  %3755 = vadd.xlane.f32.xlu0 %v8567_v39  ;;  %4292 = vmatprep.subr.bf16.mxu0 %v6220_v6 }
 0xcff   : > { %v8587_v2 = vadd.f32 %v8509_v31, %v3707_v30  ;;  %4293 = vmatpush1.bf16.msra.mxu0 %v6218_v17 }
 0xd00   : > { %v8579_v62 = vadd.f32 %v8509_v31, %v3705_v63  ;;  %3757 = vadd.xlane.f32.xlu1 %v8573_v5  ;;  %v6215_v63 = vld [vmem:[#allocation8 + $0x40] ss:$16 sps:$4 sm:$0xff]   ;;  %4294 = vmatprep.subr.bf16.mxu0 %v6226_v15 }
 0xd01   : > { %4180 = vmatpush1.bf16.msra.mxu1 %v6215_v63  ;;  %v6239_v15 = vld [vmem:[#allocation8 + $0xc0] ss:$16 sps:$4 sm:$0xff]  }
 0xd02   : > { %3759 = vadd.xlane.f32.xlu0 %v8579_v62  ;;  %4181 = vmatprep.subr.bf16.mxu1 %v6223_v26 }
 0xd04   : > { %3761 = vadd.xlane.f32.xlu1 %v8583_v22 }
 0xd06   : > { %3763 = vadd.xlane.f32.xlu0 %v8587_v2 }
 0xd70   : > { %v3734_v31 = vpop.xlane.xlu1 %3733 }
 0xd71   : > { %v3765_v8 = vmul.f32 0.0078125, %v3734_v31  ;;  %v6221_v31 = vld [vmem:[#allocation8 + $0x60] ss:$16 sps:$4 sm:$0xff]  }
 0xd72   : > { %v3736_v33 = vpop.xlane.xlu0 %3735  ;;  %4182 = vmatpush1.bf16.msra.mxu1 %v6221_v31  ;;  %v6247_v31 = vld [vmem:[#allocation8 + $0xe4] ss:$16 sps:$4 sm:$0xff]  }
 0xd73   : > { %v8592_v9 = vsub.f32 %v8514_v43, %v3765_v8  ;;  %v3766_v18 = vmul.f32 0.0078125, %v3736_v33  ;;  %v6224_v8 = vld [vmem:[#allocation8 + $0x68] ss:$16 sps:$4 sm:$0xff]  }
 0xd74   : > { %v3738_v48 = vpop.xlane.xlu1 %3737  ;;  %4295 = vmatpush1.bf16.msra.mxu0 %v6224_v8  ;;  %v6250_v8 = vld [vmem:[#allocation8 + $0xec] ss:$16 sps:$4 sm:$0xff]  }
 0xd75   : > { %v8595_v38 = vsub.f32 %v8519_v40, %v3766_v18  ;;  %v3767_v3 = vmul.f32 0.0078125, %v3738_v48  ;;  %v3797_v58 = vmul.f32 %v8592_v9, %v8592_v9 }
 0xd76   : > { %v3740_v0 = vpop.xlane.xlu0 %3739 }
 0xd77   : > { %v8600_v21 = vsub.f32 %v8523_v37, %v3767_v3  ;;  %v3768_v60 = vmul.f32 0.0078125, %v3740_v0  ;;  %3813 = vadd.xlane.f32.xlu1 %v3797_v58  ;;  %v3798_v36 = vmul.f32 %v8595_v38, %v8595_v38  ;;  %v6229_v0 = vld [vmem:[#allocation8 + $0x84] ss:$16 sps:$4 sm:$0xff]  }
 0xd78   : > { %v3742_v54 = vpop.xlane.xlu1 %3741  ;;  %4183 = vmatprep.subr.bf16.mxu1 %v6229_v0 }
 0xd79   : > { %v8605_v11 = vsub.f32 %v8527_v52, %v3768_v60  ;;  %v3769_v35 = vmul.f32 0.0078125, %v3742_v54  ;;  %3815 = vadd.xlane.f32.xlu0 %v3798_v36  ;;  %v3799_v53 = vmul.f32 %v8600_v21, %v8600_v21  ;;  %v6232_v60 = vld [vmem:[#allocation8 + $0x8c] ss:$16 sps:$4 sm:$0xff]  }
 0xd7a   : > { %v3744_v57 = vpop.xlane.xlu0 %3743  ;;  %4296 = vmatprep.subr.bf16.mxu0 %v6232_v60 }
 0xd7b   : > { %v8610_v28 = vsub.f32 %v8533_v47, %v3769_v35  ;;  %v3770_v10 = vmul.f32 0.0078125, %v3744_v57  ;;  %3817 = vadd.xlane.f32.xlu1 %v3799_v53  ;;  %v3800_v1 = vmul.f32 %v8605_v11, %v8605_v11  ;;  %v6227_v53 = vld [vmem:[#allocation8 + $0x80] ss:$16 sps:$4 sm:$0xff]   ;;  %v6230_v57 = vld [vmem:[#allocation8 + $0x88] ss:$16 sps:$4 sm:$0xff]  }
 0xd7c   : > { %v3746_v14 = vpop.xlane.xlu1 %3745  ;;  %4184 = vmatpush1.bf16.msra.mxu1 %v6227_v53  ;;  %4297 = vmatpush1.bf16.msra.mxu0 %v6230_v57 }
 0xd7d   : > { %v8615_v56 = vsub.f32 %v8539_v34, %v3770_v10  ;;  %v3771_v12 = vmul.f32 0.0078125, %v3746_v14  ;;  %3819 = vadd.xlane.f32.xlu0 %v3800_v1  ;;  %v3801_v41 = vmul.f32 %v8610_v28, %v8610_v28 }
 0xd7e   : > { %v3748_v27 = vpop.xlane.xlu0 %3747 }
 0xd7f   : > { %v8620_v25 = vsub.f32 %v8543_v19, %v3771_v12  ;;  %v3772_v51 = vmul.f32 0.0078125, %v3748_v27  ;;  %3821 = vadd.xlane.f32.xlu1 %v3801_v41  ;;  %v3802_v55 = vmul.f32 %v8615_v56, %v8615_v56  ;;  %v6235_v27 = vld [vmem:[#allocation8 + $0xa4] ss:$16 sps:$4 sm:$0xff]  }
 0xd80   : > { %4185 = vmatprep.subr.bf16.mxu1 %v6235_v27 }
 0xd81   : > { %v8625_v24 = vsub.f32 %v8547_v61, %v3772_v51  ;;  %3823 = vadd.xlane.f32.xlu0 %v3802_v55  ;;  %v3803_v45 = vmul.f32 %v8620_v25, %v8620_v25  ;;  %v6238_v51 = vld [vmem:[#allocation8 + $0xac] ss:$16 sps:$4 sm:$0xff]  }
 0xd82   : > { %4298 = vmatprep.subr.bf16.mxu0 %v6238_v51 }
 0xd83   : > { %3825 = vadd.xlane.f32.xlu1 %v3803_v45  ;;  %v3804_v16 = vmul.f32 %v8625_v24, %v8625_v24  ;;  %4299 = vmatpush1.bf16.msra.mxu0 %v6236_v20 }
 0xd85   : > { %v3750_v13 = vpop.xlane.xlu1 %3749  ;;  %3827 = vadd.xlane.f32.xlu0 %v3804_v16 }
 0xd86   : > { %v3773_v50 = vmul.f32 0.0078125, %v3750_v13  ;;  %v6233_v13 = vld [vmem:[#allocation8 + $0xa0] ss:$16 sps:$4 sm:$0xff]  }
 0xd87   : > { %v3752_v30 = vpop.xlane.xlu0 %3751  ;;  %4186 = vmatpush1.bf16.msra.mxu1 %v6233_v13 }
 0xd88   : > { %v8632_v59 = vsub.f32 %v8554_v4, %v3773_v50  ;;  %v3774_v29 = vmul.f32 0.0078125, %v3752_v30  ;;  %v6241_v30 = vld [vmem:[#allocation8 + $0xc4] ss:$16 sps:$4 sm:$0xff]  }
 0xd89   : > { %v3754_v23 = vpop.xlane.xlu1 %3753  ;;  %4187 = vmatprep.subr.bf16.mxu1 %v6241_v30 }
 0xd8a   : > { %v8635_v32 = vsub.f32 %v8559_v49, %v3774_v29  ;;  %v3775_v42 = vmul.f32 0.0078125, %v3754_v23  ;;  %v3805_v44 = vmul.f32 %v8632_v59, %v8632_v59  ;;  %v6244_v29 = vld [vmem:[#allocation8 + $0xcc] ss:$16 sps:$4 sm:$0xff]  }
 0xd8b   : > { %v3756_v33 = vpop.xlane.xlu0 %3755  ;;  %4300 = vmatprep.subr.bf16.mxu0 %v6244_v29  ;;  %4188 = vmatpush1.bf16.msra.mxu1 %v6239_v15 }
 0xd8c   : > { %v8640_v18 = vsub.f32 %v8563_v46, %v3775_v42  ;;  %v3776_v48 = vmul.f32 0.0078125, %v3756_v33  ;;  %3829 = vadd.xlane.f32.xlu1 %v3805_v44  ;;  %v3806_v3 = vmul.f32 %v8635_v32, %v8635_v32  ;;  %v6242_v42 = vld [vmem:[#allocation8 + $0xc8] ss:$16 sps:$4 sm:$0xff]   ;;  %v6245_v33 = vld [vmem:[#allocation8 + $0xe0] ss:$16 sps:$4 sm:$0xff]   ;;  %4189 = vmatprep.subr.bf16.mxu1 %v6247_v31 }
 0xd8d   : > { %v3758_v58 = vpop.xlane.xlu1 %3757  ;;  %4301 = vmatpush1.bf16.msra.mxu0 %v6242_v42 }
 0xd8e   : > { %v8645_v36 = vsub.f32 %v8567_v39, %v3776_v48  ;;  %v3777_v54 = vmul.f32 0.0078125, %v3758_v58  ;;  %3831 = vadd.xlane.f32.xlu0 %v3806_v3  ;;  %v3807_v35 = vmul.f32 %v8640_v18, %v8640_v18  ;;  %v6248_v48 = vld [vmem:[#allocation8 + $0xe8] ss:$16 sps:$4 sm:$0xff]   ;;  %4302 = vmatprep.subr.bf16.mxu0 %v6250_v8  ;;  %v6251_v3 = vld [vmem:[#allocation10 + $0x40] sm:$0xff]  }
 0xd8f   : > { %v3760_v10 = vpop.xlane.xlu0 %3759  ;;  %4190 = vmatpush1.bf16.msra.mxu1 %v6245_v33  ;;  %v6253_v58 = vld [vmem:[#allocation10 + $0xc0] sm:$0xff]  }
 0xd90   : > { %v8650_v1 = vsub.f32 %v8573_v5, %v3777_v54  ;;  %v3778_v14 = vmul.f32 0.0078125, %v3760_v10  ;;  %3833 = vadd.xlane.f32.xlu1 %v3807_v35  ;;  %v3808_v12 = vmul.f32 %v8645_v36, %v8645_v36  ;;  %5485 = vmatprep.subr.bf16.mxu1 %v6251_v3 }
 0xd91   : > { %v3762_v41 = vpop.xlane.xlu1 %3761  ;;  %4303 = vmatpush1.bf16.msra.mxu0 %v6248_v48 }
 0xd92   : > { %v8655_v55 = vsub.f32 %v8579_v62, %v3778_v14  ;;  %v3779_v45 = vmul.f32 0.0078125, %v3762_v41  ;;  %3835 = vadd.xlane.f32.xlu0 %v3808_v12  ;;  %v3809_v16 = vmul.f32 %v8650_v1, %v8650_v1  ;;  %5549 = vmatprep.subr.bf16.mxu0 %v6253_v58  ;;  %v8682_v58 = vld [vmem:[%s8941_s11] ss:$0 sm:$0xff] }
 0xd93   : > { %v3764_v6 = vpop.xlane.xlu0 %3763 }
 0xd94   : > { %v8660_v50 = vsub.f32 %v8583_v22, %v3779_v45  ;;  %v3780_v63 = vmul.f32 0.0078125, %v3764_v6  ;;  %3837 = vadd.xlane.f32.xlu1 %v3809_v16  ;;  %v3810_v17 = vmul.f32 %v8655_v55, %v8655_v55 }
 0xd96   : > { %v8665_v23 = vsub.f32 %v8587_v2, %v3780_v63  ;;  %3839 = vadd.xlane.f32.xlu0 %v3810_v17  ;;  %v3811_v26 = vmul.f32 %v8660_v50, %v8660_v50 }
 0xd98   : > { %3841 = vadd.xlane.f32.xlu1 %v3811_v26  ;;  %v3812_v44 = vmul.f32 %v8665_v23, %v8665_v23  ;;  %v8674_v26 = vld [vmem:[%s8940_s10] ss:$0 sm:$0xff] }
 0xd9a   : > { %3843 = vadd.xlane.f32.xlu0 %v3812_v44 }
 0xe04   : > { %v3814_v0 = vpop.xlane.xlu1 %3813 }
 0xe05   : > { %v3845_v60 = vmul.f32 0.0078125, %v3814_v0 }
 0xe06   : > { %v3816_v54 = vpop.xlane.xlu0 %3815 }
 0xe07   : > { %v3861_v35 = vadd.f32 1e-05, %v3845_v60  ;;  %v3846_v53 = vmul.f32 0.0078125, %v3816_v54 }
 0xe08   : > { %v3818_v57 = vpop.xlane.xlu1 %3817 }
 0xe09   : > { %6571 = vrsqrt.f32 %v3861_v35  ;;  %v3862_v10 = vadd.f32 1e-05, %v3846_v53  ;;  %v3847_v14 = vmul.f32 0.0078125, %v3818_v57 }
 0xe0a   : > { %v3820_v12 = vpop.xlane.xlu0 %3819 }
 0xe0b   : > { %6573 = vrsqrt.f32 %v3862_v10  ;;  %v3863_v41 = vadd.f32 1e-05, %v3847_v14  ;;  %v3848_v27 = vmul.f32 0.0078125, %v3820_v12 }
 0xe0c   : > { %v3822_v51 = vpop.xlane.xlu1 %3821 }
 0xe0d   : > { %6575 = vrsqrt.f32 %v3863_v41  ;;  %v3864_v45 = vadd.f32 1e-05, %v3848_v27  ;;  %v3849_v16 = vmul.f32 0.0078125, %v3822_v51  ;;  %v6252_v27 = vld [vmem:[#allocation10] sm:$0xff]  }
 0xe0e   : > { %v3824_v13 = vpop.xlane.xlu0 %3823 }
 0xe0f   : > { %6577 = vrsqrt.f32 %v3864_v45  ;;  %v3850_v20 = vmul.f32 0.0078125, %v3824_v13  ;;  %v3865_v6 = vadd.f32 1e-05, %v3849_v16  ;;  %v6254_v16 = vld [vmem:[#allocation10 + $0x80] sm:$0xff]   ;;  %v6255_v13 = vld [vmem:[#allocation10 + $0x48] sm:$0xff]  }
 0xe10   : > { %v3826_v17 = vpop.xlane.xlu1 %3825 }
 0xe11   : > { %v3866_v63 = vadd.f32 1e-05, %v3850_v20  ;;  %v3851_v31 = vmul.f32 0.0078125, %v3826_v17 }
 0xe12   : > { %v3828_v30 = vpop.xlane.xlu0 %3827 }
 0xe13   : > { %v6572_v29 = vpop.eup %6571  ;;  %6579 = vrsqrt.f32 %v3866_v63  ;;  %v3852_v15 = vmul.f32 0.0078125, %v3828_v30  ;;  %v3867_v54 = vadd.f32 1e-05, %v3851_v31 }
 0xe14   : > { %v3893_v42 = vmul.f32 %v6572_v29, %v8592_v9  ;;  %6581 = vrsqrt.f32 %v3865_v6  ;;  %v6257_v6 = vld [vmem:[#allocation10 + $0xc8] sm:$0xff]  }
 0xe15   : > { %v6574_v44 = vpop.eup %6573  ;;  %v3868_v3 = vadd.f32 1e-05, %v3852_v15  ;;  %v6256_v29 = vld [vmem:[#allocation10 + $0x8] sm:$0xff]  }
 0xe16   : > { %v3915_v8 = vmul.f32 %v8674_v26, %v3893_v42  ;;  %v3894_v33 = vmul.f32 %v6574_v44, %v8595_v38  ;;  %v6258_v42 = vld [vmem:[#allocation10 + $0x88] sm:$0xff]   ;;  %v6259_v44 = vld [vmem:[#allocation10 + $0x50] sm:$0xff]  }
 0xe17   : > { %v6576_v48 = vpop.eup %6575  ;;  %6583 = vrsqrt.f32 %v3868_v3 }
 0xe18   : > { %v3916_v0 = vmul.f32 %v8674_v26, %v3894_v33  ;;  %v3937_v53 = vadd.f32 %v8682_v58, %v3915_v8  ;;  %v3895_v10 = vmul.f32 %v6576_v48, %v8600_v21  ;;  %6585 = vrsqrt.f32 %v3867_v54 }
 0xe19   : > { %v6578_v60 = vpop.eup %6577  ;;  %v3830_v35 = vpop.xlane.xlu1 %3829 }
 0xe1a   : > { %v3938_v57 = vadd.f32 %v8682_v58, %v3916_v0  ;;  %v3896_v38 = vmul.f32 %v6578_v60, %v8605_v11  ;;  %v3853_v45 = vmul.f32 0.0078125, %v3830_v35  ;;  %v3917_v20 = vmul.f32 %v8674_v26, %v3895_v10  ;;  %v6261_v60 = vld [vmem:[#allocation10 + $0xd0] sm:$0xff]  }
 0xe1b   : > { %v3832_v9 = vpop.xlane.xlu0 %3831 }
 0xe1c   : > { %v3854_v14 = vmul.f32 0.0078125, %v3832_v9  ;;  %v3953_v12 = vpack.c.bf16 %v3938_v57, %v3937_v53  ;;  %v3918_v41 = vmul.f32 %v8674_v26, %v3896_v38  ;;  %v3869_v15 = vadd.f32 1e-05, %v3853_v45  ;;  %v6262_v9 = vld [vmem:[#allocation10 + $0x90] sm:$0xff]   ;;  %v6263_v53 = vld [vmem:[#allocation10 + $0x58] sm:$0xff]  }
 0xe1d   : > { %v6580_v51 = vpop.eup %6579  ;;  %v3834_v31 = vpop.xlane.xlu1 %3833  ;;  %v3939_v8 = vadd.f32 %v8682_v58, %v3917_v20  ;;  %v6265_v57 = vld [vmem:[#allocation10 + $0xd8] sm:$0xff]  }
 0xe1e   : > { %4208 = vmatmul.mubr.bf16.vlgmr.msra.gmra.mrb[96].mxu1 %v3953_v12  ;;  %4321 = vmatmul.mubr.bf16.vlgmr.msra.gmra.mrb[96].mxu0 %v3953_v12  ;;  %v6582_v63 = vpop.eup %6581  ;;  %v3870_v21 = vadd.f32 1e-05, %v3854_v14  ;;  %v3940_v17 = vadd.f32 %v8682_v58, %v3918_v41  ;;  %v3898_v30 = vmul.f32 %v6580_v51, %v8615_v56  ;;  %v6260_v56 = vld [vmem:[#allocation10 + $0x10] sm:$0xff]   ;;  %v3855_v35 = vmul.f32 0.0078125, %v3834_v31  ;;  %v6266_v45 = vld [vmem:[#allocation10 + $0x98] sm:$0xff]  }
 0xe1f   : > { %4217 = vmatprep.mubr.bf16.mxu1 %v9119_v7  ;;  %4330 = vmatprep.mubr.bf16.mxu0 %v9119_v7  ;;  %v3836_v11 = vpop.xlane.xlu0 %3835  ;;  %v3897_v33 = vmul.f32 %v6582_v63, %v8610_v28 }
 0xe20   : > { %5486 = vmatpush3.bf16.msra.mxu1 %v6252_v27  ;;  %5550 = vmatpush3.bf16.msra.mxu0 %v6254_v16  ;;  %6587 = vrsqrt.f32 %v3870_v21  ;;  %v3856_v48 = vmul.f32 0.0078125, %v3836_v11  ;;  %v3954_v3 = vpack.c.bf16 %v3940_v17, %v3939_v8  ;;  %v3920_v0 = vmul.f32 %v8674_v26, %v3898_v30  ;;  %v6264_v27 = vld [vmem:[#allocation10 + $0x18] sm:$0xff]   ;;  %v6267_v16 = vld [vmem:[#allocation10 + $0x60] sm:$0xff]   ;;  %v6273_v8 = vld [vmem:[#allocation10 + $0xe8] sm:$0xff]  }
 0xe21   : > { %5487 = vmatprep.subr.bf16.mxu1 %v6255_v13  ;;  %5551 = vmatprep.subr.bf16.mxu0 %v6257_v6  ;;  %v6584_v54 = vpop.eup %6583  ;;  %6589 = vrsqrt.f32 %v3869_v15  ;;  %v3919_v28 = vmul.f32 %v8674_v26, %v3897_v33  ;;  %v3871_v51 = vadd.f32 1e-05, %v3855_v35  ;;  %v3838_v13 = vpop.xlane.xlu1 %3837  ;;  %v6271_v15 = vld [vmem:[#allocation10 + $0x68] sm:$0xff]  }
 0xe22   : > { %v6586_v10 = vpop.eup %6585  ;;  %v3872_v38 = vadd.f32 1e-05, %v3856_v48  ;;  %v3942_v12 = vadd.f32 %v8682_v58, %v3920_v0  ;;  %v3900_v41 = vmul.f32 %v6584_v54, %v8625_v24  ;;  %v6268_v24 = vld [vmem:[#allocation10 + $0x20] sm:$0xff]   ;;  %v3857_v30 = vmul.f32 0.0078125, %v3838_v13  ;;  %v6272_v0 = vld [vmem:[#allocation10 + $0x28] sm:$0xff]  }
 0xe23   : > { %v3840_v14 = vpop.xlane.xlu0 %3839  ;;  %v3941_v20 = vadd.f32 %v8682_v58, %v3919_v28  ;;  %v3899_v6 = vmul.f32 %v6586_v10, %v8620_v25  ;;  %v6270_v25 = vld [vmem:[#allocation10 + $0xa0] sm:$0xff]   ;;  %v6276_v10 = vld [vmem:[#allocation10 + $0x30] sm:$0xff]  }
 0xe24   : > { %5488 = vmatpush3.bf16.msra.mxu1 %v6256_v29  ;;  %5552 = vmatpush3.bf16.msra.mxu0 %v6258_v42  ;;  %6591 = vrsqrt.f32 %v3872_v38  ;;  %v3858_v63 = vmul.f32 0.0078125, %v3840_v14  ;;  %v3922_v11 = vmul.f32 %v8674_v26, %v3900_v41  ;;  %v6269_v29 = vld [vmem:[#allocation10 + $0xe0] sm:$0xff]  }
 0xe25   : > { %5489 = vmatprep.subr.bf16.mxu1 %v6259_v44  ;;  %5553 = vmatprep.subr.bf16.mxu0 %v6261_v60  ;;  %v3955_v21 = vpack.c.bf16 %v3942_v12, %v3941_v20  ;;  %6593 = vrsqrt.f32 %v3871_v51  ;;  %v3921_v42 = vmul.f32 %v8674_v26, %v3899_v6  ;;  %v6275_v60 = vld [vmem:[#allocation10 + $0x70] sm:$0xff]   ;;  %v3842_v54 = vpop.xlane.xlu1 %3841 }
 0xe26   : > { %4218 = vmatmul.mubr.bf16.gmra.mrb[100].mxu1 %v3954_v3  ;;  %4331 = vmatmul.mubr.bf16.gmra.mrb[100].mxu0 %v3954_v3  ;;  %v3874_v31 = vadd.f32 1e-05, %v3858_v63  ;;  %v3944_v48 = vadd.f32 %v8682_v58, %v3922_v11  ;;  %v3859_v14 = vmul.f32 0.0078125, %v3842_v54  ;;  %v6277_v12 = vld [vmem:[#allocation10 + $0xf0] sm:$0xff]   ;;  %v6279_v54 = vld [vmem:[#allocation10 + $0x78] sm:$0xff]  }
 0xe27   : > { %4227 = vmatprep.mubr.bf16.mxu1 %v9119_v7  ;;  %4340 = vmatprep.mubr.bf16.mxu0 %v9119_v7  ;;  %v3844_v33 = vpop.xlane.xlu0 %3843  ;;  %v3943_v35 = vadd.f32 %v8682_v58, %v3921_v42 }
 0xe28   : > { %5490 = vmatpush3.bf16.msra.mxu1 %v6260_v56  ;;  %5554 = vmatpush3.bf16.msra.mxu0 %v6262_v9  ;;  %v3873_v56 = vadd.f32 1e-05, %v3857_v30  ;;  %6595 = vrsqrt.f32 %v3874_v31  ;;  %v3875_v13 = vadd.f32 1e-05, %v3859_v14 }
 0xe29   : > { %5491 = vmatprep.subr.bf16.mxu1 %v6263_v53  ;;  %5555 = vmatprep.subr.bf16.mxu0 %v6265_v57  ;;  %v3860_v53 = vmul.f32 0.0078125, %v3844_v33  ;;  %v3956_v28 = vpack.c.bf16 %v3944_v48, %v3943_v35  ;;  %v6280_v35 = vld [vmem:[#allocation10 + $0x38] sm:$0xff]  }
 0xe2a   : > { %v6588_v17 = vpop.eup %6587  ;;  %6597 = vrsqrt.f32 %v3873_v56 }
 0xe2b   : > { %v6590_v44 = vpop.eup %6589  ;;  %v3902_v3 = vmul.f32 %v6588_v17, %v8635_v32  ;;  %v6274_v32 = vld [vmem:[#allocation10 + $0xa8] sm:$0xff]  }
 0xe2c   : > { %5492 = vmatpush3.bf16.msra.mxu1 %v6264_v27  ;;  %5556 = vmatpush3.bf16.msra.mxu0 %v6266_v45  ;;  %v3901_v9 = vmul.f32 %v6590_v44, %v8632_v59  ;;  %v3876_v27 = vadd.f32 1e-05, %v3860_v53 }
 0xe2d   : > { %5493 = vmatprep.subr.bf16.mxu1 %v6267_v16  ;;  %5557 = vmatprep.subr.bf16.mxu0 %v6269_v29  ;;  %v3924_v57 = vmul.f32 %v8674_v26, %v3902_v3  ;;  %v6278_v16 = vld [vmem:[#allocation10 + $0xb0] sm:$0xff]  }
 0xe2e   : > { %4228 = vmatmul.mubr.bf16.gmra.mrb[104].mxu1 %v3955_v21  ;;  %4341 = vmatmul.mubr.bf16.gmra.mrb[104].mxu0 %v3955_v21  ;;  %v6592_v38 = vpop.eup %6591  ;;  %v3923_v41 = vmul.f32 %v8674_v26, %v3901_v9  ;;  %6599 = vrsqrt.f32 %v3876_v27  ;;  %v6282_v9 = vld [vmem:[#allocation10 + $0xb8] sm:$0xff]  }
 0xe2f   : > { %4237 = vmatprep.mubr.bf16.mxu1 %v9119_v7  ;;  %4350 = vmatprep.mubr.bf16.mxu0 %v9119_v7  ;;  %v6594_v59 = vpop.eup %6593  ;;  %v3946_v51 = vadd.f32 %v8682_v58, %v3924_v57  ;;  %v3904_v45 = vmul.f32 %v6592_v38, %v8645_v36  ;;  %6601 = vrsqrt.f32 %v3875_v13 }
 0xe30   : > { %5494 = vmatpush3.bf16.msra.mxu1 %v6268_v24  ;;  %5558 = vmatpush3.bf16.msra.mxu0 %v6270_v25  ;;  %v3945_v20 = vadd.f32 %v8682_v58, %v3923_v41  ;;  %v3903_v6 = vmul.f32 %v6594_v59, %v8640_v18 }
 0xe31   : > { %5495 = vmatprep.subr.bf16.mxu1 %v6271_v15  ;;  %5559 = vmatprep.subr.bf16.mxu0 %v6273_v8  ;;  %v3926_v21 = vmul.f32 %v8674_v26, %v3904_v45 }
 0xe32   : > { %v3957_v63 = vpack.c.bf16 %v3946_v51, %v3945_v20  ;;  %v6596_v11 = vpop.eup %6595  ;;  %v3925_v36 = vmul.f32 %v8674_v26, %v3903_v6 }
 0xe33   : > { %v3948_v17 = vadd.f32 %v8682_v58, %v3926_v21  ;;  %v3906_v18 = vmul.f32 %v6596_v11, %v8655_v55 }
 0xe34   : > { %5496 = vmatpush3.bf16.msra.mxu1 %v6272_v0  ;;  %5560 = vmatpush3.bf16.msra.mxu0 %v6274_v32  ;;  %v6598_v24 = vpop.eup %6597  ;;  %v3947_v30 = vadd.f32 %v8682_v58, %v3925_v36 }
 0xe35   : > { %5497 = vmatprep.subr.bf16.mxu1 %v6275_v60  ;;  %5561 = vmatprep.subr.bf16.mxu0 %v6277_v12  ;;  %v3905_v29 = vmul.f32 %v6598_v24, %v8650_v1  ;;  %v3928_v42 = vmul.f32 %v8674_v26, %v3906_v18 }
 0xe36   : > { %4238 = vmatmul.mubr.bf16.gmra.mrb[108].mxu1 %v3956_v28  ;;  %4351 = vmatmul.mubr.bf16.gmra.mrb[108].mxu0 %v3956_v28  ;;  %v3958_v15 = vpack.c.bf16 %v3948_v17, %v3947_v30 }
 0xe37   : > { %4247 = vmatprep.mubr.bf16.mxu1 %v9119_v7  ;;  %4360 = vmatprep.mubr.bf16.mxu0 %v9119_v7  ;;  %v3927_v44 = vmul.f32 %v8674_v26, %v3905_v29  ;;  %v3950_v8 = vadd.f32 %v8682_v58, %v3928_v42 }
 0xe38   : > { %5498 = vmatpush3.bf16.msra.mxu1 %v6276_v10  ;;  %5562 = vmatpush3.bf16.msra.mxu0 %v6278_v16  ;;  %v6600_v25 = vpop.eup %6599 }
 0xe39   : > { %v6602_v31 = vpop.eup %6601  ;;  %v3908_v55 = vmul.f32 %v6600_v25, %v8665_v23  ;;  %v3949_v33 = vadd.f32 %v8682_v58, %v3927_v44  ;;  %5499 = vmatprep.subr.bf16.mxu1 %v6279_v54 }
 0xe3a   : > { %v3907_v1 = vmul.f32 %v6602_v31, %v8660_v50  ;;  %v6281_v50 = vld [vmem:[#allocation10 + $0xf8] sm:$0xff]  }
 0xe3b   : > { %v3959_v48 = vpack.c.bf16 %v3950_v8, %v3949_v33  ;;  %v3930_v3 = vmul.f32 %v8674_v26, %v3908_v55  ;;  %5563 = vmatprep.subr.bf16.mxu0 %v6281_v50 }
 0xe3c   : > { %v3929_v0 = vmul.f32 %v8674_v26, %v3907_v1  ;;  %5500 = vmatpush3.bf16.msra.mxu1 %v6280_v35  ;;  %5564 = vmatpush3.bf16.msra.mxu0 %v6282_v9  ;;  %v9120_v26 = vld [vmem:[#allocation28_spill] sm:$0xff] }
 0xe3d   : > { %v3952_v56 = vadd.f32 %v8682_v58, %v3930_v3  ;;  %v3997_v53 = vsub.s32 0, %v9120_v26  ;;  %v4005_v28 = vsub.s32 2, %v9120_v26  ;;  %v4009_v57 = vsub.s32 3, %v9120_v26 }
 0xe3e   : > { %4248 = vmatmul.mubr.bf16.gmra.mrb[112].mxu1 %v3957_v63  ;;  %4361 = vmatmul.mubr.bf16.gmra.mrb[112].mxu0 %v3957_v63  ;;  %v3951_v60 = vadd.f32 %v8682_v58, %v3929_v0  ;;  %v4001_v58 = vsub.s32 1, %v9120_v26 }
 0xe3f   : > { %4257 = vmatprep.mubr.bf16.mxu1 %v9119_v7  ;;  %4370 = vmatprep.mubr.bf16.mxu0 %v9119_v7 }
 0xe40   : > { %v3960_v23 = vpack.c.bf16 %v3952_v56, %v3951_v60 }
 0xe46   : > { %4258 = vmatmul.mubr.bf16.gmra.mrb[116].mxu1 %v3958_v15  ;;  %4371 = vmatmul.mubr.bf16.gmra.mrb[116].mxu0 %v3958_v15 }
 0xe47   : > { %4267 = vmatprep.mubr.bf16.mxu1 %v9119_v7  ;;  %4380 = vmatprep.mubr.bf16.mxu0 %v9119_v7 }
 0xe4e   : > { %4268 = vmatmul.mubr.bf16.gmra.mrb[120].mxu1 %v3959_v48  ;;  %4381 = vmatmul.mubr.bf16.gmra.mrb[120].mxu0 %v3959_v48 }
 0xe4f   : > { %4277 = vmatprep.mubr.bf16.mxu1 %v9119_v7  ;;  %4390 = vmatprep.mubr.bf16.mxu0 %v9119_v7  ;;  %v3993_v7 = vld [vmem:[%s9121_s17] sm:$0xf]  ;;  %s6767_s17 = scalar_lea.vmem %s6766_s29, 4096 }
 0xe50   : > { %v8750_v32 = vrot.slane %v3993_v7, %v3997_v53  ;;  %v8752_v10 = vrot.slane %v3993_v7, %v4005_v28  ;;  %v8754_v38 = vrot.slane %v3993_v7, %v4001_v58  ;;  %v8756_v14 = vrot.slane %v3993_v7, %v4009_v57  ;;  %p6769_p2 = scmp.lt.s32.totalorder %s6767_s17, %s6761_s25 }
 0xe52   : > { %p6770_p1 = por %p6769_p2, %p6768_p12 }
 0xe54   : > { %p6771_p13 = pnand %p6770_p1, %p6764_p7 }
 0xe56   : > { %4278 = vmatmul.mubr.bf16.gmra.mrb[124].mxu1 %v3960_v23  ;;  %4391 = vmatmul.mubr.bf16.gmra.mrb[124].mxu0 %v3960_v23 }
 0xef1   : > { %v4209_v12 = vpop.f32.mrb[96].mxu1  ;;  %v4322_v41 = vpop.f32.mrb[96].mxu0 }
 0xef2   : > { %v4210_v59 = vadd.f32 %v4209_v12, %v8750_v32  ;;  %v4323_v27 = vadd.f32 %v4322_v41, %v8752_v10  ;;  %v4211_v51 = vpop.f32.mrb[97].mxu1  ;;  %v4324_v45 = vpop.f32.mrb[97].mxu0 }
 0xef3   : > { %v4212_v16 = vadd.f32 %v4211_v51, %v8754_v38  ;;  %v4325_v13 = vadd.f32 %v4324_v45, %v8756_v14  ;;  %v4213_v20 = vpop.f32.mrb[98].mxu1  ;;  %v4326_v6 = vpop.f32.mrb[98].mxu0 }
 0xef4   : > { %v4214_v63 = vadd.f32 %v4213_v20, %v8750_v32  ;;  %v4327_v21 = vadd.f32 %v4326_v6, %v8752_v10  ;;  %v4215_v11 = vpop.f32.mrb[99].mxu1  ;;  %v4328_v36 = vpop.f32.mrb[99].mxu0  ;;  %v4401_v18 = vmax.f32 %v4210_v59, 0.0  ;;  %v4403_v30 = vmax.f32 %v4323_v27, 0.0 }
 0xef5   : > { %v4216_v24 = vadd.f32 %v4215_v11, %v8754_v38  ;;  %v4329_v17 = vadd.f32 %v4328_v36, %v8756_v14  ;;  %v4402_v42 = vmax.f32 %v4212_v16, 0.0  ;;  %v4404_v25 = vmax.f32 %v4325_v13, 0.0 }
 0xef6   : > { %v4405_v29 = vmax.f32 %v4214_v63, 0.0  ;;  %v4407_v15 = vmax.f32 %v4327_v21, 0.0 }
 0xef7   : > { %v4406_v44 = vmax.f32 %v4216_v24, 0.0  ;;  %v4408_v31 = vmax.f32 %v4329_v17, 0.0 }
 0xef8   : > { %v4465_v8 = vpack.c.bf16 %v4405_v29, %v4401_v18  ;;  %v4467_v55 = vpack.c.bf16 %v4407_v15, %v4403_v30 }
 0xef9   : > { %v4466_v33 = vpack.c.bf16 %v4406_v44, %v4402_v42  ;;  %v4468_v1 = vpack.c.bf16 %v4408_v31, %v4404_v25  ;;  %v4219_v48 = vpop.f32.mrb[100].mxu1  ;;  %v4332_v3 = vpop.f32.mrb[100].mxu0 }
 0xefa   : > { %v4220_v0 = vadd.f32 %v4219_v48, %v8750_v32  ;;  %v4333_v56 = vadd.f32 %v4332_v3, %v8752_v10  ;;  %v4221_v60 = vpop.f32.mrb[101].mxu1  ;;  %v4334_v23 = vpop.f32.mrb[101].mxu0 }
 0xefb   : > { %v4222_v54 = vadd.f32 %v4221_v60, %v8754_v38  ;;  %v4335_v50 = vadd.f32 %v4334_v23, %v8756_v14  ;;  %v4223_v35 = vpop.f32.mrb[102].mxu1  ;;  %v4336_v9 = vpop.f32.mrb[102].mxu0  ;;  %4792 = vmatprep.mubr.bf16.mxu1 %v4466_v33  ;;  %4889 = vmatprep.mubr.bf16.mxu0 %v4468_v1 }
 0xefc   : > { %v4224_v26 = vadd.f32 %v4223_v35, %v8750_v32  ;;  %v4337_v53 = vadd.f32 %v4336_v9, %v8752_v10  ;;  %v4225_v28 = vpop.f32.mrb[103].mxu1  ;;  %v4338_v7 = vpop.f32.mrb[103].mxu0  ;;  %4793 = vmatmul.mubr.bf16.vlgmr.msra.gmra.mrb[128].mxu1 %v4465_v8  ;;  %4890 = vmatmul.mubr.bf16.vlgmr.msra.gmra.mrb[128].mxu0 %v4467_v55  ;;  %v4409_v12 = vmax.f32 %v4220_v0, 0.0  ;;  %v4411_v41 = vmax.f32 %v4333_v56, 0.0 }
 0xefd   : > { %v4226_v58 = vadd.f32 %v4225_v28, %v8754_v38  ;;  %v4339_v57 = vadd.f32 %v4338_v7, %v8756_v14  ;;  %v4410_v51 = vmax.f32 %v4222_v54, 0.0  ;;  %v4412_v45 = vmax.f32 %v4335_v50, 0.0 }
 0xefe   : > { %v4413_v59 = vmax.f32 %v4224_v26, 0.0  ;;  %v4415_v27 = vmax.f32 %v4337_v53, 0.0 }
 0xeff   : > { %v4414_v16 = vmax.f32 %v4226_v58, 0.0  ;;  %v4416_v13 = vmax.f32 %v4339_v57, 0.0 }
 0xf00   : > { %v4469_v20 = vpack.c.bf16 %v4413_v59, %v4409_v12  ;;  %v4471_v6 = vpack.c.bf16 %v4415_v27, %v4411_v41 }
 0xf01   : > { %v4470_v63 = vpack.c.bf16 %v4414_v16, %v4410_v51  ;;  %v4472_v21 = vpack.c.bf16 %v4416_v13, %v4412_v45  ;;  %v4229_v11 = vpop.f32.mrb[104].mxu1  ;;  %v4342_v36 = vpop.f32.mrb[104].mxu0 }
 0xf02   : > { %v4230_v24 = vadd.f32 %v4229_v11, %v8750_v32  ;;  %v4343_v17 = vadd.f32 %v4342_v36, %v8752_v10  ;;  %v4231_v18 = vpop.f32.mrb[105].mxu1  ;;  %v4344_v30 = vpop.f32.mrb[105].mxu0 }
 0xf03   : > { %v4232_v29 = vadd.f32 %v4231_v18, %v8754_v38  ;;  %v4345_v15 = vadd.f32 %v4344_v30, %v8756_v14  ;;  %v4233_v42 = vpop.f32.mrb[106].mxu1  ;;  %v4346_v25 = vpop.f32.mrb[106].mxu0  ;;  %4800 = vmatprep.mubr.bf16.mxu1 %v4470_v63  ;;  %4897 = vmatprep.mubr.bf16.mxu0 %v4472_v21 }
 0xf04   : > { %v4234_v44 = vadd.f32 %v4233_v42, %v8750_v32  ;;  %v4347_v31 = vadd.f32 %v4346_v25, %v8752_v10  ;;  %v4235_v8 = vpop.f32.mrb[107].mxu1  ;;  %v4348_v55 = vpop.f32.mrb[107].mxu0  ;;  %4801 = vmatmul.mubr.bf16.gmra.mrb[132].mxu1 %v4469_v20  ;;  %4898 = vmatmul.mubr.bf16.gmra.mrb[132].mxu0 %v4471_v6  ;;  %v4417_v48 = vmax.f32 %v4230_v24, 0.0  ;;  %v4419_v3 = vmax.f32 %v4343_v17, 0.0 }
 0xf05   : > { %v4236_v33 = vadd.f32 %v4235_v8, %v8754_v38  ;;  %v4349_v1 = vadd.f32 %v4348_v55, %v8756_v14  ;;  %v4418_v60 = vmax.f32 %v4232_v29, 0.0  ;;  %v4420_v23 = vmax.f32 %v4345_v15, 0.0 }
 0xf06   : > { %v4421_v0 = vmax.f32 %v4234_v44, 0.0  ;;  %v4423_v56 = vmax.f32 %v4347_v31, 0.0 }
 0xf07   : > { %v4422_v54 = vmax.f32 %v4236_v33, 0.0  ;;  %v4424_v50 = vmax.f32 %v4349_v1, 0.0 }
 0xf08   : > { %v4473_v35 = vpack.c.bf16 %v4421_v0, %v4417_v48  ;;  %v4475_v9 = vpack.c.bf16 %v4423_v56, %v4419_v3 }
 0xf09   : > { %v4474_v26 = vpack.c.bf16 %v4422_v54, %v4418_v60  ;;  %v4476_v53 = vpack.c.bf16 %v4424_v50, %v4420_v23  ;;  %v4239_v28 = vpop.f32.mrb[108].mxu1  ;;  %v4352_v7 = vpop.f32.mrb[108].mxu0 }
 0xf0a   : > { %v4240_v58 = vadd.f32 %v4239_v28, %v8750_v32  ;;  %v4353_v57 = vadd.f32 %v4352_v7, %v8752_v10  ;;  %v4241_v12 = vpop.f32.mrb[109].mxu1  ;;  %v4354_v41 = vpop.f32.mrb[109].mxu0 }
 0xf0b   : > { %v4242_v59 = vadd.f32 %v4241_v12, %v8754_v38  ;;  %v4355_v27 = vadd.f32 %v4354_v41, %v8756_v14  ;;  %v4243_v51 = vpop.f32.mrb[110].mxu1  ;;  %v4356_v45 = vpop.f32.mrb[110].mxu0  ;;  %4808 = vmatprep.mubr.bf16.mxu1 %v4474_v26  ;;  %4905 = vmatprep.mubr.bf16.mxu0 %v4476_v53 }
 0xf0c   : > { %v4244_v16 = vadd.f32 %v4243_v51, %v8750_v32  ;;  %v4357_v13 = vadd.f32 %v4356_v45, %v8752_v10  ;;  %v4245_v20 = vpop.f32.mrb[111].mxu1  ;;  %v4358_v6 = vpop.f32.mrb[111].mxu0  ;;  %4809 = vmatmul.mubr.bf16.gmra.mrb[136].mxu1 %v4473_v35  ;;  %4906 = vmatmul.mubr.bf16.gmra.mrb[136].mxu0 %v4475_v9  ;;  %v4425_v11 = vmax.f32 %v4240_v58, 0.0  ;;  %v4427_v36 = vmax.f32 %v4353_v57, 0.0 }
 0xf0d   : > { %v4246_v63 = vadd.f32 %v4245_v20, %v8754_v38  ;;  %v4359_v21 = vadd.f32 %v4358_v6, %v8756_v14  ;;  %v4426_v18 = vmax.f32 %v4242_v59, 0.0  ;;  %v4428_v30 = vmax.f32 %v4355_v27, 0.0 }
 0xf0e   : > { %v4429_v24 = vmax.f32 %v4244_v16, 0.0  ;;  %v4431_v17 = vmax.f32 %v4357_v13, 0.0 }
 0xf0f   : > { %v4430_v29 = vmax.f32 %v4246_v63, 0.0  ;;  %v4432_v15 = vmax.f32 %v4359_v21, 0.0 }
 0xf10   : > { %v4477_v42 = vpack.c.bf16 %v4429_v24, %v4425_v11  ;;  %v4479_v25 = vpack.c.bf16 %v4431_v17, %v4427_v36 }
 0xf11   : > { %v4478_v44 = vpack.c.bf16 %v4430_v29, %v4426_v18  ;;  %v4480_v31 = vpack.c.bf16 %v4432_v15, %v4428_v30  ;;  %v4249_v8 = vpop.f32.mrb[112].mxu1  ;;  %v4362_v55 = vpop.f32.mrb[112].mxu0 }
 0xf12   : > { %v4250_v33 = vadd.f32 %v4249_v8, %v8750_v32  ;;  %v4363_v1 = vadd.f32 %v4362_v55, %v8752_v10  ;;  %v4251_v48 = vpop.f32.mrb[113].mxu1  ;;  %v4364_v3 = vpop.f32.mrb[113].mxu0 }
 0xf13   : > { %v4252_v0 = vadd.f32 %v4251_v48, %v8754_v38  ;;  %v4365_v56 = vadd.f32 %v4364_v3, %v8756_v14  ;;  %v4253_v60 = vpop.f32.mrb[114].mxu1  ;;  %v4366_v23 = vpop.f32.mrb[114].mxu0  ;;  %4816 = vmatprep.mubr.bf16.mxu1 %v4478_v44  ;;  %4913 = vmatprep.mubr.bf16.mxu0 %v4480_v31 }
 0xf14   : > { %v4254_v54 = vadd.f32 %v4253_v60, %v8750_v32  ;;  %v4367_v50 = vadd.f32 %v4366_v23, %v8752_v10  ;;  %v4255_v35 = vpop.f32.mrb[115].mxu1  ;;  %v4368_v9 = vpop.f32.mrb[115].mxu0  ;;  %4817 = vmatmul.mubr.bf16.gmra.mrb[140].mxu1 %v4477_v42  ;;  %4914 = vmatmul.mubr.bf16.gmra.mrb[140].mxu0 %v4479_v25  ;;  %v4433_v28 = vmax.f32 %v4250_v33, 0.0  ;;  %v4435_v7 = vmax.f32 %v4363_v1, 0.0 }
 0xf15   : > { %v4256_v26 = vadd.f32 %v4255_v35, %v8754_v38  ;;  %v4369_v53 = vadd.f32 %v4368_v9, %v8756_v14  ;;  %v4434_v12 = vmax.f32 %v4252_v0, 0.0  ;;  %v4436_v41 = vmax.f32 %v4365_v56, 0.0 }
 0xf16   : > { %v4437_v58 = vmax.f32 %v4254_v54, 0.0  ;;  %v4439_v57 = vmax.f32 %v4367_v50, 0.0 }
 0xf17   : > { %v4438_v59 = vmax.f32 %v4256_v26, 0.0  ;;  %v4440_v27 = vmax.f32 %v4369_v53, 0.0 }
 0xf18   : > { %v4481_v51 = vpack.c.bf16 %v4437_v58, %v4433_v28  ;;  %v4483_v45 = vpack.c.bf16 %v4439_v57, %v4435_v7 }
 0xf19   : > { %v4482_v16 = vpack.c.bf16 %v4438_v59, %v4434_v12  ;;  %v4484_v13 = vpack.c.bf16 %v4440_v27, %v4436_v41  ;;  %v4259_v20 = vpop.f32.mrb[116].mxu1  ;;  %v4372_v6 = vpop.f32.mrb[116].mxu0 }
 0xf1a   : > { %v4260_v63 = vadd.f32 %v4259_v20, %v8750_v32  ;;  %v4373_v21 = vadd.f32 %v4372_v6, %v8752_v10  ;;  %v4261_v11 = vpop.f32.mrb[117].mxu1  ;;  %v4374_v36 = vpop.f32.mrb[117].mxu0 }
 0xf1b   : > { %v4262_v24 = vadd.f32 %v4261_v11, %v8754_v38  ;;  %v4375_v17 = vadd.f32 %v4374_v36, %v8756_v14  ;;  %v4263_v18 = vpop.f32.mrb[118].mxu1  ;;  %v4376_v30 = vpop.f32.mrb[118].mxu0  ;;  %4824 = vmatprep.mubr.bf16.mxu1 %v4482_v16  ;;  %4921 = vmatprep.mubr.bf16.mxu0 %v4484_v13 }
 0xf1c   : > { %v4264_v29 = vadd.f32 %v4263_v18, %v8750_v32  ;;  %v4377_v15 = vadd.f32 %v4376_v30, %v8752_v10  ;;  %v4265_v42 = vpop.f32.mrb[119].mxu1  ;;  %v4378_v25 = vpop.f32.mrb[119].mxu0  ;;  %4825 = vmatmul.mubr.bf16.gmra.mrb[144].mxu1 %v4481_v51  ;;  %4922 = vmatmul.mubr.bf16.gmra.mrb[144].mxu0 %v4483_v45  ;;  %v4441_v8 = vmax.f32 %v4260_v63, 0.0  ;;  %v4443_v55 = vmax.f32 %v4373_v21, 0.0 }
 0xf1d   : > { %v4266_v44 = vadd.f32 %v4265_v42, %v8754_v38  ;;  %v4379_v31 = vadd.f32 %v4378_v25, %v8756_v14  ;;  %v4442_v48 = vmax.f32 %v4262_v24, 0.0  ;;  %v4444_v3 = vmax.f32 %v4375_v17, 0.0 }
 0xf1e   : > { %v4445_v33 = vmax.f32 %v4264_v29, 0.0  ;;  %v4447_v1 = vmax.f32 %v4377_v15, 0.0 }
 0xf1f   : > { %v4446_v0 = vmax.f32 %v4266_v44, 0.0  ;;  %v4448_v56 = vmax.f32 %v4379_v31, 0.0 }
 0xf20   : > { %v4485_v60 = vpack.c.bf16 %v4445_v33, %v4441_v8  ;;  %v4487_v23 = vpack.c.bf16 %v4447_v1, %v4443_v55 }
 0xf21   : > { %v4486_v54 = vpack.c.bf16 %v4446_v0, %v4442_v48  ;;  %v4488_v50 = vpack.c.bf16 %v4448_v56, %v4444_v3  ;;  %v4269_v35 = vpop.f32.mrb[120].mxu1  ;;  %v4382_v9 = vpop.f32.mrb[120].mxu0 }
 0xf22   : > { %v4270_v26 = vadd.f32 %v4269_v35, %v8750_v32  ;;  %v4383_v53 = vadd.f32 %v4382_v9, %v8752_v10  ;;  %v4271_v28 = vpop.f32.mrb[121].mxu1  ;;  %v4384_v7 = vpop.f32.mrb[121].mxu0 }
 0xf23   : > { %v4272_v58 = vadd.f32 %v4271_v28, %v8754_v38  ;;  %v4385_v57 = vadd.f32 %v4384_v7, %v8756_v14  ;;  %v4273_v12 = vpop.f32.mrb[122].mxu1  ;;  %v4386_v41 = vpop.f32.mrb[122].mxu0  ;;  %4832 = vmatprep.mubr.bf16.mxu1 %v4486_v54  ;;  %4929 = vmatprep.mubr.bf16.mxu0 %v4488_v50 }
 0xf24   : > { %v4274_v59 = vadd.f32 %v4273_v12, %v8750_v32  ;;  %v4387_v27 = vadd.f32 %v4386_v41, %v8752_v10  ;;  %v4275_v51 = vpop.f32.mrb[123].mxu1  ;;  %v4388_v45 = vpop.f32.mrb[123].mxu0  ;;  %4833 = vmatmul.mubr.bf16.gmra.mrb[148].mxu1 %v4485_v60  ;;  %4930 = vmatmul.mubr.bf16.gmra.mrb[148].mxu0 %v4487_v23  ;;  %v4449_v20 = vmax.f32 %v4270_v26, 0.0  ;;  %v4451_v6 = vmax.f32 %v4383_v53, 0.0 }
 0xf25   : > { %v4276_v16 = vadd.f32 %v4275_v51, %v8754_v38  ;;  %v4389_v13 = vadd.f32 %v4388_v45, %v8756_v14  ;;  %v4450_v11 = vmax.f32 %v4272_v58, 0.0  ;;  %v4452_v36 = vmax.f32 %v4385_v57, 0.0 }
 0xf26   : > { %v4453_v63 = vmax.f32 %v4274_v59, 0.0  ;;  %v4455_v21 = vmax.f32 %v4387_v27, 0.0 }
 0xf27   : > { %v4454_v24 = vmax.f32 %v4276_v16, 0.0  ;;  %v4456_v17 = vmax.f32 %v4389_v13, 0.0 }
 0xf28   : > { %v4489_v18 = vpack.c.bf16 %v4453_v63, %v4449_v20  ;;  %v4491_v30 = vpack.c.bf16 %v4455_v21, %v4451_v6 }
 0xf29   : > { %v4490_v29 = vpack.c.bf16 %v4454_v24, %v4450_v11  ;;  %v4492_v15 = vpack.c.bf16 %v4456_v17, %v4452_v36  ;;  %v4279_v42 = vpop.f32.mrb[124].mxu1  ;;  %v4392_v25 = vpop.f32.mrb[124].mxu0 }
 0xf2a   : > { %v4280_v44 = vadd.f32 %v4279_v42, %v8750_v32  ;;  %v4393_v31 = vadd.f32 %v4392_v25, %v8752_v10  ;;  %v4281_v8 = vpop.f32.mrb[125].mxu1  ;;  %v4394_v55 = vpop.f32.mrb[125].mxu0 }
 0xf2b   : > { %v4282_v33 = vadd.f32 %v4281_v8, %v8754_v38  ;;  %v4395_v1 = vadd.f32 %v4394_v55, %v8756_v14  ;;  %v4283_v48 = vpop.f32.mrb[126].mxu1  ;;  %v4396_v3 = vpop.f32.mrb[126].mxu0  ;;  %4840 = vmatprep.mubr.bf16.mxu1 %v4490_v29  ;;  %4937 = vmatprep.mubr.bf16.mxu0 %v4492_v15 }
 0xf2c   : > { %v4284_v0 = vadd.f32 %v4283_v48, %v8750_v32  ;;  %v4397_v56 = vadd.f32 %v4396_v3, %v8752_v10  ;;  %v4285_v60 = vpop.f32.mrb[127].mxu1  ;;  %v4398_v23 = vpop.f32.mrb[127].mxu0  ;;  %4841 = vmatmul.mubr.bf16.gmra.mrb[152].mxu1 %v4489_v18  ;;  %4938 = vmatmul.mubr.bf16.gmra.mrb[152].mxu0 %v4491_v30  ;;  %v4457_v35 = vmax.f32 %v4280_v44, 0.0  ;;  %v4459_v9 = vmax.f32 %v4393_v31, 0.0 }
 0xf2d   : > { %v4286_v54 = vadd.f32 %v4285_v60, %v8754_v38  ;;  %v4399_v50 = vadd.f32 %v4398_v23, %v8756_v14  ;;  %v4458_v28 = vmax.f32 %v4282_v33, 0.0  ;;  %v4460_v7 = vmax.f32 %v4395_v1, 0.0  ;;  %v8825_v14 = vld [vmem:[%s9122_s1] ss:$0 sm:$0xff] }
 0xf2e   : > { %v4461_v26 = vmax.f32 %v4284_v0, 0.0  ;;  %v4463_v53 = vmax.f32 %v4397_v56, 0.0 }
 0xf2f   : > { %v4462_v58 = vmax.f32 %v4286_v54, 0.0  ;;  %v4464_v57 = vmax.f32 %v4399_v50, 0.0 }
 0xf30   : > { %v4493_v12 = vpack.c.bf16 %v4461_v26, %v4457_v35  ;;  %v4495_v32 = vpack.c.bf16 %v4463_v53, %v4459_v9 }
 0xf31   : > { %v4494_v41 = vpack.c.bf16 %v4462_v58, %v4458_v28  ;;  %v4496_v10 = vpack.c.bf16 %v4464_v57, %v4460_v7 }
 0xf33   : > { %4848 = vmatprep.mubr.bf16.mxu1 %v4494_v41  ;;  %4945 = vmatprep.mubr.bf16.mxu0 %v4496_v10 }
 0xf34   : > { %4849 = vmatmul.mubr.bf16.gmra.mrb[156].mxu1 %v4493_v12  ;;  %4946 = vmatmul.mubr.bf16.gmra.mrb[156].mxu0 %v4495_v32 }
 0xfcf   : > { %v5501_v59 = vpop.f32.mrb[128].mxu1  ;;  %v5565_v38 = vpop.f32.mrb[128].mxu0 }
 0xfd0   : > { %v5502_v27 = vpop.f32.mrb[129].mxu1  ;;  %v5566_v51 = vpop.f32.mrb[129].mxu0 }
 0xfd1   : > { %v5503_v45 = vadd.f32 %v5502_v27, %v5501_v59  ;;  %v5567_v16 = vadd.f32 %v5566_v51, %v5565_v38  ;;  %v5504_v13 = vpop.f32.mrb[130].mxu1  ;;  %v5568_v20 = vpop.f32.mrb[130].mxu0 }
 0xfd2   : > { %v5505_v6 = vpop.f32.mrb[131].mxu1  ;;  %v5569_v63 = vpop.f32.mrb[131].mxu0 }
 0xfd3   : > { %v4795_v21 = vadd.f32 %v5503_v45, %v8825_v14  ;;  %v5506_v11 = vadd.f32 %v5505_v6, %v5504_v13  ;;  %v5570_v36 = vadd.f32 %v5569_v63, %v5568_v20 }
 0xfd5   : > { %v4892_v24 = vadd.f32 %v5567_v16, %v4795_v21  ;;  %v4798_v17 = vadd.f32 %v5506_v11, %v8825_v14 }
 0xfd7   : > { %v4954_v18 = vadd.f32 %v4892_v24, %v8514_v43  ;;  %v4895_v30 = vadd.f32 %v5570_v36, %v4798_v17  ;;  %v5507_v29 = vpop.f32.mrb[132].mxu1  ;;  %v5571_v15 = vpop.f32.mrb[132].mxu0 }
 0xfd8   : > { %v5508_v42 = vpop.f32.mrb[133].mxu1  ;;  %v5572_v25 = vpop.f32.mrb[133].mxu0 }
 0xfd9   : > { %4970 = vst [vmem:[%s8832_s18] sm:$0xff] %v4954_v18  ;;  %v4955_v44 = vadd.f32 %v4895_v30, %v8519_v40  ;;  %v5509_v31 = vadd.f32 %v5508_v42, %v5507_v29  ;;  %v5573_v8 = vadd.f32 %v5572_v25, %v5571_v15  ;;  %v5510_v55 = vpop.f32.mrb[134].mxu1  ;;  %v5574_v33 = vpop.f32.mrb[134].mxu0 }
 0xfda   : > { %v5511_v1 = vpop.f32.mrb[135].mxu1  ;;  %v5575_v43 = vpop.f32.mrb[135].mxu0 }
 0xfdb   : > { %4971 = vst [vmem:[%s8832_s18 + $0x8] sm:$0xff] %v4955_v44  ;;  %v4803_v48 = vadd.f32 %v5509_v31, %v8825_v14  ;;  %v5512_v3 = vadd.f32 %v5511_v1, %v5510_v55  ;;  %v5576_v0 = vadd.f32 %v5575_v43, %v5574_v33 }
 0xfdd   : > { %v4900_v56 = vadd.f32 %v5573_v8, %v4803_v48  ;;  %v4806_v60 = vadd.f32 %v5512_v3, %v8825_v14 }
 0xfdf   : > { %v4956_v23 = vadd.f32 %v4900_v56, %v8523_v37  ;;  %v4903_v54 = vadd.f32 %v5576_v0, %v4806_v60  ;;  %v5513_v40 = vpop.f32.mrb[136].mxu1  ;;  %v5577_v50 = vpop.f32.mrb[136].mxu0 }
 0xfe0   : > { %v5514_v35 = vpop.f32.mrb[137].mxu1  ;;  %v5578_v9 = vpop.f32.mrb[137].mxu0 }
 0xfe1   : > { %4972 = vst [vmem:[%s8832_s18 + $0x10] sm:$0xff] %v4956_v23  ;;  %v4957_v26 = vadd.f32 %v4903_v54, %v8527_v52  ;;  %v5515_v53 = vadd.f32 %v5514_v35, %v5513_v40  ;;  %v5579_v28 = vadd.f32 %v5578_v9, %v5577_v50  ;;  %v5516_v7 = vpop.f32.mrb[138].mxu1  ;;  %v5580_v58 = vpop.f32.mrb[138].mxu0 }
 0xfe2   : > { %v5517_v57 = vpop.f32.mrb[139].mxu1  ;;  %v5581_v12 = vpop.f32.mrb[139].mxu0 }
 0xfe3   : > { %4973 = vst [vmem:[%s8832_s18 + $0x18] sm:$0xff] %v4957_v26  ;;  %v4811_v32 = vadd.f32 %v5515_v53, %v8825_v14  ;;  %v5518_v41 = vadd.f32 %v5517_v57, %v5516_v7  ;;  %v5582_v37 = vadd.f32 %v5581_v12, %v5580_v58 }
 0xfe5   : > { %v4908_v10 = vadd.f32 %v5579_v28, %v4811_v32  ;;  %v4814_v59 = vadd.f32 %v5518_v41, %v8825_v14 }
 0xfe7   : > { %v4958_v38 = vadd.f32 %v4908_v10, %v8533_v47  ;;  %v4911_v27 = vadd.f32 %v5582_v37, %v4814_v59  ;;  %v5519_v52 = vpop.f32.mrb[140].mxu1  ;;  %v5583_v51 = vpop.f32.mrb[140].mxu0 }
 0xfe8   : > { %v5520_v45 = vpop.f32.mrb[141].mxu1  ;;  %v5584_v16 = vpop.f32.mrb[141].mxu0 }
 0xfe9   : > { %4974 = vst [vmem:[%s8832_s18 + $0x20] sm:$0xff] %v4958_v38  ;;  %v4959_v13 = vadd.f32 %v4911_v27, %v8539_v34  ;;  %v5521_v20 = vadd.f32 %v5520_v45, %v5519_v52  ;;  %v5585_v6 = vadd.f32 %v5584_v16, %v5583_v51  ;;  %v5522_v63 = vpop.f32.mrb[142].mxu1  ;;  %v5586_v21 = vpop.f32.mrb[142].mxu0 }
 0xfea   : > { %v5523_v11 = vpop.f32.mrb[143].mxu1  ;;  %v5587_v36 = vpop.f32.mrb[143].mxu0 }
 0xfeb   : > { %4975 = vst [vmem:[%s8832_s18 + $0x28] sm:$0xff] %v4959_v13  ;;  %v4819_v24 = vadd.f32 %v5521_v20, %v8825_v14  ;;  %v5524_v17 = vadd.f32 %v5523_v11, %v5522_v63  ;;  %v5588_v47 = vadd.f32 %v5587_v36, %v5586_v21 }
 0xfed   : > { %v4916_v18 = vadd.f32 %v5585_v6, %v4819_v24  ;;  %v4822_v30 = vadd.f32 %v5524_v17, %v8825_v14 }
 0xfef   : > { %v4960_v29 = vadd.f32 %v4916_v18, %v8543_v19  ;;  %v4919_v15 = vadd.f32 %v5588_v47, %v4822_v30  ;;  %v5525_v34 = vpop.f32.mrb[144].mxu1  ;;  %v5589_v42 = vpop.f32.mrb[144].mxu0 }
 0xff0   : > { %v5526_v25 = vpop.f32.mrb[145].mxu1  ;;  %v5590_v44 = vpop.f32.mrb[145].mxu0 }
 0xff1   : > { %4976 = vst [vmem:[%s8832_s18 + $0x30] sm:$0xff] %v4960_v29  ;;  %v4961_v31 = vadd.f32 %v4919_v15, %v8547_v61  ;;  %v5527_v8 = vadd.f32 %v5526_v25, %v5525_v34  ;;  %v5591_v55 = vadd.f32 %v5590_v44, %v5589_v42  ;;  %v5528_v33 = vpop.f32.mrb[146].mxu1  ;;  %v5592_v1 = vpop.f32.mrb[146].mxu0 }
 0xff2   : > { %v5529_v43 = vpop.f32.mrb[147].mxu1  ;;  %v5593_v48 = vpop.f32.mrb[147].mxu0 }
 0xff3   : > { %4977 = vst [vmem:[%s8832_s18 + $0x38] sm:$0xff] %v4961_v31  ;;  %v4827_v3 = vadd.f32 %v5527_v8, %v8825_v14  ;;  %v5530_v0 = vadd.f32 %v5529_v43, %v5528_v33  ;;  %v5594_v19 = vadd.f32 %v5593_v48, %v5592_v1 }
 0xff5   : > { %v4924_v56 = vadd.f32 %v5591_v55, %v4827_v3  ;;  %v4830_v60 = vadd.f32 %v5530_v0, %v8825_v14 }
 0xff7   : > { %v4962_v23 = vadd.f32 %v4924_v56, %v8554_v4  ;;  %v4927_v54 = vadd.f32 %v5594_v19, %v4830_v60  ;;  %v5531_v61 = vpop.f32.mrb[148].mxu1  ;;  %v5595_v40 = vpop.f32.mrb[148].mxu0 }
 0xff8   : > { %v5532_v50 = vpop.f32.mrb[149].mxu1  ;;  %v5596_v35 = vpop.f32.mrb[149].mxu0 }
 0xff9   : > { %4978 = vst [vmem:[%s8832_s18 + $0x40] sm:$0xff] %v4962_v23  ;;  %v4963_v9 = vadd.f32 %v4927_v54, %v8559_v49  ;;  %v5533_v26 = vadd.f32 %v5532_v50, %v5531_v61  ;;  %v5597_v53 = vadd.f32 %v5596_v35, %v5595_v40  ;;  %v5534_v28 = vpop.f32.mrb[150].mxu1  ;;  %v5598_v7 = vpop.f32.mrb[150].mxu0 }
 0xffa   : > { %v5535_v58 = vpop.f32.mrb[151].mxu1  ;;  %v5599_v57 = vpop.f32.mrb[151].mxu0 }
 0xffb   : > { %4979 = vst [vmem:[%s8832_s18 + $0x48] sm:$0xff] %v4963_v9  ;;  %v4835_v12 = vadd.f32 %v5533_v26, %v8825_v14  ;;  %v5536_v32 = vadd.f32 %v5535_v58, %v5534_v28  ;;  %v5600_v4 = vadd.f32 %v5599_v57, %v5598_v7 }
 0xffd   : > { %v4932_v41 = vadd.f32 %v5597_v53, %v4835_v12  ;;  %v4838_v37 = vadd.f32 %v5536_v32, %v8825_v14 }
 0xfff   : > { %v4964_v10 = vadd.f32 %v4932_v41, %v8563_v46  ;;  %v4935_v59 = vadd.f32 %v5600_v4, %v4838_v37  ;;  %v5537_v49 = vpop.f32.mrb[152].mxu1  ;;  %v5601_v38 = vpop.f32.mrb[152].mxu0 }
0x1000   : > { %v5538_v27 = vpop.f32.mrb[153].mxu1  ;;  %v5602_v52 = vpop.f32.mrb[153].mxu0 }
0x1001   : > { %4980 = vst [vmem:[%s8832_s18 + $0x50] sm:$0xff] %v4964_v10  ;;  %v4965_v51 = vadd.f32 %v4935_v59, %v8567_v39  ;;  %v5539_v45 = vadd.f32 %v5538_v27, %v5537_v49  ;;  %v5603_v16 = vadd.f32 %v5602_v52, %v5601_v38  ;;  %v5540_v13 = vpop.f32.mrb[154].mxu1  ;;  %v5604_v20 = vpop.f32.mrb[154].mxu0 }
0x1002   : > { %v5541_v6 = vpop.f32.mrb[155].mxu1  ;;  %v5605_v63 = vpop.f32.mrb[155].mxu0 }
0x1003   : > { %4981 = vst [vmem:[%s8832_s18 + $0x58] sm:$0xff] %v4965_v51  ;;  %v4843_v21 = vadd.f32 %v5539_v45, %v8825_v14  ;;  %v5542_v11 = vadd.f32 %v5541_v6, %v5540_v13  ;;  %v5606_v46 = vadd.f32 %v5605_v63, %v5604_v20 }
0x1005   : > { %v4940_v36 = vadd.f32 %v5603_v16, %v4843_v21  ;;  %v4846_v24 = vadd.f32 %v5542_v11, %v8825_v14 }
0x1007   : > { %v4966_v17 = vadd.f32 %v4940_v36, %v8573_v5  ;;  %v4943_v47 = vadd.f32 %v5606_v46, %v4846_v24  ;;  %v5543_v39 = vpop.f32.mrb[156].mxu1  ;;  %v5607_v18 = vpop.f32.mrb[156].mxu0 }
0x1008   : > { %v5544_v30 = vpop.f32.mrb[157].mxu1  ;;  %v5608_v29 = vpop.f32.mrb[157].mxu0 }
0x1009   : > { %4982 = vst [vmem:[%s8832_s18 + $0x60] sm:$0xff] %v4966_v17  ;;  %v4967_v15 = vadd.f32 %v4943_v47, %v8579_v62  ;;  %v5545_v34 = vadd.f32 %v5544_v30, %v5543_v39  ;;  %v5609_v42 = vadd.f32 %v5608_v29, %v5607_v18  ;;  %v5546_v25 = vpop.f32.mrb[158].mxu1  ;;  %v5610_v44 = vpop.f32.mrb[158].mxu0 }
0x100a   : > { %v5547_v31 = vpop.f32.mrb[159].mxu1  ;;  %v5611_v8 = vpop.f32.mrb[159].mxu0 }
0x100b   : > { %4983 = vst [vmem:[%s8832_s18 + $0x68] sm:$0xff] %v4967_v15  ;;  %v4851_v5 = vadd.f32 %v5545_v34, %v8825_v14  ;;  %v5548_v55 = vadd.f32 %v5547_v31, %v5546_v25  ;;  %v5612_v33 = vadd.f32 %v5611_v8, %v5610_v44 }
0x100d   : > { %v4948_v1 = vadd.f32 %v5609_v42, %v4851_v5  ;;  %v4854_v43 = vadd.f32 %v5548_v55, %v8825_v14 }
0x100f   : > { %v4968_v62 = vadd.f32 %v4948_v1, %v8583_v22  ;;  %v4951_v48 = vadd.f32 %v5612_v33, %v4854_v43 }
0x1011   : > { %4984 = vst [vmem:[%s8832_s18 + $0x70] sm:$0xff] %v4968_v62  ;;  %v4969_v3 = vadd.f32 %v4951_v48, %v8587_v2 }
0x1013   : > { %4985 = vst [vmem:[%s8832_s18 + $0x78] sm:$0xff] %v4969_v3 }
0x1014   : > { %6774 = shalt.err (!%p6771_p13)
}
0x1015   : > { %s6775_s16 = scalar_lea.hbm %s8881_s5, 2048  ;;  %s6779_s18 = scalar_lea.hbm %s9123_s14, 4096 }
0x1016   : > { %p6776_p9 = scmp.ne.s32.totalorder %s8881_s5, %s6775_s16  ;;  %p6780_p4 = scmp.lt.u32.totalorder %s8881_s5, %s9123_s14 }
0x1017   : > { %p6781_p8 = scmp.lt.u32.totalorder %s6779_s18, %s6775_s16  ;;  %p6783_p3 = scmp.lt.u32.totalorder %s6775_s16, %s8881_s5 }
0x1018   : > { %p6777_p0 = pnand %p6776_p9, %p7079_p10 }
0x1019   : > { %p6782_p6 = por %p6781_p8, %p6780_p4 }
0x101a   : > { %p6778_p11 = pneg %p6777_p0 }
0x101b   : > { %p6784_p5 = por %p6783_p3, %p6782_p6 }
0x101d   : > { %p6785_p7 = pnand %p6784_p5, %p6778_p11 }
0x101f   : > { %6788 = shalt.err (!%p6785_p7)
}
0x1020   : > { %s6856_s12 = smov 128   ;;  %s6857_s25 = smov 8  }
0x1021   : > { %6079 = dma.vmem_to_hbm [thread:$0]  (%p7079_p10), %s8883_s13, 2048, %s8881_s5, %s4987_s26, %s6856_s12, %s6856_s12, %s6857_s25  }
0x1022 PF: > { %s9124_s27 = sld [smem:[#allocation16_spill]]  ;;  %s9125_s29 = sld [smem:[#allocation17_spill]] }
0x1023   : > { %p9127_p2 = scmp.ge.s32.totalorder %s6835_s24, 2 }
0x1028   : > { %s5015_s17 = sand.u32 1, %s9124_s27   ;;  %p9126_p12 = scmp.ne.s32.totalorder %s9125_s29, 0 }
0x1029   : > { %s5016_s16 = scalar_lea.sflag [#allocation4], %s5015_s17 }
0x102a   : > { %p6099_p1 = pnand %p9127_p2, %p9126_p12 }
0x102c   : > { %6818 = dma.done.wait (!%p6099_p1), %s5016_s16, 2048  }
0x102d   : > { %6820 = vsyncadd (!%p6099_p1), %s5016_s16, 4294965248  ;;  %p27_p13 = scmp.ge.s32.totalorder %s7069_s30, 4   ;;  %s9128_s21 = smov %s6827_s22 }
0x102e   : > { %s9129_s22 = smov %s6831_s23  ;;  %s9130_s23 = smov %s7085_s20 }
0x102f   : > { %s9131_s24 = smov %s7069_s30  ;;  %29 = sbr.rel (!%p27_p13) target bundleno = 12 (0xc), region = 129 }
0x1036   :  { %5021 = vsyncpa [#allocation3], 1 }
0x1037   :  { %5023 = vsyncpa [#allocation3 + $0x1], 1 }
0x1038   :  { %5024 = vsyncpa [#allocation6], 1 }
0x1039   :  { %5025 = vsyncpa [#allocation9], 1 }
0x103a   :  { %5026 = vsyncpa [#allocation4], 1 }
0x103b   :  { %5028 = vsyncpa [#allocation4 + $0x1], 1 }

</bundles_post_ra>
